<compile_context>
chip_gen: v7x
topology: tpu7x:2x2x1
jax: 0.10.0
libtpu: 0.0.40
codegen_flags: <defaults>
</compile_context>

<pallas_src>
import numpy as np
import jax
import jax.numpy as jnp
from jax.experimental import pallas as pl
from jax.experimental.pallas import tpu as pltpu


# ----------------------------- Pallas kernel ---------------------------------


def _make_ghost_bottleneck_kernel(H, W, ch2):
    """Fused GhostBottleneck (s=1): GC1(act) -> GC2(no act) -> +residual, per image."""
    HW = H * W
    # Static tap metadata for the 5x5 depthwise conv (padding=2).  Tap t reads the source
    # pixel (h + t//5 - 2, w + t%5 - 2); on the flattened lane axis that is a static roll
    # by -(dh*W + dw) plus a per-tap edge-validity mask (kills both out-of-image taps and
    # the roll wrap-around).
    tap_shifts = tuple((-((t // 5 - 2) * W + (t % 5 - 2))) % HW for t in range(25))

    def dw5x5(y, wd, bd, mask_rows):
        # y: (Ch, HW)  wd: (Ch, 25)  bd: (Ch, 1)  mask_rows: 25 x (1, HW)
        acc = jnp.zeros_like(y)
        for t in range(25):
            s = tap_shifts[t]
            shifted = pltpu.roll(y, shift=s, axis=1) if s else y
            acc = acc + shifted * mask_rows[t] * wd[:, t:t + 1]
        return acc + bd

    def kernel(x_ref, w1_ref, b1_ref, wd1_ref, bd1_ref,
               w2_ref, b2_ref, wd2_ref, bd2_ref, mask_ref, o_ref):
        x = x_ref[...].astype(jnp.float32)            # (C, HW), lane-dense
        masks = mask_ref[...]                          # (25, HW)
        mask_rows = [masks[t:t + 1, :] for t in range(25)]

        # ---- GhostConv #1: 1x1 conv (+folded BN) + SiLU -> 5x5 dw (+BN) + SiLU ----
        t1 = jnp.dot(w1_ref[...], x, preferred_element_type=jnp.float32) + b1_ref[...]
        t1 = t1 * jax.nn.sigmoid(t1)                   # SiLU
        g1 = dw5x5(t1, wd1_ref[...], bd1_ref[...], mask_rows)
        g1 = g1 * jax.nn.sigmoid(g1)
        z = jnp.concatenate([t1, g1], axis=0)          # ghost concat along sublanes (free)

        # ---- GhostConv #2: same structure, act=False ----
        t2 = jnp.dot(w2_ref[...], z, preferred_element_type=jnp.float32) + b2_ref[...]
        g2 = dw5x5(t2, wd2_ref[...], bd2_ref[...], mask_rows)

        # ---- ghost concat + fused bottleneck residual; full-lane unmasked stores ----
        o_ref[:ch2, :] = (t2 + x[:ch2, :]).astype(o_ref.dtype)
        o_ref[ch2:, :] = (g2 + x[ch2:, :]).astype(o_ref.dtype)

    return kernel


def ghost_bottleneck_forward(x_nchw, folded):
    """GhostBottleneck(c1, c2=c1, k, s=1) forward, eval-mode BN.  x: (B, c1, H, W)."""
    B, C, H, W = x_nchw.shape
    w1, b1, wd1, bd1, w2, b2, wd2, bd2, masks = folded
    ch2 = w2.shape[0]
    assert 2 * ch2 == C and 2 * w1.shape[0] == ch2
    HW = H * W
    x_flat = x_nchw.reshape(B, C, HW)                  # free reshape (contiguous)

    io_spec = pl.BlockSpec((None, C, HW), lambda b: (b, 0, 0))
    const = lambda b: (0, 0)
    in_specs = [io_spec] + [
        pl.BlockSpec(a.shape, const)
        for a in (w1, b1, wd1, bd1, w2, b2, wd2, bd2, masks)
    ]

    out = pl.pallas_call(
        _make_ghost_bottleneck_kernel(H, W, ch2),
        out_shape=jax.ShapeDtypeStruct((B, C, HW), x_nchw.dtype),
        grid_spec=pltpu.PrefetchScalarGridSpec(
            num_scalar_prefetch=0,
            grid=(B,),
            in_specs=in_specs,
            out_specs=io_spec,
        ),
        compiler_params=pltpu.CompilerParams(dimension_semantics=("parallel",)),
    )(x_flat, w1, b1, wd1, bd1, w2, b2, wd2, bd2, masks)
    return out.reshape(B, C, H, W)


# ------------------- one-time parameter folding (outside jit) -----------------


def _fold_bn(gamma, beta, mean, var, eps=1e-5):
    scale = gamma / jnp.sqrt(var + eps)
    return scale, beta - mean * scale


def _prep_ghostconv(w_pw, bn_pw, w_dw, bn_dw, eps=1e-5):
    """Fold eval-mode BN into the pointwise / depthwise weights; pack for the kernel."""
    s_pw, b_pw = _fold_bn(*bn_pw, eps=eps)
    w1 = w_pw[:, :, 0, 0] * s_pw[:, None]                     # (Ch, Cin)
    s_dw, b_dw = _fold_bn(*bn_dw, eps=eps)
    ch = w_dw.shape[0]
    wd = w_dw[:, 0].reshape(ch, 25) * s_dw[:, None]           # (Ch, 25), tap t = di*5+dj
    return w1, b_pw[:, None], wd, b_dw[:, None]


def _build_dw_masks(H, W):
    """(25, H*W) validity masks for the 5x5 depthwise taps (padding=2)."""
    hh, ww = np.meshgrid(np.arange(H), np.arange(W), indexing="ij")
    hh, ww = hh.reshape(-1), ww.reshape(-1)
    masks = np.zeros((25, H * W), np.float32)
    for t in range(25):
        dh, dw = t // 5 - 2, t % 5 - 2
        valid = (hh + dh >= 0) & (hh + dh < H) & (ww + dw >= 0) & (ww + dw < W)
        masks[t] = valid.astype(np.float32)
    return jnp.asarray(masks)


def prepare_ghost_bottleneck_params(params, H, W):
    """Run ONCE at load time (hoisted out of the jitted forward)."""
    gc1 = _prep_ghostconv(**params["gc1"])
    gc2 = _prep_ghostconv(**params["gc2"])
    return gc1 + gc2 + (_build_dw_masks(H, W),)


# ------------------------------ pure-JAX reference ---------------------------


def _silu(x):
    return x * jax.nn.sigmoid(x)


def _bn_ref(x, gamma, beta, mean, var, eps=1e-5):
    scale = gamma / jnp.sqrt(var + eps)
    return x * scale[None, :, None, None] + (beta - mean * scale)[None, :, None, None]


def _conv1x1_ref(x, w):                      # x: (B,C,H,W), w: (O,C,1,1)
    return jnp.einsum("bchw,oc->bohw", x, w[:, :, 0, 0])


def _dwconv5_ref(x, w):                      # w: (C,1,5,5), padding=2, groups=C
    B, C, H, W = x.shape
    xp = jnp.pad(x, ((0, 0), (0, 0), (2, 2), (2, 2)))
    out = jnp.zeros_like(x)
    for di in range(5):
        for dj in range(5):
            out = out + xp[:, :, di:di + H, dj:dj + W] * w[:, 0, di, dj][None, :, None, None]
    return out


def _ghostconv_ref(x, p, act):
    y = _bn_ref(_conv1x1_ref(x, p["w_pw"]), *p["bn_pw"])
    if act:
        y = _silu(y)
    z = _bn_ref(_dwconv5_ref(y, p["w_dw"]), *p["bn_dw"])
    if act:
        z = _silu(z)
    return jnp.concatenate([y, z], axis=1)


def ghost_bottleneck_reference(x, params):
    return _ghostconv_ref(_ghostconv_ref(x, params["gc1"], True), params["gc2"], False) + x


# ------------------------------------ main ------------------------------------


if __name__ == "__main__":
    B, c1, H, W = 2, 32, 16, 16        # GhostBottleneck(c1=32, c2=32, k=3, s=1)
    c2 = c1                            # s=1 residual requires c1 == c2
    c_hidden = c2 // 2                 # width between the two GhostConvs (16)
    ch1 = c_hidden // 2                # GhostConv #1 primary/ghost width (8)
    ch2 = c2 // 2                      # GhostConv #2 primary/ghost width (16)

    key = jax.random.PRNGKey(0)
    ks = jax.random.split(key, 21)

    def bn_params(keys, n):
        kg, kb, km, kv = keys
        return (1.0 + 0.1 * jax.random.normal(kg, (n,), jnp.float32),
                0.1 * jax.random.normal(kb, (n,), jnp.float32),
                0.1 * jax.random.normal(km, (n,), jnp.float32),
                0.5 + jnp.abs(jax.random.normal(kv, (n,), jnp.float32)))

    x = jax.random.normal(ks[0], (B, c1, H, W), jnp.float32)
    params = {
        "gc1": {
            "w_pw": 0.1 * jax.random.normal(ks[1], (ch1, c1, 1, 1), jnp.float32),
            "bn_pw": bn_params(ks[2:6], ch1),
            "w_dw": 0.1 * jax.random.normal(ks[6], (ch1, 1, 5, 5), jnp.float32),
            "bn_dw": bn_params(ks[7:11], ch1),
        },
        "gc2": {
            "w_pw": 0.1 * jax.random.normal(ks[11], (ch2, c_hidden, 1, 1), jnp.float32),
            "bn_pw": bn_params(ks[12:16], ch2),
            "w_dw": 0.1 * jax.random.normal(ks[16], (ch2, 1, 5, 5), jnp.float32),
            "bn_dw": bn_params(ks[17:21], ch2),
        },
    }

    # Weight folding / packing runs once, outside the jitted forward.
    folded = prepare_ghost_bottleneck_params(params, H, W)

    fwd = jax.jit(ghost_bottleneck_forward)
    out = jax.block_until_ready(fwd(x, folded))

    ref = ghost_bottleneck_reference(x, params)
    # Tolerance covers MXU default-precision f32 and BN-folding rounding differences vs
    # the unfused reference; structural bugs would show up at O(0.1-1).
    np.testing.assert_allclose(np.asarray(out), np.asarray(ref), rtol=2e-3, atol=2e-3)

    assert out.shape == (B, c2, H, W)
    print("KERNEL_OK")
</pallas_src>

<mosaic_0001>
module attributes {stable_mosaic.version = 11 : i64} {
  func.func @kernel(%arg0: i32, %arg1: memref<1x32x256xf32, #tpu.memory_space<vmem>>, %arg2: memref<8x32xf32, #tpu.memory_space<vmem>>, %arg3: memref<8x1xf32, #tpu.memory_space<vmem>>, %arg4: memref<8x25xf32, #tpu.memory_space<vmem>>, %arg5: memref<8x1xf32, #tpu.memory_space<vmem>>, %arg6: memref<16x16xf32, #tpu.memory_space<vmem>>, %arg7: memref<16x1xf32, #tpu.memory_space<vmem>>, %arg8: memref<16x25xf32, #tpu.memory_space<vmem>>, %arg9: memref<16x1xf32, #tpu.memory_space<vmem>>, %arg10: memref<25x256xf32, #tpu.memory_space<vmem>>, %arg11: memref<1x32x256xf32, #tpu.memory_space<vmem>>) attributes {dimension_semantics = [#tpu.dimension_semantics<parallel>], iteration_bounds = array<i64: 2>, scalar_prefetch = 0 : i64, scratch_operands = 0 : i64, tpu.core_type = #tpu.core_type<tc>, window_params = [{transform_indices = @transform_0, window_bounds = array<i64: 1, 32, 256>}, {pipeline_mode = #tpu.pipeline_mode<synchronous>, transform_indices = @transform_1, window_bounds = array<i64: 8, 32>}, {pipeline_mode = #tpu.pipeline_mode<synchronous>, transform_indices = @transform_2, window_bounds = array<i64: 8, 1>}, {pipeline_mode = #tpu.pipeline_mode<synchronous>, transform_indices = @transform_3, window_bounds = array<i64: 8, 25>}, {pipeline_mode = #tpu.pipeline_mode<synchronous>, transform_indices = @transform_4, window_bounds = array<i64: 8, 1>}, {pipeline_mode = #tpu.pipeline_mode<synchronous>, transform_indices = @transform_5, window_bounds = array<i64: 16, 16>}, {pipeline_mode = #tpu.pipeline_mode<synchronous>, transform_indices = @transform_6, window_bounds = array<i64: 16, 1>}, {pipeline_mode = #tpu.pipeline_mode<synchronous>, transform_indices = @transform_7, window_bounds = array<i64: 16, 25>}, {pipeline_mode = #tpu.pipeline_mode<synchronous>, transform_indices = @transform_8, window_bounds = array<i64: 16, 1>}, {pipeline_mode = #tpu.pipeline_mode<synchronous>, transform_indices = @transform_9, window_bounds = array<i64: 25, 256>}, {transform_indices = @transform_10, window_bounds = array<i64: 1, 32, 256>}]} {
    %c0 = arith.constant 0 : index
    %c0_0 = arith.constant 0 : index
    %c0_1 = arith.constant 0 : index
    %0 = vector.load %arg1[%c0, %c0_0, %c0_1] : memref<1x32x256xf32, #tpu.memory_space<vmem>>, vector<1x32x256xf32>
    %1 = vector.shape_cast %0 : vector<1x32x256xf32> to vector<32x256xf32>
    %c0_2 = arith.constant 0 : index
    %c0_3 = arith.constant 0 : index
    %2 = vector.load %arg10[%c0_2, %c0_3] : memref<25x256xf32, #tpu.memory_space<vmem>>, vector<25x256xf32>
    %3 = vector.extract_strided_slice %2 {offsets = [0, 0], sizes = [1, 256], strides = [1, 1]} : vector<25x256xf32> to vector<1x256xf32>
    %4 = vector.extract_strided_slice %2 {offsets = [1, 0], sizes = [1, 256], strides = [1, 1]} : vector<25x256xf32> to vector<1x256xf32>
    %5 = vector.extract_strided_slice %2 {offsets = [2, 0], sizes = [1, 256], strides = [1, 1]} : vector<25x256xf32> to vector<1x256xf32>
    %6 = vector.extract_strided_slice %2 {offsets = [3, 0], sizes = [1, 256], strides = [1, 1]} : vector<25x256xf32> to vector<1x256xf32>
    %7 = vector.extract_strided_slice %2 {offsets = [4, 0], sizes = [1, 256], strides = [1, 1]} : vector<25x256xf32> to vector<1x256xf32>
    %8 = vector.extract_strided_slice %2 {offsets = [5, 0], sizes = [1, 256], strides = [1, 1]} : vector<25x256xf32> to vector<1x256xf32>
    %9 = vector.extract_strided_slice %2 {offsets = [6, 0], sizes = [1, 256], strides = [1, 1]} : vector<25x256xf32> to vector<1x256xf32>
    %10 = vector.extract_strided_slice %2 {offsets = [7, 0], sizes = [1, 256], strides = [1, 1]} : vector<25x256xf32> to vector<1x256xf32>
    %11 = vector.extract_strided_slice %2 {offsets = [8, 0], sizes = [1, 256], strides = [1, 1]} : vector<25x256xf32> to vector<1x256xf32>
    %12 = vector.extract_strided_slice %2 {offsets = [9, 0], sizes = [1, 256], strides = [1, 1]} : vector<25x256xf32> to vector<1x256xf32>
    %13 = vector.extract_strided_slice %2 {offsets = [10, 0], sizes = [1, 256], strides = [1, 1]} : vector<25x256xf32> to vector<1x256xf32>
    %14 = vector.extract_strided_slice %2 {offsets = [11, 0], sizes = [1, 256], strides = [1, 1]} : vector<25x256xf32> to vector<1x256xf32>
    %15 = vector.extract_strided_slice %2 {offsets = [12, 0], sizes = [1, 256], strides = [1, 1]} : vector<25x256xf32> to vector<1x256xf32>
    %16 = vector.extract_strided_slice %2 {offsets = [13, 0], sizes = [1, 256], strides = [1, 1]} : vector<25x256xf32> to vector<1x256xf32>
    %17 = vector.extract_strided_slice %2 {offsets = [14, 0], sizes = [1, 256], strides = [1, 1]} : vector<25x256xf32> to vector<1x256xf32>
    %18 = vector.extract_strided_slice %2 {offsets = [15, 0], sizes = [1, 256], strides = [1, 1]} : vector<25x256xf32> to vector<1x256xf32>
    %19 = vector.extract_strided_slice %2 {offsets = [16, 0], sizes = [1, 256], strides = [1, 1]} : vector<25x256xf32> to vector<1x256xf32>
    %20 = vector.extract_strided_slice %2 {offsets = [17, 0], sizes = [1, 256], strides = [1, 1]} : vector<25x256xf32> to vector<1x256xf32>
    %21 = vector.extract_strided_slice %2 {offsets = [18, 0], sizes = [1, 256], strides = [1, 1]} : vector<25x256xf32> to vector<1x256xf32>
    %22 = vector.extract_strided_slice %2 {offsets = [19, 0], sizes = [1, 256], strides = [1, 1]} : vector<25x256xf32> to vector<1x256xf32>
    %23 = vector.extract_strided_slice %2 {offsets = [20, 0], sizes = [1, 256], strides = [1, 1]} : vector<25x256xf32> to vector<1x256xf32>
    %24 = vector.extract_strided_slice %2 {offsets = [21, 0], sizes = [1, 256], strides = [1, 1]} : vector<25x256xf32> to vector<1x256xf32>
    %25 = vector.extract_strided_slice %2 {offsets = [22, 0], sizes = [1, 256], strides = [1, 1]} : vector<25x256xf32> to vector<1x256xf32>
    %26 = vector.extract_strided_slice %2 {offsets = [23, 0], sizes = [1, 256], strides = [1, 1]} : vector<25x256xf32> to vector<1x256xf32>
    %27 = vector.extract_strided_slice %2 {offsets = [24, 0], sizes = [1, 256], strides = [1, 1]} : vector<25x256xf32> to vector<1x256xf32>
    %c0_4 = arith.constant 0 : index
    %c0_5 = arith.constant 0 : index
    %28 = vector.load %arg2[%c0_4, %c0_5] : memref<8x32xf32, #tpu.memory_space<vmem>>, vector<8x32xf32>
    %cst = arith.constant dense<0.000000e+00> : vector<8x256xf32>
    %29 = tpu.matmul %28, %1, %cst {dimension_numbers = #tpu.dot_dimension_numbers<[1], [0], [0], [1], [0, 0, 1, 1], [], []>} : vector<8x32xf32>, vector<32x256xf32>, vector<8x256xf32> -> vector<8x256xf32>
    %c0_6 = arith.constant 0 : index
    %c0_7 = arith.constant 0 : index
    %30 = vector.load %arg3[%c0_6, %c0_7] : memref<8x1xf32, #tpu.memory_space<vmem>>, vector<8x1xf32>
    %31 = vector.broadcast %30 : vector<8x1xf32> to vector<8x256xf32>
    %32 = arith.addf %29, %31 : vector<8x256xf32>
    %33 = arith.negf %32 : vector<8x256xf32>
    %34 = math.exp %33 : vector<8x256xf32>
    %cst_8 = arith.constant 1.000000e+00 : f32
    %35 = vector.broadcast %cst_8 : f32 to vector<8x256xf32>
    %36 = arith.addf %35, %34 : vector<8x256xf32>
    %37 = arith.divf %35, %36 : vector<8x256xf32>
    %38 = arith.mulf %32, %37 : vector<8x256xf32>
    %c0_9 = arith.constant 0 : index
    %c0_10 = arith.constant 0 : index
    %39 = vector.load %arg4[%c0_9, %c0_10] : memref<8x25xf32, #tpu.memory_space<vmem>>, vector<8x25xf32>
    %c0_11 = arith.constant 0 : index
    %c0_12 = arith.constant 0 : index
    %40 = vector.load %arg5[%c0_11, %c0_12] : memref<8x1xf32, #tpu.memory_space<vmem>>, vector<8x1xf32>
    %cst_13 = arith.constant 0.000000e+00 : f32
    %41 = vector.broadcast %cst_13 : f32 to vector<8x256xf32>
    %c34_i32 = arith.constant 34 : i32
    %42 = tpu.dynamic_rotate %38 by %c34_i32 dim 1 : vector<8x256xf32>, i32 -> vector<8x256xf32>
    %43 = vector.broadcast %3 : vector<1x256xf32> to vector<8x256xf32>
    %44 = arith.mulf %42, %43 : vector<8x256xf32>
    %45 = vector.extract_strided_slice %39 {offsets = [0, 0], sizes = [8, 1], strides = [1, 1]} : vector<8x25xf32> to vector<8x1xf32>
    %46 = vector.broadcast %45 : vector<8x1xf32> to vector<8x256xf32>
    %47 = arith.mulf %44, %46 : vector<8x256xf32>
    %48 = arith.addf %41, %47 : vector<8x256xf32>
    %c33_i32 = arith.constant 33 : i32
    %49 = tpu.dynamic_rotate %38 by %c33_i32 dim 1 : vector<8x256xf32>, i32 -> vector<8x256xf32>
    %50 = vector.broadcast %4 : vector<1x256xf32> to vector<8x256xf32>
    %51 = arith.mulf %49, %50 : vector<8x256xf32>
    %52 = vector.extract_strided_slice %39 {offsets = [0, 1], sizes = [8, 1], strides = [1, 1]} : vector<8x25xf32> to vector<8x1xf32>
    %53 = vector.broadcast %52 : vector<8x1xf32> to vector<8x256xf32>
    %54 = arith.mulf %51, %53 : vector<8x256xf32>
    %55 = arith.addf %48, %54 : vector<8x256xf32>
    %c32_i32 = arith.constant 32 : i32
    %56 = tpu.dynamic_rotate %38 by %c32_i32 dim 1 : vector<8x256xf32>, i32 -> vector<8x256xf32>
    %57 = vector.broadcast %5 : vector<1x256xf32> to vector<8x256xf32>
    %58 = arith.mulf %56, %57 : vector<8x256xf32>
    %59 = vector.extract_strided_slice %39 {offsets = [0, 2], sizes = [8, 1], strides = [1, 1]} : vector<8x25xf32> to vector<8x1xf32>
    %60 = vector.broadcast %59 : vector<8x1xf32> to vector<8x256xf32>
    %61 = arith.mulf %58, %60 : vector<8x256xf32>
    %62 = arith.addf %55, %61 : vector<8x256xf32>
    %c31_i32 = arith.constant 31 : i32
    %63 = tpu.dynamic_rotate %38 by %c31_i32 dim 1 : vector<8x256xf32>, i32 -> vector<8x256xf32>
    %64 = vector.broadcast %6 : vector<1x256xf32> to vector<8x256xf32>
    %65 = arith.mulf %63, %64 : vector<8x256xf32>
    %66 = vector.extract_strided_slice %39 {offsets = [0, 3], sizes = [8, 1], strides = [1, 1]} : vector<8x25xf32> to vector<8x1xf32>
    %67 = vector.broadcast %66 : vector<8x1xf32> to vector<8x256xf32>
    %68 = arith.mulf %65, %67 : vector<8x256xf32>
    %69 = arith.addf %62, %68 : vector<8x256xf32>
    %c30_i32 = arith.constant 30 : i32
    %70 = tpu.dynamic_rotate %38 by %c30_i32 dim 1 : vector<8x256xf32>, i32 -> vector<8x256xf32>
    %71 = vector.broadcast %7 : vector<1x256xf32> to vector<8x256xf32>
    %72 = arith.mulf %70, %71 : vector<8x256xf32>
    %73 = vector.extract_strided_slice %39 {offsets = [0, 4], sizes = [8, 1], strides = [1, 1]} : vector<8x25xf32> to vector<8x1xf32>
    %74 = vector.broadcast %73 : vector<8x1xf32> to vector<8x256xf32>
    %75 = arith.mulf %72, %74 : vector<8x256xf32>
    %76 = arith.addf %69, %75 : vector<8x256xf32>
    %c18_i32 = arith.constant 18 : i32
    %77 = tpu.dynamic_rotate %38 by %c18_i32 dim 1 : vector<8x256xf32>, i32 -> vector<8x256xf32>
    %78 = vector.broadcast %8 : vector<1x256xf32> to vector<8x256xf32>
    %79 = arith.mulf %77, %78 : vector<8x256xf32>
    %80 = vector.extract_strided_slice %39 {offsets = [0, 5], sizes = [8, 1], strides = [1, 1]} : vector<8x25xf32> to vector<8x1xf32>
    %81 = vector.broadcast %80 : vector<8x1xf32> to vector<8x256xf32>
    %82 = arith.mulf %79, %81 : vector<8x256xf32>
    %83 = arith.addf %76, %82 : vector<8x256xf32>
    %c17_i32 = arith.constant 17 : i32
    %84 = tpu.dynamic_rotate %38 by %c17_i32 dim 1 : vector<8x256xf32>, i32 -> vector<8x256xf32>
    %85 = vector.broadcast %9 : vector<1x256xf32> to vector<8x256xf32>
    %86 = arith.mulf %84, %85 : vector<8x256xf32>
    %87 = vector.extract_strided_slice %39 {offsets = [0, 6], sizes = [8, 1], strides = [1, 1]} : vector<8x25xf32> to vector<8x1xf32>
    %88 = vector.broadcast %87 : vector<8x1xf32> to vector<8x256xf32>
    %89 = arith.mulf %86, %88 : vector<8x256xf32>
    %90 = arith.addf %83, %89 : vector<8x256xf32>
    %c16_i32 = arith.constant 16 : i32
    %91 = tpu.dynamic_rotate %38 by %c16_i32 dim 1 : vector<8x256xf32>, i32 -> vector<8x256xf32>
    %92 = vector.broadcast %10 : vector<1x256xf32> to vector<8x256xf32>
    %93 = arith.mulf %91, %92 : vector<8x256xf32>
    %94 = vector.extract_strided_slice %39 {offsets = [0, 7], sizes = [8, 1], strides = [1, 1]} : vector<8x25xf32> to vector<8x1xf32>
    %95 = vector.broadcast %94 : vector<8x1xf32> to vector<8x256xf32>
    %96 = arith.mulf %93, %95 : vector<8x256xf32>
    %97 = arith.addf %90, %96 : vector<8x256xf32>
    %c15_i32 = arith.constant 15 : i32
    %98 = tpu.dynamic_rotate %38 by %c15_i32 dim 1 : vector<8x256xf32>, i32 -> vector<8x256xf32>
    %99 = vector.broadcast %11 : vector<1x256xf32> to vector<8x256xf32>
    %100 = arith.mulf %98, %99 : vector<8x256xf32>
    %101 = vector.extract_strided_slice %39 {offsets = [0, 8], sizes = [8, 1], strides = [1, 1]} : vector<8x25xf32> to vector<8x1xf32>
    %102 = vector.broadcast %101 : vector<8x1xf32> to vector<8x256xf32>
    %103 = arith.mulf %100, %102 : vector<8x256xf32>
    %104 = arith.addf %97, %103 : vector<8x256xf32>
    %c14_i32 = arith.constant 14 : i32
    %105 = tpu.dynamic_rotate %38 by %c14_i32 dim 1 : vector<8x256xf32>, i32 -> vector<8x256xf32>
    %106 = vector.broadcast %12 : vector<1x256xf32> to vector<8x256xf32>
    %107 = arith.mulf %105, %106 : vector<8x256xf32>
    %108 = vector.extract_strided_slice %39 {offsets = [0, 9], sizes = [8, 1], strides = [1, 1]} : vector<8x25xf32> to vector<8x1xf32>
    %109 = vector.broadcast %108 : vector<8x1xf32> to vector<8x256xf32>
    %110 = arith.mulf %107, %109 : vector<8x256xf32>
    %111 = arith.addf %104, %110 : vector<8x256xf32>
    %c2_i32 = arith.constant 2 : i32
    %112 = tpu.dynamic_rotate %38 by %c2_i32 dim 1 : vector<8x256xf32>, i32 -> vector<8x256xf32>
    %113 = vector.broadcast %13 : vector<1x256xf32> to vector<8x256xf32>
    %114 = arith.mulf %112, %113 : vector<8x256xf32>
    %115 = vector.extract_strided_slice %39 {offsets = [0, 10], sizes = [8, 1], strides = [1, 1]} : vector<8x25xf32> to vector<8x1xf32>
    %116 = vector.broadcast %115 : vector<8x1xf32> to vector<8x256xf32>
    %117 = arith.mulf %114, %116 : vector<8x256xf32>
    %118 = arith.addf %111, %117 : vector<8x256xf32>
    %c1_i32 = arith.constant 1 : i32
    %119 = tpu.dynamic_rotate %38 by %c1_i32 dim 1 : vector<8x256xf32>, i32 -> vector<8x256xf32>
    %120 = vector.broadcast %14 : vector<1x256xf32> to vector<8x256xf32>
    %121 = arith.mulf %119, %120 : vector<8x256xf32>
    %122 = vector.extract_strided_slice %39 {offsets = [0, 11], sizes = [8, 1], strides = [1, 1]} : vector<8x25xf32> to vector<8x1xf32>
    %123 = vector.broadcast %122 : vector<8x1xf32> to vector<8x256xf32>
    %124 = arith.mulf %121, %123 : vector<8x256xf32>
    %125 = arith.addf %118, %124 : vector<8x256xf32>
    %126 = vector.broadcast %15 : vector<1x256xf32> to vector<8x256xf32>
    %127 = arith.mulf %38, %126 : vector<8x256xf32>
    %128 = vector.extract_strided_slice %39 {offsets = [0, 12], sizes = [8, 1], strides = [1, 1]} : vector<8x25xf32> to vector<8x1xf32>
    %129 = vector.broadcast %128 : vector<8x1xf32> to vector<8x256xf32>
    %130 = arith.mulf %127, %129 : vector<8x256xf32>
    %131 = arith.addf %125, %130 : vector<8x256xf32>
    %c255_i32 = arith.constant 255 : i32
    %132 = tpu.dynamic_rotate %38 by %c255_i32 dim 1 : vector<8x256xf32>, i32 -> vector<8x256xf32>
    %133 = vector.broadcast %16 : vector<1x256xf32> to vector<8x256xf32>
    %134 = arith.mulf %132, %133 : vector<8x256xf32>
    %135 = vector.extract_strided_slice %39 {offsets = [0, 13], sizes = [8, 1], strides = [1, 1]} : vector<8x25xf32> to vector<8x1xf32>
    %136 = vector.broadcast %135 : vector<8x1xf32> to vector<8x256xf32>
    %137 = arith.mulf %134, %136 : vector<8x256xf32>
    %138 = arith.addf %131, %137 : vector<8x256xf32>
    %c254_i32 = arith.constant 254 : i32
    %139 = tpu.dynamic_rotate %38 by %c254_i32 dim 1 : vector<8x256xf32>, i32 -> vector<8x256xf32>
    %140 = vector.broadcast %17 : vector<1x256xf32> to vector<8x256xf32>
    %141 = arith.mulf %139, %140 : vector<8x256xf32>
    %142 = vector.extract_strided_slice %39 {offsets = [0, 14], sizes = [8, 1], strides = [1, 1]} : vector<8x25xf32> to vector<8x1xf32>
    %143 = vector.broadcast %142 : vector<8x1xf32> to vector<8x256xf32>
    %144 = arith.mulf %141, %143 : vector<8x256xf32>
    %145 = arith.addf %138, %144 : vector<8x256xf32>
    %c242_i32 = arith.constant 242 : i32
    %146 = tpu.dynamic_rotate %38 by %c242_i32 dim 1 : vector<8x256xf32>, i32 -> vector<8x256xf32>
    %147 = vector.broadcast %18 : vector<1x256xf32> to vector<8x256xf32>
    %148 = arith.mulf %146, %147 : vector<8x256xf32>
    %149 = vector.extract_strided_slice %39 {offsets = [0, 15], sizes = [8, 1], strides = [1, 1]} : vector<8x25xf32> to vector<8x1xf32>
    %150 = vector.broadcast %149 : vector<8x1xf32> to vector<8x256xf32>
    %151 = arith.mulf %148, %150 : vector<8x256xf32>
    %152 = arith.addf %145, %151 : vector<8x256xf32>
    %c241_i32 = arith.constant 241 : i32
    %153 = tpu.dynamic_rotate %38 by %c241_i32 dim 1 : vector<8x256xf32>, i32 -> vector<8x256xf32>
    %154 = vector.broadcast %19 : vector<1x256xf32> to vector<8x256xf32>
    %155 = arith.mulf %153, %154 : vector<8x256xf32>
    %156 = vector.extract_strided_slice %39 {offsets = [0, 16], sizes = [8, 1], strides = [1, 1]} : vector<8x25xf32> to vector<8x1xf32>
    %157 = vector.broadcast %156 : vector<8x1xf32> to vector<8x256xf32>
    %158 = arith.mulf %155, %157 : vector<8x256xf32>
    %159 = arith.addf %152, %158 : vector<8x256xf32>
    %c240_i32 = arith.constant 240 : i32
    %160 = tpu.dynamic_rotate %38 by %c240_i32 dim 1 : vector<8x256xf32>, i32 -> vector<8x256xf32>
    %161 = vector.broadcast %20 : vector<1x256xf32> to vector<8x256xf32>
    %162 = arith.mulf %160, %161 : vector<8x256xf32>
    %163 = vector.extract_strided_slice %39 {offsets = [0, 17], sizes = [8, 1], strides = [1, 1]} : vector<8x25xf32> to vector<8x1xf32>
    %164 = vector.broadcast %163 : vector<8x1xf32> to vector<8x256xf32>
    %165 = arith.mulf %162, %164 : vector<8x256xf32>
    %166 = arith.addf %159, %165 : vector<8x256xf32>
    %c239_i32 = arith.constant 239 : i32
    %167 = tpu.dynamic_rotate %38 by %c239_i32 dim 1 : vector<8x256xf32>, i32 -> vector<8x256xf32>
    %168 = vector.broadcast %21 : vector<1x256xf32> to vector<8x256xf32>
    %169 = arith.mulf %167, %168 : vector<8x256xf32>
    %170 = vector.extract_strided_slice %39 {offsets = [0, 18], sizes = [8, 1], strides = [1, 1]} : vector<8x25xf32> to vector<8x1xf32>
    %171 = vector.broadcast %170 : vector<8x1xf32> to vector<8x256xf32>
    %172 = arith.mulf %169, %171 : vector<8x256xf32>
    %173 = arith.addf %166, %172 : vector<8x256xf32>
    %c238_i32 = arith.constant 238 : i32
    %174 = tpu.dynamic_rotate %38 by %c238_i32 dim 1 : vector<8x256xf32>, i32 -> vector<8x256xf32>
    %175 = vector.broadcast %22 : vector<1x256xf32> to vector<8x256xf32>
    %176 = arith.mulf %174, %175 : vector<8x256xf32>
    %177 = vector.extract_strided_slice %39 {offsets = [0, 19], sizes = [8, 1], strides = [1, 1]} : vector<8x25xf32> to vector<8x1xf32>
    %178 = vector.broadcast %177 : vector<8x1xf32> to vector<8x256xf32>
    %179 = arith.mulf %176, %178 : vector<8x256xf32>
    %180 = arith.addf %173, %179 : vector<8x256xf32>
    %c226_i32 = arith.constant 226 : i32
    %181 = tpu.dynamic_rotate %38 by %c226_i32 dim 1 : vector<8x256xf32>, i32 -> vector<8x256xf32>
    %182 = vector.broadcast %23 : vector<1x256xf32> to vector<8x256xf32>
    %183 = arith.mulf %181, %182 : vector<8x256xf32>
    %184 = vector.extract_strided_slice %39 {offsets = [0, 20], sizes = [8, 1], strides = [1, 1]} : vector<8x25xf32> to vector<8x1xf32>
    %185 = vector.broadcast %184 : vector<8x1xf32> to vector<8x256xf32>
    %186 = arith.mulf %183, %185 : vector<8x256xf32>
    %187 = arith.addf %180, %186 : vector<8x256xf32>
    %c225_i32 = arith.constant 225 : i32
    %188 = tpu.dynamic_rotate %38 by %c225_i32 dim 1 : vector<8x256xf32>, i32 -> vector<8x256xf32>
    %189 = vector.broadcast %24 : vector<1x256xf32> to vector<8x256xf32>
    %190 = arith.mulf %188, %189 : vector<8x256xf32>
    %191 = vector.extract_strided_slice %39 {offsets = [0, 21], sizes = [8, 1], strides = [1, 1]} : vector<8x25xf32> to vector<8x1xf32>
    %192 = vector.broadcast %191 : vector<8x1xf32> to vector<8x256xf32>
    %193 = arith.mulf %190, %192 : vector<8x256xf32>
    %194 = arith.addf %187, %193 : vector<8x256xf32>
    %c224_i32 = arith.constant 224 : i32
    %195 = tpu.dynamic_rotate %38 by %c224_i32 dim 1 : vector<8x256xf32>, i32 -> vector<8x256xf32>
    %196 = vector.broadcast %25 : vector<1x256xf32> to vector<8x256xf32>
    %197 = arith.mulf %195, %196 : vector<8x256xf32>
    %198 = vector.extract_strided_slice %39 {offsets = [0, 22], sizes = [8, 1], strides = [1, 1]} : vector<8x25xf32> to vector<8x1xf32>
    %199 = vector.broadcast %198 : vector<8x1xf32> to vector<8x256xf32>
    %200 = arith.mulf %197, %199 : vector<8x256xf32>
    %201 = arith.addf %194, %200 : vector<8x256xf32>
    %c223_i32 = arith.constant 223 : i32
    %202 = tpu.dynamic_rotate %38 by %c223_i32 dim 1 : vector<8x256xf32>, i32 -> vector<8x256xf32>
    %203 = vector.broadcast %26 : vector<1x256xf32> to vector<8x256xf32>
    %204 = arith.mulf %202, %203 : vector<8x256xf32>
    %205 = vector.extract_strided_slice %39 {offsets = [0, 23], sizes = [8, 1], strides = [1, 1]} : vector<8x25xf32> to vector<8x1xf32>
    %206 = vector.broadcast %205 : vector<8x1xf32> to vector<8x256xf32>
    %207 = arith.mulf %204, %206 : vector<8x256xf32>
    %208 = arith.addf %201, %207 : vector<8x256xf32>
    %c222_i32 = arith.constant 222 : i32
    %209 = tpu.dynamic_rotate %38 by %c222_i32 dim 1 : vector<8x256xf32>, i32 -> vector<8x256xf32>
    %210 = vector.broadcast %27 : vector<1x256xf32> to vector<8x256xf32>
    %211 = arith.mulf %209, %210 : vector<8x256xf32>
    %212 = vector.extract_strided_slice %39 {offsets = [0, 24], sizes = [8, 1], strides = [1, 1]} : vector<8x25xf32> to vector<8x1xf32>
    %213 = vector.broadcast %212 : vector<8x1xf32> to vector<8x256xf32>
    %214 = arith.mulf %211, %213 : vector<8x256xf32>
    %215 = arith.addf %208, %214 : vector<8x256xf32>
    %216 = vector.broadcast %40 : vector<8x1xf32> to vector<8x256xf32>
    %217 = arith.addf %215, %216 : vector<8x256xf32>
    %218 = arith.negf %217 : vector<8x256xf32>
    %219 = math.exp %218 : vector<8x256xf32>
    %cst_14 = arith.constant 1.000000e+00 : f32
    %220 = vector.broadcast %cst_14 : f32 to vector<8x256xf32>
    %221 = arith.addf %220, %219 : vector<8x256xf32>
    %222 = arith.divf %220, %221 : vector<8x256xf32>
    %223 = arith.mulf %217, %222 : vector<8x256xf32>
    %224 = tpu.concatenate %38, %223 in 0 : vector<8x256xf32>, vector<8x256xf32> -> vector<16x256xf32>
    %c0_15 = arith.constant 0 : index
    %c0_16 = arith.constant 0 : index
    %225 = vector.load %arg6[%c0_15, %c0_16] : memref<16x16xf32, #tpu.memory_space<vmem>>, vector<16x16xf32>
    %cst_17 = arith.constant dense<0.000000e+00> : vector<16x256xf32>
    %226 = tpu.matmul %225, %224, %cst_17 {dimension_numbers = #tpu.dot_dimension_numbers<[1], [0], [0], [1], [0, 0, 1, 1], [], []>} : vector<16x16xf32>, vector<16x256xf32>, vector<16x256xf32> -> vector<16x256xf32>
    %c0_18 = arith.constant 0 : index
    %c0_19 = arith.constant 0 : index
    %227 = vector.load %arg7[%c0_18, %c0_19] : memref<16x1xf32, #tpu.memory_space<vmem>>, vector<16x1xf32>
    %228 = vector.broadcast %227 : vector<16x1xf32> to vector<16x256xf32>
    %229 = arith.addf %226, %228 : vector<16x256xf32>
    %c0_20 = arith.constant 0 : index
    %c0_21 = arith.constant 0 : index
    %230 = vector.load %arg8[%c0_20, %c0_21] : memref<16x25xf32, #tpu.memory_space<vmem>>, vector<16x25xf32>
    %c0_22 = arith.constant 0 : index
    %c0_23 = arith.constant 0 : index
    %231 = vector.load %arg9[%c0_22, %c0_23] : memref<16x1xf32, #tpu.memory_space<vmem>>, vector<16x1xf32>
    %cst_24 = arith.constant 0.000000e+00 : f32
    %232 = vector.broadcast %cst_24 : f32 to vector<16x256xf32>
    %c34_i32_25 = arith.constant 34 : i32
    %233 = tpu.dynamic_rotate %229 by %c34_i32_25 dim 1 : vector<16x256xf32>, i32 -> vector<16x256xf32>
    %234 = vector.broadcast %3 : vector<1x256xf32> to vector<16x256xf32>
    %235 = arith.mulf %233, %234 : vector<16x256xf32>
    %236 = vector.extract_strided_slice %230 {offsets = [0, 0], sizes = [16, 1], strides = [1, 1]} : vector<16x25xf32> to vector<16x1xf32>
    %237 = vector.broadcast %236 : vector<16x1xf32> to vector<16x256xf32>
    %238 = arith.mulf %235, %237 : vector<16x256xf32>
    %239 = arith.addf %232, %238 : vector<16x256xf32>
    %c33_i32_26 = arith.constant 33 : i32
    %240 = tpu.dynamic_rotate %229 by %c33_i32_26 dim 1 : vector<16x256xf32>, i32 -> vector<16x256xf32>
    %241 = vector.broadcast %4 : vector<1x256xf32> to vector<16x256xf32>
    %242 = arith.mulf %240, %241 : vector<16x256xf32>
    %243 = vector.extract_strided_slice %230 {offsets = [0, 1], sizes = [16, 1], strides = [1, 1]} : vector<16x25xf32> to vector<16x1xf32>
    %244 = vector.broadcast %243 : vector<16x1xf32> to vector<16x256xf32>
    %245 = arith.mulf %242, %244 : vector<16x256xf32>
    %246 = arith.addf %239, %245 : vector<16x256xf32>
    %c32_i32_27 = arith.constant 32 : i32
    %247 = tpu.dynamic_rotate %229 by %c32_i32_27 dim 1 : vector<16x256xf32>, i32 -> vector<16x256xf32>
    %248 = vector.broadcast %5 : vector<1x256xf32> to vector<16x256xf32>
    %249 = arith.mulf %247, %248 : vector<16x256xf32>
    %250 = vector.extract_strided_slice %230 {offsets = [0, 2], sizes = [16, 1], strides = [1, 1]} : vector<16x25xf32> to vector<16x1xf32>
    %251 = vector.broadcast %250 : vector<16x1xf32> to vector<16x256xf32>
    %252 = arith.mulf %249, %251 : vector<16x256xf32>
    %253 = arith.addf %246, %252 : vector<16x256xf32>
    %c31_i32_28 = arith.constant 31 : i32
    %254 = tpu.dynamic_rotate %229 by %c31_i32_28 dim 1 : vector<16x256xf32>, i32 -> vector<16x256xf32>
    %255 = vector.broadcast %6 : vector<1x256xf32> to vector<16x256xf32>
    %256 = arith.mulf %254, %255 : vector<16x256xf32>
    %257 = vector.extract_strided_slice %230 {offsets = [0, 3], sizes = [16, 1], strides = [1, 1]} : vector<16x25xf32> to vector<16x1xf32>
    %258 = vector.broadcast %257 : vector<16x1xf32> to vector<16x256xf32>
    %259 = arith.mulf %256, %258 : vector<16x256xf32>
    %260 = arith.addf %253, %259 : vector<16x256xf32>
    %c30_i32_29 = arith.constant 30 : i32
    %261 = tpu.dynamic_rotate %229 by %c30_i32_29 dim 1 : vector<16x256xf32>, i32 -> vector<16x256xf32>
    %262 = vector.broadcast %7 : vector<1x256xf32> to vector<16x256xf32>
    %263 = arith.mulf %261, %262 : vector<16x256xf32>
    %264 = vector.extract_strided_slice %230 {offsets = [0, 4], sizes = [16, 1], strides = [1, 1]} : vector<16x25xf32> to vector<16x1xf32>
    %265 = vector.broadcast %264 : vector<16x1xf32> to vector<16x256xf32>
    %266 = arith.mulf %263, %265 : vector<16x256xf32>
    %267 = arith.addf %260, %266 : vector<16x256xf32>
    %c18_i32_30 = arith.constant 18 : i32
    %268 = tpu.dynamic_rotate %229 by %c18_i32_30 dim 1 : vector<16x256xf32>, i32 -> vector<16x256xf32>
    %269 = vector.broadcast %8 : vector<1x256xf32> to vector<16x256xf32>
    %270 = arith.mulf %268, %269 : vector<16x256xf32>
    %271 = vector.extract_strided_slice %230 {offsets = [0, 5], sizes = [16, 1], strides = [1, 1]} : vector<16x25xf32> to vector<16x1xf32>
    %272 = vector.broadcast %271 : vector<16x1xf32> to vector<16x256xf32>
    %273 = arith.mulf %270, %272 : vector<16x256xf32>
    %274 = arith.addf %267, %273 : vector<16x256xf32>
    %c17_i32_31 = arith.constant 17 : i32
    %275 = tpu.dynamic_rotate %229 by %c17_i32_31 dim 1 : vector<16x256xf32>, i32 -> vector<16x256xf32>
    %276 = vector.broadcast %9 : vector<1x256xf32> to vector<16x256xf32>
    %277 = arith.mulf %275, %276 : vector<16x256xf32>
    %278 = vector.extract_strided_slice %230 {offsets = [0, 6], sizes = [16, 1], strides = [1, 1]} : vector<16x25xf32> to vector<16x1xf32>
    %279 = vector.broadcast %278 : vector<16x1xf32> to vector<16x256xf32>
    %280 = arith.mulf %277, %279 : vector<16x256xf32>
    %281 = arith.addf %274, %280 : vector<16x256xf32>
    %c16_i32_32 = arith.constant 16 : i32
    %282 = tpu.dynamic_rotate %229 by %c16_i32_32 dim 1 : vector<16x256xf32>, i32 -> vector<16x256xf32>
    %283 = vector.broadcast %10 : vector<1x256xf32> to vector<16x256xf32>
    %284 = arith.mulf %282, %283 : vector<16x256xf32>
    %285 = vector.extract_strided_slice %230 {offsets = [0, 7], sizes = [16, 1], strides = [1, 1]} : vector<16x25xf32> to vector<16x1xf32>
    %286 = vector.broadcast %285 : vector<16x1xf32> to vector<16x256xf32>
    %287 = arith.mulf %284, %286 : vector<16x256xf32>
    %288 = arith.addf %281, %287 : vector<16x256xf32>
    %c15_i32_33 = arith.constant 15 : i32
    %289 = tpu.dynamic_rotate %229 by %c15_i32_33 dim 1 : vector<16x256xf32>, i32 -> vector<16x256xf32>
    %290 = vector.broadcast %11 : vector<1x256xf32> to vector<16x256xf32>
    %291 = arith.mulf %289, %290 : vector<16x256xf32>
    %292 = vector.extract_strided_slice %230 {offsets = [0, 8], sizes = [16, 1], strides = [1, 1]} : vector<16x25xf32> to vector<16x1xf32>
    %293 = vector.broadcast %292 : vector<16x1xf32> to vector<16x256xf32>
    %294 = arith.mulf %291, %293 : vector<16x256xf32>
    %295 = arith.addf %288, %294 : vector<16x256xf32>
    %c14_i32_34 = arith.constant 14 : i32
    %296 = tpu.dynamic_rotate %229 by %c14_i32_34 dim 1 : vector<16x256xf32>, i32 -> vector<16x256xf32>
    %297 = vector.broadcast %12 : vector<1x256xf32> to vector<16x256xf32>
    %298 = arith.mulf %296, %297 : vector<16x256xf32>
    %299 = vector.extract_strided_slice %230 {offsets = [0, 9], sizes = [16, 1], strides = [1, 1]} : vector<16x25xf32> to vector<16x1xf32>
    %300 = vector.broadcast %299 : vector<16x1xf32> to vector<16x256xf32>
    %301 = arith.mulf %298, %300 : vector<16x256xf32>
    %302 = arith.addf %295, %301 : vector<16x256xf32>
    %c2_i32_35 = arith.constant 2 : i32
    %303 = tpu.dynamic_rotate %229 by %c2_i32_35 dim 1 : vector<16x256xf32>, i32 -> vector<16x256xf32>
    %304 = vector.broadcast %13 : vector<1x256xf32> to vector<16x256xf32>
    %305 = arith.mulf %303, %304 : vector<16x256xf32>
    %306 = vector.extract_strided_slice %230 {offsets = [0, 10], sizes = [16, 1], strides = [1, 1]} : vector<16x25xf32> to vector<16x1xf32>
    %307 = vector.broadcast %306 : vector<16x1xf32> to vector<16x256xf32>
    %308 = arith.mulf %305, %307 : vector<16x256xf32>
    %309 = arith.addf %302, %308 : vector<16x256xf32>
    %c1_i32_36 = arith.constant 1 : i32
    %310 = tpu.dynamic_rotate %229 by %c1_i32_36 dim 1 : vector<16x256xf32>, i32 -> vector<16x256xf32>
    %311 = vector.broadcast %14 : vector<1x256xf32> to vector<16x256xf32>
    %312 = arith.mulf %310, %311 : vector<16x256xf32>
    %313 = vector.extract_strided_slice %230 {offsets = [0, 11], sizes = [16, 1], strides = [1, 1]} : vector<16x25xf32> to vector<16x1xf32>
    %314 = vector.broadcast %313 : vector<16x1xf32> to vector<16x256xf32>
    %315 = arith.mulf %312, %314 : vector<16x256xf32>
    %316 = arith.addf %309, %315 : vector<16x256xf32>
    %317 = vector.broadcast %15 : vector<1x256xf32> to vector<16x256xf32>
    %318 = arith.mulf %229, %317 : vector<16x256xf32>
    %319 = vector.extract_strided_slice %230 {offsets = [0, 12], sizes = [16, 1], strides = [1, 1]} : vector<16x25xf32> to vector<16x1xf32>
    %320 = vector.broadcast %319 : vector<16x1xf32> to vector<16x256xf32>
    %321 = arith.mulf %318, %320 : vector<16x256xf32>
    %322 = arith.addf %316, %321 : vector<16x256xf32>
    %c255_i32_37 = arith.constant 255 : i32
    %323 = tpu.dynamic_rotate %229 by %c255_i32_37 dim 1 : vector<16x256xf32>, i32 -> vector<16x256xf32>
    %324 = vector.broadcast %16 : vector<1x256xf32> to vector<16x256xf32>
    %325 = arith.mulf %323, %324 : vector<16x256xf32>
    %326 = vector.extract_strided_slice %230 {offsets = [0, 13], sizes = [16, 1], strides = [1, 1]} : vector<16x25xf32> to vector<16x1xf32>
    %327 = vector.broadcast %326 : vector<16x1xf32> to vector<16x256xf32>
    %328 = arith.mulf %325, %327 : vector<16x256xf32>
    %329 = arith.addf %322, %328 : vector<16x256xf32>
    %c254_i32_38 = arith.constant 254 : i32
    %330 = tpu.dynamic_rotate %229 by %c254_i32_38 dim 1 : vector<16x256xf32>, i32 -> vector<16x256xf32>
    %331 = vector.broadcast %17 : vector<1x256xf32> to vector<16x256xf32>
    %332 = arith.mulf %330, %331 : vector<16x256xf32>
    %333 = vector.extract_strided_slice %230 {offsets = [0, 14], sizes = [16, 1], strides = [1, 1]} : vector<16x25xf32> to vector<16x1xf32>
    %334 = vector.broadcast %333 : vector<16x1xf32> to vector<16x256xf32>
    %335 = arith.mulf %332, %334 : vector<16x256xf32>
    %336 = arith.addf %329, %335 : vector<16x256xf32>
    %c242_i32_39 = arith.constant 242 : i32
    %337 = tpu.dynamic_rotate %229 by %c242_i32_39 dim 1 : vector<16x256xf32>, i32 -> vector<16x256xf32>
    %338 = vector.broadcast %18 : vector<1x256xf32> to vector<16x256xf32>
    %339 = arith.mulf %337, %338 : vector<16x256xf32>
    %340 = vector.extract_strided_slice %230 {offsets = [0, 15], sizes = [16, 1], strides = [1, 1]} : vector<16x25xf32> to vector<16x1xf32>
    %341 = vector.broadcast %340 : vector<16x1xf32> to vector<16x256xf32>
    %342 = arith.mulf %339, %341 : vector<16x256xf32>
    %343 = arith.addf %336, %342 : vector<16x256xf32>
    %c241_i32_40 = arith.constant 241 : i32
    %344 = tpu.dynamic_rotate %229 by %c241_i32_40 dim 1 : vector<16x256xf32>, i32 -> vector<16x256xf32>
    %345 = vector.broadcast %19 : vector<1x256xf32> to vector<16x256xf32>
    %346 = arith.mulf %344, %345 : vector<16x256xf32>
    %347 = vector.extract_strided_slice %230 {offsets = [0, 16], sizes = [16, 1], strides = [1, 1]} : vector<16x25xf32> to vector<16x1xf32>
    %348 = vector.broadcast %347 : vector<16x1xf32> to vector<16x256xf32>
    %349 = arith.mulf %346, %348 : vector<16x256xf32>
    %350 = arith.addf %343, %349 : vector<16x256xf32>
    %c240_i32_41 = arith.constant 240 : i32
    %351 = tpu.dynamic_rotate %229 by %c240_i32_41 dim 1 : vector<16x256xf32>, i32 -> vector<16x256xf32>
    %352 = vector.broadcast %20 : vector<1x256xf32> to vector<16x256xf32>
    %353 = arith.mulf %351, %352 : vector<16x256xf32>
    %354 = vector.extract_strided_slice %230 {offsets = [0, 17], sizes = [16, 1], strides = [1, 1]} : vector<16x25xf32> to vector<16x1xf32>
    %355 = vector.broadcast %354 : vector<16x1xf32> to vector<16x256xf32>
    %356 = arith.mulf %353, %355 : vector<16x256xf32>
    %357 = arith.addf %350, %356 : vector<16x256xf32>
    %c239_i32_42 = arith.constant 239 : i32
    %358 = tpu.dynamic_rotate %229 by %c239_i32_42 dim 1 : vector<16x256xf32>, i32 -> vector<16x256xf32>
    %359 = vector.broadcast %21 : vector<1x256xf32> to vector<16x256xf32>
    %360 = arith.mulf %358, %359 : vector<16x256xf32>
    %361 = vector.extract_strided_slice %230 {offsets = [0, 18], sizes = [16, 1], strides = [1, 1]} : vector<16x25xf32> to vector<16x1xf32>
    %362 = vector.broadcast %361 : vector<16x1xf32> to vector<16x256xf32>
    %363 = arith.mulf %360, %362 : vector<16x256xf32>
    %364 = arith.addf %357, %363 : vector<16x256xf32>
    %c238_i32_43 = arith.constant 238 : i32
    %365 = tpu.dynamic_rotate %229 by %c238_i32_43 dim 1 : vector<16x256xf32>, i32 -> vector<16x256xf32>
    %366 = vector.broadcast %22 : vector<1x256xf32> to vector<16x256xf32>
    %367 = arith.mulf %365, %366 : vector<16x256xf32>
    %368 = vector.extract_strided_slice %230 {offsets = [0, 19], sizes = [16, 1], strides = [1, 1]} : vector<16x25xf32> to vector<16x1xf32>
    %369 = vector.broadcast %368 : vector<16x1xf32> to vector<16x256xf32>
    %370 = arith.mulf %367, %369 : vector<16x256xf32>
    %371 = arith.addf %364, %370 : vector<16x256xf32>
    %c226_i32_44 = arith.constant 226 : i32
    %372 = tpu.dynamic_rotate %229 by %c226_i32_44 dim 1 : vector<16x256xf32>, i32 -> vector<16x256xf32>
    %373 = vector.broadcast %23 : vector<1x256xf32> to vector<16x256xf32>
    %374 = arith.mulf %372, %373 : vector<16x256xf32>
    %375 = vector.extract_strided_slice %230 {offsets = [0, 20], sizes = [16, 1], strides = [1, 1]} : vector<16x25xf32> to vector<16x1xf32>
    %376 = vector.broadcast %375 : vector<16x1xf32> to vector<16x256xf32>
    %377 = arith.mulf %374, %376 : vector<16x256xf32>
    %378 = arith.addf %371, %377 : vector<16x256xf32>
    %c225_i32_45 = arith.constant 225 : i32
    %379 = tpu.dynamic_rotate %229 by %c225_i32_45 dim 1 : vector<16x256xf32>, i32 -> vector<16x256xf32>
    %380 = vector.broadcast %24 : vector<1x256xf32> to vector<16x256xf32>
    %381 = arith.mulf %379, %380 : vector<16x256xf32>
    %382 = vector.extract_strided_slice %230 {offsets = [0, 21], sizes = [16, 1], strides = [1, 1]} : vector<16x25xf32> to vector<16x1xf32>
    %383 = vector.broadcast %382 : vector<16x1xf32> to vector<16x256xf32>
    %384 = arith.mulf %381, %383 : vector<16x256xf32>
    %385 = arith.addf %378, %384 : vector<16x256xf32>
    %c224_i32_46 = arith.constant 224 : i32
    %386 = tpu.dynamic_rotate %229 by %c224_i32_46 dim 1 : vector<16x256xf32>, i32 -> vector<16x256xf32>
    %387 = vector.broadcast %25 : vector<1x256xf32> to vector<16x256xf32>
    %388 = arith.mulf %386, %387 : vector<16x256xf32>
    %389 = vector.extract_strided_slice %230 {offsets = [0, 22], sizes = [16, 1], strides = [1, 1]} : vector<16x25xf32> to vector<16x1xf32>
    %390 = vector.broadcast %389 : vector<16x1xf32> to vector<16x256xf32>
    %391 = arith.mulf %388, %390 : vector<16x256xf32>
    %392 = arith.addf %385, %391 : vector<16x256xf32>
    %c223_i32_47 = arith.constant 223 : i32
    %393 = tpu.dynamic_rotate %229 by %c223_i32_47 dim 1 : vector<16x256xf32>, i32 -> vector<16x256xf32>
    %394 = vector.broadcast %26 : vector<1x256xf32> to vector<16x256xf32>
    %395 = arith.mulf %393, %394 : vector<16x256xf32>
    %396 = vector.extract_strided_slice %230 {offsets = [0, 23], sizes = [16, 1], strides = [1, 1]} : vector<16x25xf32> to vector<16x1xf32>
    %397 = vector.broadcast %396 : vector<16x1xf32> to vector<16x256xf32>
    %398 = arith.mulf %395, %397 : vector<16x256xf32>
    %399 = arith.addf %392, %398 : vector<16x256xf32>
    %c222_i32_48 = arith.constant 222 : i32
    %400 = tpu.dynamic_rotate %229 by %c222_i32_48 dim 1 : vector<16x256xf32>, i32 -> vector<16x256xf32>
    %401 = vector.broadcast %27 : vector<1x256xf32> to vector<16x256xf32>
    %402 = arith.mulf %400, %401 : vector<16x256xf32>
    %403 = vector.extract_strided_slice %230 {offsets = [0, 24], sizes = [16, 1], strides = [1, 1]} : vector<16x25xf32> to vector<16x1xf32>
    %404 = vector.broadcast %403 : vector<16x1xf32> to vector<16x256xf32>
    %405 = arith.mulf %402, %404 : vector<16x256xf32>
    %406 = arith.addf %399, %405 : vector<16x256xf32>
    %407 = vector.broadcast %231 : vector<16x1xf32> to vector<16x256xf32>
    %408 = arith.addf %406, %407 : vector<16x256xf32>
    %409 = vector.extract_strided_slice %1 {offsets = [0, 0], sizes = [16, 256], strides = [1, 1]} : vector<32x256xf32> to vector<16x256xf32>
    %410 = arith.addf %229, %409 : vector<16x256xf32>
    %c0_49 = arith.constant 0 : index
    %c0_50 = arith.constant 0 : index
    %c0_51 = arith.constant 0 : index
    %411 = vector.load %arg11[%c0_49, %c0_50, %c0_51] : memref<1x32x256xf32, #tpu.memory_space<vmem>>, vector<1x16x256xf32>
    %412 = vector.shape_cast %411 : vector<1x16x256xf32> to vector<16x256xf32>
    %413 = vector.shape_cast %410 : vector<16x256xf32> to vector<1x16x256xf32>
    tpu.vector_store %arg11[%c0_49, %c0_50, %c0_51], %413 {strides = array<i32>} : memref<1x32x256xf32, #tpu.memory_space<vmem>>, vector<1x16x256xf32>,
    %414 = vector.extract_strided_slice %1 {offsets = [16, 0], sizes = [16, 256], strides = [1, 1]} : vector<32x256xf32> to vector<16x256xf32>
    %415 = arith.addf %408, %414 : vector<16x256xf32>
    %c0_52 = arith.constant 0 : index
    %c16 = arith.constant 16 : index
    %c0_53 = arith.constant 0 : index
    %416 = vector.load %arg11[%c0_52, %c16, %c0_53] : memref<1x32x256xf32, #tpu.memory_space<vmem>>, vector<1x16x256xf32>
    %417 = vector.shape_cast %416 : vector<1x16x256xf32> to vector<16x256xf32>
    %418 = vector.shape_cast %415 : vector<16x256xf32> to vector<1x16x256xf32>
    tpu.vector_store %arg11[%c0_52, %c16, %c0_53], %418 {strides = array<i32>} : memref<1x32x256xf32, #tpu.memory_space<vmem>>, vector<1x16x256xf32>,
    return
  }
  func.func @transform_0(%arg0: i32) -> (i32, i32, i32) {
    %c0_i32 = arith.constant 0 : i32
    %c0_i32_0 = arith.constant 0 : i32
    %c0_i32_1 = arith.constant 0 : i32
    return %arg0, %c0_i32, %c0_i32_0 : i32, i32, i32
  }
  func.func @transform_1(%arg0: i32) -> (i32, i32) {
    %c0_i32 = arith.constant 0 : i32
    %c0_i32_0 = arith.constant 0 : i32
    %c0_i32_1 = arith.constant 0 : i32
    return %c0_i32, %c0_i32_0 : i32, i32
  }
  func.func @transform_2(%arg0: i32) -> (i32, i32) {
    %c0_i32 = arith.constant 0 : i32
    %c0_i32_0 = arith.constant 0 : i32
    %c0_i32_1 = arith.constant 0 : i32
    return %c0_i32, %c0_i32_0 : i32, i32
  }
  func.func @transform_3(%arg0: i32) -> (i32, i32) {
    %c0_i32 = arith.constant 0 : i32
    %c0_i32_0 = arith.constant 0 : i32
    %c0_i32_1 = arith.constant 0 : i32
    return %c0_i32, %c0_i32_0 : i32, i32
  }
  func.func @transform_4(%arg0: i32) -> (i32, i32) {
    %c0_i32 = arith.constant 0 : i32
    %c0_i32_0 = arith.constant 0 : i32
    %c0_i32_1 = arith.constant 0 : i32
    return %c0_i32, %c0_i32_0 : i32, i32
  }
  func.func @transform_5(%arg0: i32) -> (i32, i32) {
    %c0_i32 = arith.constant 0 : i32
    %c0_i32_0 = arith.constant 0 : i32
    %c0_i32_1 = arith.constant 0 : i32
    return %c0_i32, %c0_i32_0 : i32, i32
  }
  func.func @transform_6(%arg0: i32) -> (i32, i32) {
    %c0_i32 = arith.constant 0 : i32
    %c0_i32_0 = arith.constant 0 : i32
    %c0_i32_1 = arith.constant 0 : i32
    return %c0_i32, %c0_i32_0 : i32, i32
  }
  func.func @transform_7(%arg0: i32) -> (i32, i32) {
    %c0_i32 = arith.constant 0 : i32
    %c0_i32_0 = arith.constant 0 : i32
    %c0_i32_1 = arith.constant 0 : i32
    return %c0_i32, %c0_i32_0 : i32, i32
  }
  func.func @transform_8(%arg0: i32) -> (i32, i32) {
    %c0_i32 = arith.constant 0 : i32
    %c0_i32_0 = arith.constant 0 : i32
    %c0_i32_1 = arith.constant 0 : i32
    return %c0_i32, %c0_i32_0 : i32, i32
  }
  func.func @transform_9(%arg0: i32) -> (i32, i32) {
    %c0_i32 = arith.constant 0 : i32
    %c0_i32_0 = arith.constant 0 : i32
    %c0_i32_1 = arith.constant 0 : i32
    return %c0_i32, %c0_i32_0 : i32, i32
  }
  func.func @transform_10(%arg0: i32) -> (i32, i32, i32) {
    %c0_i32 = arith.constant 0 : i32
    %c0_i32_0 = arith.constant 0 : i32
    %c0_i32_1 = arith.constant 0 : i32
    return %arg0, %c0_i32, %c0_i32_0 : i32, i32, i32
  }
}

</mosaic_0001>

<bundles_post_ra>
// kernel: ghost_bottleneck_forward.1
= control target key start
LH: loop header
LB: loop body
LE: loop exit
PB: predicated region body
PF: predicated region fallthrough
CT: control target
= control target key end

     0   :  { %s2401_s13 = smov 0   ;;  %s4286_s0 = inlined_call_operand.vmem [shape: f32[2,32,256], index: 0, kind: input, shape index: {}]   ;;  %s4287_s1 = inlined_call_operand.vmem [shape: f32[8,32], index: 1, kind: input, shape index: {}]   ;;  %s4288_s2 = inlined_call_operand.vmem [shape: f32[8,1], index: 2, kind: input, shape index: {}]   ;;  %s4289_s3 = inlined_call_operand.vmem [shape: f32[8,25], index: 3, kind: input, shape index: {}]   ;;  %s4290_s4 = inlined_call_operand.vmem [shape: f32[8,1], index: 4, kind: input, shape index: {}]   ;;  %s4291_s5 = inlined_call_operand.vmem [shape: f32[16,16], index: 5, kind: input, shape index: {}]   ;;  %s4292_s6 = inlined_call_operand.vmem [shape: f32[16,1], index: 6, kind: input, shape index: {}]   ;;  %s4293_s7 = inlined_call_operand.vmem [shape: f32[16,25], index: 7, kind: input, shape index: {}]   ;;  %s4294_s8 = inlined_call_operand.vmem [shape: f32[16,1], index: 8, kind: input, shape index: {}]   ;;  %s4295_s9 = inlined_call_operand.vmem [shape: f32[25,256], index: 9, kind: input, shape index: {}]   ;;  %s4296_s10 = inlined_call_operand.vmem [shape: f32[2,32,256], index: 10, kind: output, shape index: {}]  }
   0x1   :  { %4545 = sst [smem:[#allocation85_spill]] %s4286_s0 }
   0x2   :  { %4546 = sst [smem:[#allocation86_spill]] %s4287_s1 }
   0x3   :  { %4547 = sst [smem:[#allocation87_spill]] %s4288_s2 }
   0x4 LB: > { %s2093_s14 = sadd.s32 4294967295, %s2294_s13   ;;  %p2097_p0 = scmp.ge.s32.totalorder %s2294_s13, 1  ;;  %s2294_s13 = sphi %s2401_s13, %s20_s13  }
   0x5   : > { %p312_p1 = scmp.lt.s32.totalorder %s2294_s13, 3 }
   0x7   : > { %p313_p2 = pnand %p2097_p0, %p312_p1 }
   0x9   : > { %316 = sbr.rel (%p313_p2) target bundleno = 1179 (0x49b), region = 60 }
  0x10   : > { %p350_p3 = scmp.lt.s32.totalorder %s2093_s14, 1  ;;  %s4548_s2 = sld [smem:[#allocation87_spill]]  ;;  %v4320_v1 = vmov 0.0   ;;  %v4321_v2 = vmov 0   ;;  %v2417_v3 = vld [vmem:[%s4289_s3] sm:$0xff]  ;;  %v4377_v7 = vmov 1  }
  0x11   : > { %451 = vmatprep.mubr.f32.mxu0 %v4320_v1  ;;  %2185 = vset.pattern.permute.xlu0 %v4321_v2  ;;  %s4549_s0 = sld [smem:[#allocation85_spill]]  ;;  %v4358_v12 = vmov 12   ;;  %v4374_v18 = vmov 2   ;;  %s4550_s1 = sld [smem:[#allocation86_spill]]  ;;  %vm383_vm0 = vcmask 261120   ;;  %v4378_v20 = vmov 3  }
  0x12   : > { %s4899_s14 = smov (!%p350_p3, %s2093_s14), 1  ;;  %2186 = vset.pattern.permute.xlu1 %v4321_v2  ;;  %1201 = vmatprep.mubr.f32.mxu1 %v4320_v1  ;;  %v4375_v21 = vmov 4   ;;  %v4372_v22 = vmov 5   ;;  %v4370_v23 = vmov 6   ;;  %v4368_v24 = vmov 7   ;;  %s4467_s25 = smov 32  }
  0x13   : > { %495 = vperm.xlu1 %2186, %v2417_v3   ;;  %s4297_s19 = sshll.u32 %s4899_s14, 6  ;;  %v4366_v25 = vmov 8   ;;  %v4364_v26 = vmov 9   ;;  %v4362_v27 = vmov 10   ;;  %v4360_v28 = vmov 11   ;;  %s4457_s26 = smov 34  }
  0x14   : > { %v4354_v29 = vmov 14   ;;  %v4352_v30 = vmov 15   ;;  %v4356_v31 = vmov 13   ;;  %v4350_v32 = vmov 16   ;;  %s4452_s27 = smov 31   ;;  %s4455_s28 = smov 33  }
  0x15   : > { %v4323_v33 = vmov 21   ;;  %v4344_v34 = vmov 17   ;;  %v4328_v35 = vmov 22   ;;  %v4338_v36 = vmov 18   ;;  %s4473_s29 = smov 30   ;;  %s4450_s30 = smov 18  }
  0x16   : > { %v377_v0 = vld [vmem:[%s4548_s2] sm:$0xff]  ;;  %v4332_v37 = vmov 19   ;;  %v4330_v51 = vmov 20   ;;  %s4308_s11 = smov 17   ;;  %s4300_s12 = smov 126   ;;  %v4326_v52 = vmov 23  }
  0x17   : > { %380 = vperm.xlu0 %2185, %v377_v0   ;;  %s2430_s22 = scalar_lea.vmem %s4549_s0, %s4297_s19  ;;  %2198 = vset.pattern.permute.xlu1 %v4358_v12  ;;  %v376_v19 = vld [vmem:[%s4550_s1] sm:$0xff]  ;;  %s4310_s15 = smov 16   ;;  %v4324_v55 = vmov 24   ;;  %v2705_v12 = vld [vmem:[%s4295_s9 + $0x18] sm:$0xff] }
  0x18   : > { %v361_v4 = vld [vmem:[%s2430_s22 + $0x8] sm:$0xff]  ;;  %v363_v5 = vld [vmem:[%s2430_s22 + $0x18] sm:$0xff]  ;;  %v360_v6 = vld [vmem:[%s2430_s22] sm:$0xff]  ;;  %788 = vperm.xlu1 %2198, %v2417_v3   ;;  %s4298_s16 = smov 97   ;;  %s4461_s17 = smov 15  }
  0x19   : > { %v2115_v8 = vpack.c.bf16 %v363_v5, %v361_v4  ;;  %v362_v9 = vld [vmem:[%s2430_s22 + $0x10] sm:$0xff]  ;;  %v365_v10 = vld [vmem:[%s2430_s22 + $0x28] sm:$0xff]  ;;  %v367_v11 = vld [vmem:[%s2430_s22 + $0x38] sm:$0xff]  ;;  %s4306_s18 = smov 127   ;;  %s4312_s20 = smov 14  }
  0x1a   : > { %v2117_v13 = vpack.c.bf16 %v362_v9, %v360_v6  ;;  %v2119_v14 = vpack.c.bf16 %v367_v11, %v365_v10  ;;  %v364_v15 = vld [vmem:[%s2430_s22 + $0x20] sm:$0xff]  ;;  %v366_v16 = vld [vmem:[%s2430_s22 + $0x30] sm:$0xff]  ;;  %s4314_s21 = smov 2   ;;  %s4302_s23 = smov 1  }
  0x1b   : > { %2187 = vset.pattern.permute.xlu0 %v4377_v7  ;;  %2116 = vmatprep.subr.bf16.mxu0 %v2115_v8  ;;  %v2121_v17 = vpack.c.bf16 %v366_v16, %v364_v15  ;;  %s4304_s24 = smov 94   ;;  %v473_v56 = vld [vmem:[%s4290_s4] sm:$0xff]  ;;  %s4336_s19 = smov 111  }
  0x1c   : > { %520 = vperm.xlu0 %2187, %v2417_v3   ;;  %2118 = vmatpush1.bf16.msra.mxu0 %v2117_v13  ;;  %s4703_s0 = smov 15   ;;  %s4711_s1 = smov 32  }
  0x1d   : > { %2120 = vmatprep.subr.bf16.mxu0 %v2119_v14  ;;  %2199 = vset.pattern.permute.xlu1 %v4356_v31  ;;  %s4714_s2 = smov 30  }
  0x1e   : > { %813 = vperm.xlu1 %2199, %v2417_v3  }
  0x20   : > { %2188 = vset.pattern.permute.xlu0 %v4374_v18  ;;  %2122 = vmatpush1.bf16.msra.mxu0 %v2121_v17 }
  0x21   : > { %545 = vperm.xlu0 %2188, %v2417_v3  }
  0x22   : > { %2207 = vset.pattern.permute.xlu1 %v4323_v33 }
  0x23   : > { %2102 = vmatmul.mubr.msk.f32.vlgmr.msra.gmra.mrb[0].mxu0 %vm383_vm0, %v376_v19  ;;  %1013 = vperm.xlu1 %2207, %v2417_v3  }
  0x25   : > { %2189 = vset.pattern.permute.xlu0 %v4378_v20 }
  0x26   : > { %570 = vperm.xlu0 %2189, %v2417_v3  }
  0x27   : > { %2208 = vset.pattern.permute.xlu1 %v4328_v35 }
  0x28   : > { %1038 = vperm.xlu1 %2208, %v2417_v3  }
  0x2a   : > { %2190 = vset.pattern.permute.xlu0 %v4375_v21  ;;  %v369_v21 = vld [vmem:[%s4295_s9 + $0x8] sm:$0xff] }
  0x2b   : > { %595 = vperm.xlu0 %2190, %v2417_v3  }
  0x2c   : > { %2212 = vset.pattern.permute.xlu1 %v4321_v2 }
  0x2f   : > { %2191 = vset.pattern.permute.xlu0 %v4372_v22 }
  0x30   : > { %620 = vperm.xlu0 %2191, %v2417_v3  }
  0x34   : > { %2192 = vset.pattern.permute.xlu0 %v4370_v23 }
  0x35   : > { %645 = vperm.xlu0 %2192, %v2417_v3  }
  0x39   : > { %2193 = vset.pattern.permute.xlu0 %v4368_v24 }
  0x3a   : > { %670 = vperm.xlu0 %2193, %v2417_v3  }
  0x3e   : > { %2194 = vset.pattern.permute.xlu0 %v4366_v25 }
  0x3f   : > { %695 = vperm.xlu0 %2194, %v2417_v3  }
  0x43   : > { %2195 = vset.pattern.permute.xlu0 %v4364_v26 }
  0x44   : > { %720 = vperm.xlu0 %2195, %v2417_v3  }
  0x48   : > { %2196 = vset.pattern.permute.xlu0 %v4362_v27 }
  0x49   : > { %745 = vperm.xlu0 %2196, %v2417_v3  }
  0x4d   : > { %2197 = vset.pattern.permute.xlu0 %v4360_v28  ;;  %v2710_v28 = vld [vmem:[%s4293_s7 + $0x8] sm:$0xff] }
  0x4e   : > { %770 = vperm.xlu0 %2197, %v2417_v3  }
  0x52   : > { %2200 = vset.pattern.permute.xlu0 %v4354_v29 }
  0x53   : > { %838 = vperm.xlu0 %2200, %v2417_v3  }
  0x57   : > { %2201 = vset.pattern.permute.xlu0 %v4352_v30 }
  0x58   : > { %863 = vperm.xlu0 %2201, %v2417_v3  }
  0x5c   : > { %2202 = vset.pattern.permute.xlu0 %v4350_v32  ;;  %v1119_v32 = vld [vmem:[%s4292_s6 + $0x8] sm:$0xff] }
  0x5d   : > { %888 = vperm.xlu0 %2202, %v2417_v3  }
  0x61   : > { %2203 = vset.pattern.permute.xlu0 %v4344_v34  ;;  %v2685_v34 = vld [vmem:[%s4293_s7] sm:$0xff] }
  0x62   : > { %913 = vperm.xlu0 %2203, %v2417_v3  }
  0x66   : > { %2204 = vset.pattern.permute.xlu0 %v4338_v36  ;;  %v1118_v36 = vld [vmem:[%s4292_s6] sm:$0xff] }
  0x67   : > { %938 = vperm.xlu0 %2204, %v2417_v3  }
  0x6b   : > { %2205 = vset.pattern.permute.xlu0 %v4332_v37 }
  0x92   : > { %v2557_v57 = vpop.permute.xlu1 %495 }
  0x96   : > { %v381_v38 = vpop.permute.xlu0 %380 }
  0x97   : > { %v2561_v58 = vpop.permute.xlu1 %788 }
  0x98   : > { %4553 = vst [vmem:[#allocation4_spill] sm:$0xff] %v2561_v58 }
  0x9b   : > { %v2579_v62 = vpop.permute.xlu0 %520 }
  0x9d   : > { %v2567_v59 = vpop.permute.xlu1 %813 }
  0x9e   : > { %4554 = vst [vmem:[#allocation5_spill] sm:$0xff] %v2567_v59 }
  0xa0   : > { %v2587_v0 = vpop.permute.xlu0 %545 }
  0xa2   : > { %v2571_v60 = vpop.permute.xlu1 %1013 }
  0xa3   : > { %4555 = vst [vmem:[#allocation6_spill] sm:$0xff] %v2571_v60 }
  0xa5   : > { %v2595_v5 = vpop.permute.xlu0 %570 }
  0xa7   : > { %v2577_v61 = vpop.permute.xlu1 %1038 }
  0xa8   : > { %4556 = vst [vmem:[#allocation7_spill] sm:$0xff] %v2577_v61  ;;  %v4579_v61 = vmov 3  }
  0xaa   : > { %v2603_v8 = vpop.permute.xlu0 %595 }
  0xaf   : > { %v2611_v11 = vpop.permute.xlu0 %620 }
  0xb4   : > { %v2619_v14 = vpop.permute.xlu0 %645 }
  0xb9   : > { %v2627_v17 = vpop.permute.xlu0 %670 }
  0xf6   : > { %v453_v39 = vpop.f32.mrb[0].mxu0 }
  0xf7   : > { %v454_v40 = vadd.f32 %v453_v39, %v381_v38  ;;  %v455_v41 = vpop.f32.mrb[1].mxu0 }
  0xf8   : > { %v456_v45 = vadd.f32 %v455_v41, %v381_v38  ;;  %v2635_v38 = vpop.permute.xlu0 %695 }
  0xf9   : > { %v2103_v42 = vmul.f32 -1.442695, %v454_v40 }
  0xfa   : > { %v2104_v46 = vmul.f32 -1.442695, %v456_v45 }
  0xfb   : > { %2262 = vpow2.f32 %v2103_v42 }
  0xfc   : > { %v2643_v41 = vpop.permute.xlu0 %720 }
  0xfd   : > { %4562 = vst [vmem:[#allocation10_spill] sm:$0xff] %v2643_v41 }
 0x105   : > { %v2263_v43 = vpop.eup %2262 }
 0x106   : > { %v464_v44 = vadd.f32 1.0, %v2263_v43  ;;  %v2651_v43 = vpop.permute.xlu0 %745 }
 0x107   : > { %4565 = vst [vmem:[#allocation12_spill] sm:$0xff] %v2651_v43 }
 0x108   : > { %2264 = vrcp.f32 %v464_v44 }
 0x109   : > { %2266 = vpow2.f32 %v2104_v46 }
 0x10a   : > { %v2657_v46 = vpop.permute.xlu0 %770 }
 0x10b   : > { %4568 = vst [vmem:[#allocation15_spill] sm:$0xff] %v2657_v46 }
 0x112   : > { %v2265_v47 = vpop.eup %2264 }
 0x113   : > { %v2485_v48 = vmul.f32 %v2265_v47, %v454_v40  ;;  %v2267_v49 = vpop.eup %2266 }
 0x114   : > { %v465_v50 = vadd.f32 1.0, %v2267_v49  ;;  %v2661_v49 = vpop.permute.xlu0 %838 }
 0x115   : > { %4551 = vst [vmem:[#allocation2_spill] sm:$0xff] %v2485_v48  ;;  %527 = vrot.lane.b32.xlu1 %v2485_v48, %s4467_s25  ;;  %474 = vrot.lane.b32.xlu0 %v2485_v48, %s4457_s26  ;;  %4570 = vst [vmem:[#allocation17_spill] sm:$0xff] %v2661_v49 }
 0x116   : > { %2268 = vrcp.f32 %v465_v50 }
 0x119   : > { %552 = vrot.lane.b32.xlu1 %v2485_v48, %s4452_s27  ;;  %502 = vrot.lane.b32.xlu0 %v2485_v48, %s4455_s28 }
 0x11d   : > { %577 = vrot.lane.b32.xlu1 %v2485_v48, %s4473_s29  ;;  %963 = vperm.xlu0 %2205, %v2417_v3  }
 0x120   : > { %v2269_v53 = vpop.eup %2268 }
 0x121   : > { %602 = vrot.lane.b32.xlu1 %v2485_v48, %s4450_s30  ;;  %2206 = vset.pattern.permute.xlu0 %v4330_v51  ;;  %v2511_v54 = vmul.f32 %v2269_v53, %v456_v45 }
 0x122   : > { %988 = vperm.xlu0 %2206, %v2417_v3  }
 0x123   : > { %4552 = vst [vmem:[#allocation3_spill] sm:$0xff] %v2511_v54 }
 0x125   : > { %627 = vrot.lane.b32.xlu1 %v2485_v48, %s4308_s11 }
 0x126   : > { %820 = vrot.lane.b32.xlu0 %v2485_v48, %s4300_s12  ;;  %s4348_s12 = smov 114  }
 0x127   : > { %2209 = vset.pattern.permute.xlu0 %v4326_v52  ;;  %v478_v52 = vlaneseq }
 0x129   : > { %652 = vrot.lane.b32.xlu1 %v2485_v48, %s4310_s15  ;;  %v484_v37 = vshrl.u32 %v478_v52, 7  ;;  %v2729_v22 = vand.u32 127, %v478_v52 }
 0x12a   : > { %995 = vrot.lane.b32.xlu0 %v2485_v48, %s4298_s16  ;;  %s4342_s16 = smov 110  }
 0x12b   : > { %v2695_v31 = vsub.s32 4, %v484_v37  ;;  %v2725_v24 = vsub.s32 0, %v484_v37  ;;  %v2727_v23 = vsub.s32 1, %v484_v37  ;;  %v2746_v52 = vsub.s32 3, %v484_v37 }
 0x12c   : > { %vm480_vm1 = vcmp.lt.s32.totalorder %v2729_v22, 34  ;;  %vm506_vm2 = vcmp.lt.s32.totalorder %v2729_v22, 33  ;;  %vm531_vm3 = vcmp.lt.s32.totalorder %v2729_v22, 32  ;;  %vm556_vm4 = vcmp.lt.s32.totalorder %v2729_v22, 31 }
 0x12d   : > { %677 = vrot.lane.b32.xlu1 %v2485_v48, %s4461_s17  ;;  %4576 = vst [vmem:[#allocation23_spill] sm:$0xff] %v2695_v31  ;;  %v2788_v59 = vsub.s32 6, %v484_v37  ;;  %vm581_vm5 = vcmp.lt.s32.totalorder %v2729_v22, 30  ;;  %v2799_v46 = vrot.slane %v369_v21, %v2695_v31  ;;  %vm606_vm6 = vcmp.lt.s32.totalorder %v2729_v22, 18 }
 0x12e   : > { %797 = vrot.lane.b32.xlu0 %v2511_v54, %s4306_s18  ;;  %v2809_v43 = vsub.s32 7, %v484_v37  ;;  %vm631_vm7 = vcmp.lt.s32.totalorder %v2729_v22, 17  ;;  %vm656_vm8 = vcmp.lt.s32.totalorder %v2729_v22, 16  ;;  %vm4429_vm9 = vcmp.lt.s32.totalorder %v2729_v22, 15 }
 0x12f   : > { %4593 = vst [vmem:[#allocation37_spill] sm:$0xff] %v2799_v46  ;;  %vm706_vm10 = vcmp.lt.s32.totalorder %v2729_v22, 14  ;;  %vm4424_vm11 = vcmp.lt.s32.totalorder %v2729_v22, 2  ;;  %vm4444_vm12 = vcmp.lt.s32.totalorder %v2729_v22, 1  ;;  %vm799_vm13 = vcmp.lt.s32.totalorder %v2729_v22, 127 }
 0x130   : > { %vm4423_vm14 = vcmp.lt.s32.totalorder %v2729_v22, 126  ;;  %vm849_vm15 = vcmp.lt.s32.totalorder %v2729_v22, 114  ;;  %vm4436_vm0 = vcmp.lt.s32.totalorder %v2729_v22, 113 }
 0x131   : > { %702 = vrot.lane.b32.xlu1 %v2485_v48, %s4312_s20 }
 0x132   : > { %1063 = vperm.xlu0 %2209, %v2417_v3  }
 0x135   : > { %727 = vrot.lane.b32.xlu1 %v2485_v48, %s4314_s21 }
 0x136   : > { %2210 = vset.pattern.permute.xlu0 %v4324_v55 }
 0x137   : > { %1088 = vperm.xlu0 %2210, %v2417_v3  }
 0x139   : > { %752 = vrot.lane.b32.xlu1 %v2485_v48, %s4302_s23  ;;  %s4316_s23 = smov 113  }
 0x13b   : > { %1070 = vrot.lane.b32.xlu0 %v2485_v48, %s4304_s24  ;;  %s4346_s24 = smov 112  }
 0x13c   : > { %2211 = vset.pattern.permute.xlu0 %v4321_v2 }
 0x13d   : > { %795 = vrot.lane.b32.xlu1 %v2485_v48, %s4306_s18  ;;  %s4318_s18 = smov 98  }
 0x13f   : > { %1097 = vperm.xlu0 %2211, %v473_v56   ;;  %v2667_v56 = vpop.permute.xlu0 %863 }
 0x140   : > { %4572 = vst [vmem:[#allocation19_spill] sm:$0xff] %v2667_v56 }
 0x141   : > { %845 = vrot.lane.b32.xlu1 %v2485_v48, %s4348_s12 }
 0x143   : > { %2213 = vset.pattern.permute.xlu0 %v4377_v7  ;;  %v2669_v2 = vpop.permute.xlu0 %888  ;;  %v2737_v7 = vsub.s32 2, %v484_v37 }
 0x144   : > { %4573 = vst [vmem:[#allocation20_spill] sm:$0xff] %v2669_v2  ;;  %1269 = vperm.xlu0 %2213, %v2685_v34  }
 0x145   : > { %870 = vrot.lane.b32.xlu1 %v2485_v48, %s4316_s23 }
 0x147   : > { %v2675_v35 = vpop.permute.xlu0 %913 }
 0x148   : > { %4574 = vst [vmem:[#allocation21_spill] sm:$0xff] %v2675_v35  ;;  %2216 = vset.pattern.permute.xlu0 %v4374_v18  ;;  %v368_v18 = vld [vmem:[%s4295_s9] sm:$0xff]  ;;  %v4583_v35 = vmov 1  }
 0x149   : > { %895 = vrot.lane.b32.xlu1 %v2485_v48, %s4346_s24  ;;  %1305 = vperm.xlu0 %2216, %v2710_v28   ;;  %v2773_v2 = vrot.slane %v368_v18, %v2737_v7  ;;  %v2786_v49 = vrot.slane %v368_v18, %v2746_v52 }
 0x14b   : > { %v2691_v30 = vpop.permute.xlu0 %938  ;;  %4588 = vst [vmem:[#allocation33_spill] sm:$0xff] %v2773_v2  ;;  %4590 = vst [vmem:[#allocation35_spill] sm:$0xff] %v2786_v49 }
 0x14c   : > { %4575 = vst [vmem:[#allocation22_spill] sm:$0xff] %v2691_v30 }
 0x14d   : > { %920 = vrot.lane.b32.xlu1 %v2485_v48, %s4336_s19  ;;  %2217 = vset.pattern.permute.xlu0 %v4579_v61 }
 0x14e   : > { %1333 = vperm.xlu0 %2217, %v2685_v34  }
 0x151   : > { %945 = vrot.lane.b32.xlu1 %v2485_v48, %s4342_s16 }
 0x155   : > { %970 = vrot.lane.b32.xlu1 %v2485_v48, %s4318_s18 }
 0x159   : > { %476 = vrot.lane.b32.xlu1 %v2511_v54, %s4457_s26 }
 0x15d   : > { %504 = vrot.lane.b32.xlu1 %v2511_v54, %s4455_s28 }
 0x161   : > { %529 = vrot.lane.b32.xlu1 %v2511_v54, %s4467_s25 }
 0x165   : > { %554 = vrot.lane.b32.xlu1 %v2511_v54, %s4452_s27 }
 0x169   : > { %579 = vrot.lane.b32.xlu1 %v2511_v54, %s4473_s29 }
 0x16d   : > { %604 = vrot.lane.b32.xlu1 %v2511_v54, %s4450_s30 }
 0x171   : > { %629 = vrot.lane.b32.xlu1 %v2511_v54, %s4308_s11  ;;  %s4557_s11 = smov 1  }
 0x175   : > { %654 = vrot.lane.b32.xlu1 %v2511_v54, %s4310_s15  ;;  %s4340_s15 = smov 96  }
 0x179   : > { %679 = vrot.lane.b32.xlu1 %v2511_v54, %s4461_s17 }
 0x17d   : > { %704 = vrot.lane.b32.xlu1 %v2511_v54, %s4312_s20  ;;  %s4334_s20 = smov 95  }
 0x181   : > { %729 = vrot.lane.b32.xlu1 %v2511_v54, %s4314_s21  ;;  %s4558_s21 = smov 126  }
 0x185   : > { %754 = vrot.lane.b32.xlu1 %v2511_v54, %s4557_s11 }
 0x187   : > { %v2583_v63 = vpop.permute.xlu1 %527  ;;  %v475_v25 = vpop.permute.xlu0 %474 }
 0x189   : > { %1020 = vrot.lane.b32.xlu1 %v2485_v48, %s4340_s15 }
 0x18b   : > { %v2589_v3 = vpop.permute.xlu1 %552 }
 0x18d   : > { %1045 = vrot.lane.b32.xlu1 %v2485_v48, %s4334_s20 }
 0x18f   : > { %v2593_v4 = vpop.permute.xlu1 %577 }
 0x191   : > { %822 = vrot.lane.b32.xlu1 %v2511_v54, %s4558_s21 }
 0x193   : > { %v2599_v6 = vpop.permute.xlu1 %602 }
 0x195   : > { %847 = vrot.lane.b32.xlu1 %v2511_v54, %s4348_s12  ;;  %s4671_s12 = sshll.u32 %s4899_s14, 6  ;;  %s4677_s14 = smov 17  }
 0x197   : > { %v2605_v9 = vpop.permute.xlu1 %627 }
 0x199   : > { %872 = vrot.lane.b32.xlu1 %v2511_v54, %s4316_s23  ;;  %s4559_s23 = smov 97  }
 0x19b   : > { %v2609_v10 = vpop.permute.xlu1 %652 }
 0x19d   : > { %897 = vrot.lane.b32.xlu1 %v2511_v54, %s4346_s24  ;;  %s4683_s24 = smov 127  }
 0x19f   : > { %v2615_v13 = vpop.permute.xlu1 %677 }
 0x1a1   : > { %922 = vrot.lane.b32.xlu1 %v2511_v54, %s4336_s19  ;;  %s3373_s19 = scalar_lea.vmem %s4296_s10, %s4671_s12  ;;  %s4682_s12 = smov 2  }
 0x1a3   : > { %v2621_v15 = vpop.permute.xlu1 %702 }
 0x1a5   : > { %947 = vrot.lane.b32.xlu1 %v2511_v54, %s4342_s16  ;;  %s4681_s16 = smov 14  }
 0x1a7   : > { %v2625_v16 = vpop.permute.xlu1 %727 }
 0x1a9   : > { %972 = vrot.lane.b32.xlu1 %v2511_v54, %s4318_s18  ;;  %s4564_s18 = smov 94  }
 0x1ab   : > { %v2631_v19 = vpop.permute.xlu1 %752 }
 0x1ad   : > { %997 = vrot.lane.b32.xlu1 %v2511_v54, %s4559_s23 }
 0x1af   : > { %v2637_v39 = vpop.permute.xlu1 %795 }
 0x1b0   : > { %4560 = vst [vmem:[#allocation8_spill] sm:$0xff] %v2637_v39  ;;  %v2796_v39 = vrot.slane %v368_v18, %v2695_v31 }
 0x1b1   : > { %1022 = vrot.lane.b32.xlu1 %v2511_v54, %s4340_s15  ;;  %s4678_s15 = smov 16  }
 0x1b3   : > { %v2641_v40 = vpop.permute.xlu1 %845 }
 0x1b4   : > { %4561 = vst [vmem:[#allocation9_spill] sm:$0xff] %v2641_v40  ;;  %v2792_v40 = vrot.slane %v369_v21, %v2746_v52 }
 0x1b5   : > { %1047 = vrot.lane.b32.xlu1 %v2511_v54, %s4334_s20  ;;  %s4686_s20 = smov 114  }
 0x1b6   : > { %4592 = vst [vmem:[#allocation36_spill] sm:$0xff] %v2792_v40 }
 0x1b7   : > { %v2647_v42 = vpop.permute.xlu1 %870 }
 0x1b8   : > { %4563 = vst [vmem:[#allocation11_spill] sm:$0xff] %v2647_v42  ;;  %v4591_v42 = vmov 4  }
 0x1b9   : > { %1072 = vrot.lane.b32.xlu1 %v2511_v54, %s4564_s18  ;;  %2220 = vset.pattern.permute.xlu0 %v4591_v42 }
 0x1ba   : > { %1369 = vperm.xlu0 %2220, %v2710_v28  }
 0x1bb   : > { %v2653_v44 = vpop.permute.xlu1 %895 }
 0x1bc   : > { %4566 = vst [vmem:[#allocation13_spill] sm:$0xff] %v2653_v44 }
 0x1bd   : > { %1122 = vperm.xlu1 %2212, %v1118_v36   ;;  %v2700_v36 = vld [vmem:[%s4295_s9 + $0x10] sm:$0xff] }
 0x1be   : > { %v2718_v26 = vrot.slane %v2700_v36, %v2695_v31 }
 0x1bf   : > { %v2655_v45 = vpop.permute.xlu1 %920 }
 0x1c0   : > { %4567 = vst [vmem:[#allocation14_spill] sm:$0xff] %v2655_v45  ;;  %4577 = vst [vmem:[#allocation24_spill] sm:$0xff] %v2718_v26  ;;  %v2744_v60 = vmul.f32 %v2718_v26, %v2485_v48  ;;  %v2762_v26 = vrot.slane %v369_v21, %v2725_v24  ;;  %v2765_v48 = vrot.slane %v368_v18, %v2727_v23 }
 0x1c1   : > { %1127 = vperm.xlu1 %2212, %v1119_v32   ;;  %v2722_v32 = vrot.slane %v2705_v12, %v2695_v31 }
 0x1c2   : > { %4580 = vst [vmem:[#allocation26_spill] sm:$0xff] %v2744_v60  ;;  %4585 = vst [vmem:[#allocation30_spill] sm:$0xff] %v2762_v26 }
 0x1c3   : > { %v2659_v47 = vpop.permute.xlu1 %945  ;;  %4578 = vst [vmem:[#allocation25_spill] sm:$0xff] %v2722_v32  ;;  %v2751_v30 = vmul.f32 %v2722_v32, %v2511_v54  ;;  %4586 = vst [vmem:[#allocation31_spill] sm:$0xff] %v2765_v48  ;;  %v2768_v32 = vrot.slane %v369_v21, %v2727_v23  ;;  %v503_v54 = vpop.permute.xlu0 %502 }
 0x1c4   : > { %4569 = vst [vmem:[#allocation16_spill] sm:$0xff] %v2659_v47  ;;  %v2759_v47 = vrot.slane %v368_v18, %v2725_v24 }
 0x1c5   : > { %1241 = vperm.xlu1 %2212, %v2710_v28   ;;  %4581 = vst [vmem:[#allocation27_spill] sm:$0xff] %v2751_v30  ;;  %4587 = vst [vmem:[#allocation32_spill] sm:$0xff] %v2768_v32  ;;  %v4594_v30 = vmov 2  }
 0x1c6   : > { %4584 = vst [vmem:[#allocation29_spill] sm:$0xff] %v2759_v47 }
 0x1c7   : > { %v2663_v50 = vpop.permute.xlu1 %970 }
 0x1c8   : > { %4571 = vst [vmem:[#allocation18_spill] sm:$0xff] %v2663_v50  ;;  %v2753_v50 = vsub.s32 5, %v484_v37 }
 0x1c9   : > { %2214 = vset.pattern.permute.xlu1 %v4583_v35  ;;  %v2776_v35 = vrot.slane %v369_v21, %v2737_v7 }
 0x1ca   : > { %4582 = vst [vmem:[#allocation28_spill] sm:$0xff] %v2753_v50  ;;  %1273 = vperm.xlu1 %2214, %v2710_v28   ;;  %v2829_v37 = vrot.slane %v369_v21, %v2753_v50 }
 0x1cb   : > { %v2665_v53 = vpop.permute.xlu1 %476  ;;  %4589 = vst [vmem:[#allocation34_spill] sm:$0xff] %v2776_v35 }
 0x1ce   : > { %2215 = vset.pattern.permute.xlu1 %v4594_v30  ;;  %v2826_v30 = vrot.slane %v368_v18, %v2753_v50 }
 0x1cf   : > { %v505_v1 = vpop.permute.xlu1 %504  ;;  %1301 = vperm.xlu1 %2215, %v2685_v34  }
 0x1d0   : > { %v507_v56 = vsel %vm506_vm2, %v503_v54, %v505_v1  ;;  %v508_v44 = vsel %vm506_vm2, %v505_v1, %v503_v54  ;;  %v481_v1 = vsel %vm480_vm1, %v475_v25, %v2665_v53  ;;  %v482_v54 = vsel %vm480_vm1, %v2665_v53, %v475_v25 }
 0x1d1   : > { %v517_v58 = vmul.f32 %v2765_v48, %v508_v44  ;;  %v518_v31 = vmul.f32 %v2768_v32, %v507_v56  ;;  %v2833_v44 = vrot.slane %v368_v18, %v2788_v59  ;;  %v491_v56 = vmul.f32 %v2759_v47, %v482_v54 }
 0x1d2   : > { %v492_v32 = vmul.f32 %v2762_v26, %v481_v1  ;;  %v4595_v48 = vmov 5   ;;  %v2849_v54 = vrot.slane %v369_v21, %v2788_v59  ;;  %v2856_v47 = vrot.slane %v368_v18, %v2809_v43 }
 0x1d3   : > { %v2671_v33 = vpop.permute.xlu1 %529  ;;  %2221 = vset.pattern.permute.xlu0 %v4595_v48  ;;  %v523_v1 = vmul.f32 %v2579_v62, %v517_v58  ;;  %v524_v26 = vmul.f32 %v2579_v62, %v518_v31  ;;  %2218 = vset.pattern.permute.xlu1 %v4579_v61  ;;  %v2882_v61 = vrot.slane %v2700_v36, %v2725_v24 }
 0x1d4   : > { %v532_v60 = vsel %vm531_vm3, %v2583_v63, %v2671_v33  ;;  %v533_v25 = vsel %vm531_vm3, %v2671_v33, %v2583_v63  ;;  %1397 = vperm.xlu0 %2221, %v2685_v34   ;;  %1337 = vperm.xlu1 %2218, %v2710_v28   ;;  %v499_v58 = vmul.f32 %v2557_v57, %v492_v32 }
 0x1d5   : > { %v542_v50 = vmul.f32 %v2773_v2, %v533_v25  ;;  %v543_v41 = vmul.f32 %v2776_v35, %v532_v60  ;;  %v2864_v60 = vpop.permute.xlu0 %963 }
 0x1d7   : > { %v2673_v55 = vpop.permute.xlu1 %554  ;;  %v548_v62 = vmul.f32 %v2587_v0, %v542_v50  ;;  %v2899_v50 = vrot.slane %v2705_v12, %v2725_v24 }
 0x1d8   : > { %v557_v33 = vsel %vm556_vm4, %v2589_v3, %v2673_v55  ;;  %v558_v63 = vsel %vm556_vm4, %v2673_v55, %v2589_v3  ;;  %v2859_v55 = vrot.slane %v369_v21, %v2809_v43  ;;  %v498_v21 = vmul.f32 %v2557_v57, %v491_v56  ;;  %2219 = vset.pattern.permute.xlu1 %v4591_v42 }
 0x1d9   : > { %v567_v25 = vmul.f32 %v2786_v49, %v558_v63  ;;  %v568_v35 = vmul.f32 %v2792_v40, %v557_v33  ;;  %v549_v33 = vmul.f32 %v2587_v0, %v543_v41  ;;  %v526_v63 = vadd.f32 %v524_v26, %v499_v58  ;;  %1365 = vperm.xlu1 %2219, %v2685_v34  }
 0x1da   : > { %4596 = vst [vmem:[#allocation38_spill] sm:$0xff] %v2859_v55  ;;  %v525_v41 = vadd.f32 %v523_v1, %v498_v21  ;;  %v2919_v1 = vpop.permute.xlu0 %988 }
 0x1db   : > { %v2677_v51 = vpop.permute.xlu1 %579  ;;  %v551_v42 = vadd.f32 %v549_v33, %v526_v63  ;;  %v4598_v33 = vmov 7  }
 0x1dc   : > { %v582_v31 = vsel %vm581_vm5, %v2593_v4, %v2677_v51  ;;  %v583_v18 = vsel %vm581_vm5, %v2677_v51, %v2593_v4  ;;  %v4597_v4 = vmov 6  }
 0x1dd   : > { %2224 = vset.pattern.permute.xlu0 %v4597_v4  ;;  %v592_v32 = vmul.f32 %v2796_v39, %v583_v18  ;;  %v593_v56 = vmul.f32 %v2799_v46, %v582_v31  ;;  %2222 = vset.pattern.permute.xlu1 %v4595_v48  ;;  %v2966_v48 = vrot.slane %v2705_v12, %v2737_v7 }
 0x1de   : > { %1433 = vperm.xlu0 %2224, %v2710_v28   ;;  %1401 = vperm.xlu1 %2222, %v2710_v28  }
 0x1df   : > { %v2693_v29 = vpop.permute.xlu1 %604  ;;  %v598_v21 = vmul.f32 %v2603_v8, %v592_v32  ;;  %v599_v58 = vmul.f32 %v2603_v8, %v593_v56  ;;  %v2947_v8 = vrot.slane %v2700_v36, %v2737_v7  ;;  %4599 = vst [vmem:[#allocation39_spill] sm:$0xff] %v2966_v48 }
 0x1e0   : > { %v607_v51 = vsel %vm606_vm6, %v2599_v6, %v2693_v29  ;;  %v608_v57 = vsel %vm606_vm6, %v2693_v29, %v2599_v6  ;;  %v573_v29 = vmul.f32 %v2595_v5, %v567_v25  ;;  %v574_v6 = vmul.f32 %v2595_v5, %v568_v35 }
 0x1e1   : > { %v617_v31 = vmul.f32 %v2826_v30, %v608_v57  ;;  %v618_v18 = vmul.f32 %v2829_v37, %v607_v51  ;;  %v550_v5 = vadd.f32 %v548_v62, %v525_v41  ;;  %v2923_v35 = vrot.slane %v2700_v36, %v2727_v23 }
 0x1e2   : > { %v2927_v25 = vrot.slane %v2705_v12, %v2727_v23  ;;  %2225 = vset.pattern.permute.xlu0 %v4598_v33  ;;  %v576_v56 = vadd.f32 %v574_v6, %v551_v42  ;;  %v4600_v42 = vmov 8   ;;  %2223 = vset.pattern.permute.xlu1 %v4597_v4 }
 0x1e3   : > { %v2713_v27 = vpop.permute.xlu1 %629  ;;  %1461 = vperm.xlu0 %2225, %v2685_v34   ;;  %v575_v32 = vadd.f32 %v573_v29, %v550_v5  ;;  %1429 = vperm.xlu1 %2223, %v2685_v34  }
 0x1e4   : > { %v632_v46 = vsel %vm631_vm7, %v2605_v9, %v2713_v27  ;;  %v633_v26 = vsel %vm631_vm7, %v2713_v27, %v2605_v9 }
 0x1e5   : > { %v642_v51 = vmul.f32 %v2833_v44, %v633_v26  ;;  %v643_v57 = vmul.f32 %v2849_v54, %v632_v46  ;;  %v600_v6 = vadd.f32 %v598_v21, %v575_v32 }
 0x1e7   : > { %v2739_v20 = vpop.permute.xlu1 %654  ;;  %v648_v26 = vmul.f32 %v2619_v14, %v642_v51  ;;  %v649_v5 = vmul.f32 %v2619_v14, %v643_v57  ;;  %2228 = vset.pattern.permute.xlu0 %v4600_v42  ;;  %2226 = vset.pattern.permute.xlu1 %v4598_v33 }
 0x1e8   : > { %v657_v27 = vsel %vm656_vm8, %v2609_v10, %v2739_v20  ;;  %v658_v9 = vsel %vm656_vm8, %v2739_v20, %v2609_v10  ;;  %v623_v20 = vmul.f32 %v2611_v11, %v617_v31  ;;  %v624_v10 = vmul.f32 %v2611_v11, %v618_v18  ;;  %v2971_v18 = vpop.permute.xlu0 %820  ;;  %1497 = vperm.xlu0 %2228, %v2710_v28  }
 0x1e9   : > { %v667_v41 = vmul.f32 %v2856_v47, %v658_v9  ;;  %v668_v46 = vmul.f32 %v2859_v55, %v657_v27  ;;  %v601_v11 = vadd.f32 %v599_v58, %v576_v56  ;;  %v3002_v56 = vrot.slane %v2700_v36, %v2746_v52  ;;  %1465 = vperm.xlu1 %2226, %v2710_v28  }
 0x1ea   : > { %v625_v21 = vadd.f32 %v623_v20, %v600_v6  ;;  %v4601_v6 = vmov 9  }
 0x1eb   : > { %v2779_v45 = vpop.permute.xlu1 %679  ;;  %v626_v58 = vadd.f32 %v624_v10, %v601_v11  ;;  %v673_v14 = vmul.f32 %v2627_v17, %v667_v41  ;;  %v674_v51 = vmul.f32 %v2627_v17, %v668_v46  ;;  %v3006_v17 = vrot.slane %v2705_v12, %v2746_v52 }
 0x1ec   : > { %v682_v63 = vsel %vm4429_vm9, %v2615_v13, %v2779_v45  ;;  %v683_v29 = vsel %vm4429_vm9, %v2779_v45, %v2615_v13  ;;  %v650_v10 = vadd.f32 %v648_v26, %v625_v21  ;;  %2229 = vset.pattern.permute.xlu0 %v4601_v6  ;;  %v3022_v11 = vpop.permute.xlu0 %995  ;;  %vm4536_vm9 = vcmp.lt.s32.totalorder %v2729_v22, 110 }
 0x1ed   : > { %v692_v27 = vmul.f32 %v2882_v61, %v683_v29  ;;  %v693_v9 = vmul.f32 %v2899_v50, %v682_v63  ;;  %v651_v41 = vadd.f32 %v649_v5, %v626_v58  ;;  %1525 = vperm.xlu0 %2229, %v2685_v34   ;;  %v4603_v58 = vld [vmem:[#allocation26_spill] sm:$0xff]  ;;  %2227 = vset.pattern.permute.xlu1 %v4600_v42 }
 0x1ee   : > { %v675_v26 = vadd.f32 %v673_v14, %v650_v10  ;;  %1493 = vperm.xlu1 %2227, %v2685_v34  }
 0x1ef   : > { %v2822_v53 = vpop.permute.xlu1 %704  ;;  %v698_v4 = vmul.f32 %v2635_v38, %v692_v27  ;;  %v699_v46 = vmul.f32 %v2635_v38, %v693_v9  ;;  %v676_v5 = vadd.f32 %v674_v51, %v651_v41  ;;  %v4604_v27 = vld [vmem:[#allocation4_spill] sm:$0xff] }
 0x1f0   : > { %v707_v13 = vsel %vm706_vm10, %v2621_v15, %v2822_v53  ;;  %v708_v45 = vsel %vm706_vm10, %v2822_v53, %v2621_v15  ;;  %v791_v9 = vmul.f32 %v4604_v27, %v4603_v58  ;;  %v4607_v41 = vld [vmem:[#allocation28_spill] sm:$0xff]  ;;  %v3053_v58 = vrot.slane %v2700_v36, %v2788_v59 }
 0x1f1   : > { %v717_v53 = vmul.f32 %v2923_v35, %v708_v45  ;;  %v718_v32 = vmul.f32 %v2927_v25, %v707_v13  ;;  %v4602_v13 = vld [vmem:[#allocation10_spill] sm:$0xff]  ;;  %v700_v51 = vadd.f32 %v698_v4, %v675_v26  ;;  %v3044_v33 = vrot.slane %v2705_v12, %v4607_v41  ;;  %v4611_v26 = vld [vmem:[#allocation15_spill] sm:$0xff] }
 0x1f2   : > { %4612 = vst [vmem:[#allocation4_spill] sm:$0xff] %v3053_v58  ;;  %2230 = vset.pattern.permute.xlu1 %v4601_v6 }
 0x1f3   : > { %v2861_v3 = vpop.permute.xlu1 %729  ;;  %v723_v45 = vmul.f32 %v4602_v13, %v717_v53  ;;  %v4606_v53 = vld [vmem:[#allocation12_spill] sm:$0xff]  ;;  %4609 = vst [vmem:[#allocation26_spill] sm:$0xff] %v3044_v33  ;;  %1529 = vperm.xlu1 %2230, %v2710_v28  }
 0x1f4   : > { %v732_v57 = vsel %vm4424_vm11, %v2625_v16, %v2861_v3  ;;  %v733_v15 = vsel %vm4424_vm11, %v2861_v3, %v2625_v16  ;;  %vm4443_vm11 = vcmp.lt.s32.totalorder %v2729_v22, 111 }
 0x1f5   : > { %v742_v63 = vmul.f32 %v2947_v8, %v733_v15  ;;  %v743_v29 = vmul.f32 %v2966_v48, %v732_v57  ;;  %v4605_v57 = vld [vmem:[#allocation27_spill] sm:$0xff]  ;;  %v701_v15 = vadd.f32 %v699_v46, %v676_v5  ;;  %v725_v4 = vadd.f32 %v723_v45, %v700_v51 }
 0x1f6   : > { %v792_v14 = vmul.f32 %v4604_v27, %v4605_v57  ;;  %v3057_v27 = vrot.slane %v2705_v12, %v2788_v59  ;;  %v3062_v45 = vrot.slane %v2700_v36, %v2809_v43 }
 0x1f7   : > { %v2902_v0 = vpop.permute.xlu1 %754  ;;  %v748_v10 = vmul.f32 %v4606_v53, %v742_v63 }
 0x1f8   : > { %v757_v16 = vsel %vm4444_vm12, %v2631_v19, %v2902_v0  ;;  %v758_v3 = vsel %vm4444_vm12, %v2902_v0, %v2631_v19  ;;  %v724_v19 = vmul.f32 %v4602_v13, %v718_v32  ;;  %v749_v32 = vmul.f32 %v4606_v53, %v743_v29  ;;  %v798_v13 = vpop.permute.xlu0 %797  ;;  %4613 = vst [vmem:[#allocation27_spill] sm:$0xff] %v3057_v27 }
 0x1f9   : > { %v767_v0 = vmul.f32 %v3002_v56, %v758_v3  ;;  %v768_v38 = vmul.f32 %v3006_v17, %v757_v16  ;;  %v3040_v16 = vrot.slane %v2700_v36, %v4607_v41  ;;  %v4610_v3 = vmov 10  }
 0x1fa   : > { %2232 = vset.pattern.permute.xlu0 %v4610_v3  ;;  %v726_v46 = vadd.f32 %v724_v19, %v701_v15  ;;  %v3067_v19 = vld [vmem:[%s4295_s9 + $0x20] sm:$0xff]  ;;  %v750_v51 = vadd.f32 %v748_v10, %v725_v4  ;;  %2231 = vset.pattern.permute.xlu1 %v4610_v3  ;;  %vm4535_vm12 = vcmp.lt.s32.totalorder %v2729_v22, 96 }
 0x1fb   : > { %v2939_v62 = vpop.permute.xlu1 %1020  ;;  %4608 = vst [vmem:[#allocation10_spill] sm:$0xff] %v3040_v16  ;;  %v773_v63 = vmul.f32 %v4611_v26, %v767_v0  ;;  %v774_v29 = vmul.f32 %v4611_v26, %v768_v38  ;;  %1561 = vperm.xlu0 %2232, %v2710_v28   ;;  %v3072_v0 = vld [vmem:[%s4295_s9 + $0x28] sm:$0xff]  ;;  %v4614_v38 = vld [vmem:[#allocation8_spill] sm:$0xff]  ;;  %v3090_v26 = vrot.slane %v2705_v12, %v2809_v43 }
 0x1fc   : > { %v800_v57 = vsel %vm799_vm13, %v4614_v38, %v798_v13  ;;  %v801_v36 = vsel %vm799_vm13, %v798_v13, %v4614_v38  ;;  %v751_v15 = vadd.f32 %v749_v32, %v726_v46  ;;  %v3095_v10 = vrot.slane %v3067_v19, %v2725_v24  ;;  %1557 = vperm.xlu1 %2231, %v2685_v34  }
 0x1fd   : > { %4615 = vst [vmem:[#allocation12_spill] sm:$0xff] %v3090_v26  ;;  %v775_v48 = vadd.f32 %v773_v63, %v750_v51  ;;  %v3099_v32 = vrot.slane %v3072_v0, %v2725_v24  ;;  %v4618_v46 = vmov 11   ;;  %v811_v12 = vmul.f32 %v3044_v33, %v801_v36  ;;  %v4628_v33 = vld [vmem:[#allocation17_spill] sm:$0xff] }
 0x1fe   : > { %v776_v13 = vadd.f32 %v774_v29, %v751_v15  ;;  %4616 = vst [vmem:[#allocation28_spill] sm:$0xff] %v3095_v10  ;;  %v4620_v29 = vld [vmem:[#allocation9_spill] sm:$0xff]  ;;  %v3121_v36 = vrot.slane %v3072_v0, %v2727_v23  ;;  %v3126_v51 = vrot.slane %v3067_v19, %v2737_v7  ;;  %v3130_v15 = vrot.slane %v3072_v0, %v2737_v7 }
 0x1ff   : > { %v2969_v31 = vpop.permute.xlu1 %1045  ;;  %4617 = vst [vmem:[#allocation15_spill] sm:$0xff] %v3099_v32  ;;  %2233 = vset.pattern.permute.xlu0 %v4618_v46  ;;  %v3144_v7 = vrot.slane %v3067_v19, %v2746_v52 }
 0x200   : > { %1589 = vperm.xlu0 %2233, %v2685_v34   ;;  %4621 = vst [vmem:[#allocation9_spill] sm:$0xff] %v3121_v36  ;;  %4622 = vst [vmem:[#allocation40_spill] sm:$0xff] %v3126_v51  ;;  %2234 = vset.pattern.permute.xlu1 %v4618_v46 }
 0x201   : > { %4623 = vst [vmem:[#allocation41_spill] sm:$0xff] %v3130_v15  ;;  %1593 = vperm.xlu1 %2234, %v2710_v28  }
 0x203   : > { %v823_v20 = vpop.permute.xlu1 %822 }
 0x204   : > { %v825_v53 = vsel %vm4423_vm14, %v2971_v18, %v823_v20  ;;  %v826_v42 = vsel %vm4423_vm14, %v823_v20, %v2971_v18  ;;  %v810_v18 = vmul.f32 %v3040_v16, %v800_v57  ;;  %vm4537_vm14 = vcmp.lt.s32.totalorder %v2729_v22, 112 }
 0x205   : > { %v3107_v20 = vrot.slane %v3067_v19, %v2727_v23  ;;  %v835_v63 = vmul.f32 %v3053_v58, %v825_v53  ;;  %v836_v24 = vmul.f32 %v3057_v27, %v826_v42  ;;  %v793_v53 = vadd.f32 %v791_v9, %v775_v48  ;;  %v4624_v42 = vld [vmem:[#allocation11_spill] sm:$0xff]  ;;  %v4627_v9 = vld [vmem:[#allocation5_spill] sm:$0xff] }
 0x206   : > { %4625 = vst [vmem:[#allocation11_spill] sm:$0xff] %v3144_v7  ;;  %v4626_v48 = vmov 12  }
 0x207   : > { %v848_v21 = vpop.permute.xlu1 %847  ;;  %4619 = vst [vmem:[#allocation8_spill] sm:$0xff] %v3107_v20  ;;  %2236 = vset.pattern.permute.xlu0 %v4626_v48  ;;  %v841_v16 = vmul.f32 %v4628_v33, %v835_v63  ;;  %2235 = vset.pattern.permute.xlu1 %v4626_v48 }
 0x208   : > { %v850_v38 = vsel %vm849_vm15, %v4620_v29, %v848_v21  ;;  %v851_v57 = vsel %vm849_vm15, %v848_v21, %v4620_v29  ;;  %v794_v21 = vadd.f32 %v792_v14, %v776_v13  ;;  %v816_v14 = vmul.f32 %v4627_v9, %v810_v18  ;;  %1613 = vperm.xlu0 %2236, %v2710_v28  }
 0x209   : > { %v860_v27 = vmul.f32 %v3062_v45, %v850_v38  ;;  %v861_v58 = vmul.f32 %v3090_v26, %v851_v57  ;;  %v817_v13 = vmul.f32 %v4627_v9, %v811_v12  ;;  %1609 = vperm.xlu1 %2235, %v2685_v34  }
 0x20a   : > { %v818_v12 = vadd.f32 %v816_v14, %v793_v53 }
 0x20b   : > { %v873_v5 = vpop.permute.xlu1 %872  ;;  %v819_v63 = vadd.f32 %v817_v13, %v794_v21  ;;  %v4633_v21 = vld [vmem:[#allocation23_spill] sm:$0xff] }
 0x20c   : > { %v875_v6 = vsel %vm4436_vm0, %v4624_v42, %v873_v5  ;;  %v876_v23 = vsel %vm4436_vm0, %v873_v5, %v4624_v42  ;;  %v842_v5 = vmul.f32 %v4628_v33, %v836_v24  ;;  %v4629_v42 = vld [vmem:[#allocation13_spill] sm:$0xff]  ;;  %v3163_v33 = vrot.slane %v3072_v0, %v2746_v52 }
 0x20d   : > { %v885_v38 = vmul.f32 %v3095_v10, %v875_v6  ;;  %v886_v57 = vmul.f32 %v3099_v32, %v876_v23  ;;  %vm4448_vm0 = vcmp.lt.s32.totalorder %v2729_v22, 98  ;;  %v4631_v6 = vld [vmem:[#allocation19_spill] sm:$0xff]  ;;  %v4632_v32 = vld [vmem:[#allocation14_spill] sm:$0xff]  ;;  %v3179_v14 = vrot.slane %v3067_v19, %v4633_v21 }
 0x20e   : > { %4630 = vst [vmem:[#allocation5_spill] sm:$0xff] %v3163_v33  ;;  %v866_v23 = vmul.f32 %v4631_v6, %v860_v27  ;;  %v867_v9 = vmul.f32 %v4631_v6, %v861_v58  ;;  %v3183_v27 = vrot.slane %v3072_v0, %v4633_v21  ;;  %v4636_v58 = vmov 13   ;;  %v4637_v6 = vld [vmem:[#allocation20_spill] sm:$0xff] }
 0x20f   : > { %v898_v4 = vpop.permute.xlu1 %897  ;;  %4634 = vst [vmem:[#allocation17_spill] sm:$0xff] %v3179_v14  ;;  %2237 = vset.pattern.permute.xlu0 %v4636_v58  ;;  %v843_v13 = vadd.f32 %v841_v16, %v818_v12  ;;  %v891_v10 = vmul.f32 %v4637_v6, %v885_v38  ;;  %v4640_v12 = vld [vmem:[#allocation21_spill] sm:$0xff]  ;;  %2238 = vset.pattern.permute.xlu1 %v4636_v58  ;;  %v4651_v58 = vmov 16  }
 0x210   : > { %v900_v26 = vsel %vm4537_vm14, %v4629_v42, %v898_v4  ;;  %v901_v18 = vsel %vm4537_vm14, %v898_v4, %v4629_v42  ;;  %4635 = vst [vmem:[#allocation13_spill] sm:$0xff] %v3183_v27  ;;  %v844_v42 = vadd.f32 %v842_v5, %v819_v63  ;;  %1641 = vperm.xlu0 %2237, %v2685_v34  }
 0x211   : > { %v910_v52 = vmul.f32 %v3107_v20, %v900_v26  ;;  %v911_v53 = vmul.f32 %v3121_v36, %v901_v18  ;;  %v4638_v18 = vld [vmem:[#allocation16_spill] sm:$0xff]  ;;  %v868_v5 = vadd.f32 %v866_v23, %v843_v13  ;;  %v3216_v13 = vrot.slane %v3072_v0, %v4607_v41  ;;  %1645 = vperm.xlu1 %2238, %v2710_v28  }
 0x212   : > { %v869_v38 = vadd.f32 %v867_v9, %v844_v42 }
 0x213   : > { %v923_v29 = vpop.permute.xlu1 %922  ;;  %v916_v63 = vmul.f32 %v4640_v12, %v910_v52  ;;  %4642 = vst [vmem:[#allocation14_spill] sm:$0xff] %v3216_v13  ;;  %v4643_v52 = vmov 14   ;;  %v893_v42 = vadd.f32 %v891_v10, %v868_v5  ;;  %v3238_v5 = vrot.slane %v3072_v0, %v2788_v59 }
 0x214   : > { %v925_v4 = vsel %vm4443_vm11, %v4632_v32, %v923_v29  ;;  %v926_v3 = vsel %vm4443_vm11, %v923_v29, %v4632_v32  ;;  %v892_v32 = vmul.f32 %v4637_v6, %v886_v57  ;;  %vm4447_vm11 = vcmp.lt.s32.totalorder %v2729_v22, 97  ;;  %2240 = vset.pattern.permute.xlu0 %v4643_v52 }
 0x215   : > { %v935_v26 = vmul.f32 %v3126_v51, %v925_v4  ;;  %v936_v29 = vmul.f32 %v3130_v15, %v926_v3  ;;  %v3201_v57 = vrot.slane %v3067_v19, %v4607_v41  ;;  %v917_v4 = vmul.f32 %v4640_v12, %v911_v53  ;;  %v4641_v3 = vld [vmem:[#allocation18_spill] sm:$0xff]  ;;  %v1064_v53 = vpop.permute.xlu0 %1063  ;;  %1677 = vperm.xlu0 %2240, %v2710_v28  }
 0x216   : > { %v894_v6 = vadd.f32 %v892_v32, %v869_v38  ;;  %v918_v32 = vadd.f32 %v916_v63, %v893_v42  ;;  %4646 = vst [vmem:[#allocation20_spill] sm:$0xff] %v3238_v5  ;;  %2239 = vset.pattern.permute.xlu1 %v4643_v52 }
 0x217   : > { %v948_v24 = vpop.permute.xlu1 %947  ;;  %4639 = vst [vmem:[#allocation19_spill] sm:$0xff] %v3201_v57  ;;  %1673 = vperm.xlu1 %2239, %v2685_v34  }
 0x218   : > { %v950_v36 = vsel %vm4536_vm9, %v4638_v18, %v948_v24  ;;  %v951_v21 = vsel %vm4536_vm9, %v948_v24, %v4638_v18  ;;  %v4644_v18 = vld [vmem:[#allocation22_spill] sm:$0xff] }
 0x219   : > { %v960_v23 = vmul.f32 %v3144_v7, %v950_v36  ;;  %v961_v9 = vmul.f32 %v3163_v33, %v951_v21  ;;  %v941_v12 = vmul.f32 %v4644_v18, %v935_v26  ;;  %v942_v15 = vmul.f32 %v4644_v18, %v936_v29 }
 0x21a   : > { %v919_v26 = vadd.f32 %v917_v4, %v894_v6  ;;  %v3234_v29 = vrot.slane %v3067_v19, %v2788_v59  ;;  %v3260_v18 = vrot.slane %v3067_v19, %v2809_v43 }
 0x21b   : > { %v973_v16 = vpop.permute.xlu1 %972  ;;  %v966_v38 = vmul.f32 %v2864_v60, %v960_v23 }
 0x21c   : > { %v975_v24 = vsel %vm4448_vm0, %v4641_v3, %v973_v16  ;;  %v976_v46 = vsel %vm4448_vm0, %v973_v16, %v4641_v3  ;;  %4645 = vst [vmem:[#allocation23_spill] sm:$0xff] %v3234_v29  ;;  %v967_v3 = vmul.f32 %v2864_v60, %v961_v9  ;;  %v944_v48 = vadd.f32 %v942_v15, %v919_v26  ;;  %v1089_v15 = vpop.permute.xlu0 %1088 }
 0x21d   : > { %v985_v36 = vmul.f32 %v3179_v14, %v975_v24  ;;  %v986_v21 = vmul.f32 %v3183_v27, %v976_v46  ;;  %v4647_v46 = vmov 15   ;;  %4648 = vst [vmem:[#allocation16_spill] sm:$0xff] %v3260_v18  ;;  %vm4449_vm0 = vcmp.lt.s32.totalorder %v2729_v22, 94 }
 0x21e   : > { %2241 = vset.pattern.permute.xlu0 %v4647_v46  ;;  %2242 = vset.pattern.permute.xlu1 %v4647_v46  ;;  %v4656_v46 = vmov 20  }
 0x21f   : > { %v998_v16 = vpop.permute.xlu1 %997  ;;  %v991_v59 = vmul.f32 %v2919_v1, %v985_v36  ;;  %v992_v42 = vmul.f32 %v2919_v1, %v986_v21  ;;  %1705 = vperm.xlu0 %2241, %v2685_v34   ;;  %v3264_v1 = vrot.slane %v3072_v0, %v2809_v43  ;;  %1709 = vperm.xlu1 %2242, %v2710_v28  }
 0x220   : > { %v1000_v41 = vsel %vm4447_vm11, %v3022_v11, %v998_v16  ;;  %v1001_v10 = vsel %vm4447_vm11, %v998_v16, %v3022_v11  ;;  %vm1049_vm11 = vcmp.lt.s32.totalorder %v2729_v22, 95  ;;  %v943_v11 = vadd.f32 %v941_v12, %v918_v32  ;;  %v4652_v32 = vld [vmem:[#allocation7_spill] sm:$0xff] }
 0x221   : > { %v1010_v63 = vmul.f32 %v3201_v57, %v1000_v41  ;;  %v1011_v4 = vmul.f32 %v3216_v13, %v1001_v10  ;;  %4649 = vst [vmem:[#allocation21_spill] sm:$0xff] %v3264_v1  ;;  %v969_v16 = vadd.f32 %v967_v3, %v944_v48  ;;  %v2105_v48 = vld [vmem:[%s4295_s9 + $0x30] ss:$0 sm:$0xff] }
 0x222   : > { %v968_v12 = vadd.f32 %v966_v38, %v943_v11 }
 0x223   : > { %v1023_v24 = vpop.permute.xlu1 %1022  ;;  %v994_v19 = vadd.f32 %v992_v42, %v969_v16  ;;  %2244 = vset.pattern.permute.xlu0 %v4651_v58  ;;  %2243 = vset.pattern.permute.xlu1 %v4651_v58 }
 0x224   : > { %v1025_v23 = vsel %vm4535_vm12, %v2939_v62, %v1023_v24  ;;  %v1026_v60 = vsel %vm4535_vm12, %v1023_v24, %v2939_v62  ;;  %v4650_v62 = vld [vmem:[#allocation6_spill] sm:$0xff]  ;;  %v993_v10 = vadd.f32 %v991_v59, %v968_v12  ;;  %1741 = vperm.xlu0 %2244, %v2710_v28   ;;  %1737 = vperm.xlu1 %2243, %v2685_v34  }
 0x225   : > { %v1035_v9 = vmul.f32 %v3234_v29, %v1025_v23  ;;  %v1036_v6 = vmul.f32 %v3238_v5, %v1026_v60  ;;  %v1016_v36 = vmul.f32 %v4650_v62, %v1010_v63  ;;  %v1017_v21 = vmul.f32 %v4650_v62, %v1011_v4  ;;  %v1071_v63 = vpop.permute.xlu0 %1070 }
 0x227   : > { %v1048_v41 = vpop.permute.xlu1 %1047  ;;  %v1041_v26 = vmul.f32 %v4652_v32, %v1035_v9  ;;  %v1042_v38 = vmul.f32 %v4652_v32, %v1036_v6  ;;  %v1018_v4 = vadd.f32 %v1016_v36, %v993_v10  ;;  %v1019_v24 = vadd.f32 %v1017_v21, %v994_v19 }
 0x228   : > { %v1050_v43 = vsel %vm1049_vm11, %v2969_v31, %v1048_v41  ;;  %v1051_v0 = vsel %vm1049_vm11, %v1048_v41, %v2969_v31  ;;  %v2106_v31 = vld [vmem:[%s4295_s9 + $0x38] ss:$0 sm:$0xff]  ;;  %v4653_v41 = vmov 17  }
 0x229   : > { %v1060_v3 = vmul.f32 %v3260_v18, %v1050_v43  ;;  %v1061_v11 = vmul.f32 %v3264_v1, %v1051_v0  ;;  %v1043_v6 = vadd.f32 %v1041_v26, %v1018_v4  ;;  %v1044_v12 = vadd.f32 %v1042_v38, %v1019_v24  ;;  %2245 = vset.pattern.permute.xlu0 %v4653_v41  ;;  %v1098_v10 = vpop.permute.xlu0 %1097  ;;  %v4720_v18 = vld [vmem:[#allocation29_spill] sm:$0xff] }
 0x22a   : > { %1769 = vperm.xlu0 %2245, %v2685_v34   ;;  %v4654_v0 = vmov 18   ;;  %2246 = vset.pattern.permute.xlu1 %v4653_v41  ;;  %v4658_v4 = vmov 23   ;;  %v4659_v24 = vmov 24  }
 0x22b   : > { %v1066_v59 = vmul.f32 %v1064_v53, %v1060_v3  ;;  %v1067_v42 = vmul.f32 %v1064_v53, %v1061_v11  ;;  %v1073_v23 = vpop.permute.xlu1 %1072  ;;  %1773 = vperm.xlu1 %2246, %v2710_v28   ;;  %v4657_v11 = vmov 22  }
 0x22c   : > { %v1075_v60 = vsel %vm4449_vm0, %v1071_v63, %v1073_v23  ;;  %v1076_v9 = vsel %vm4449_vm0, %v1073_v23, %v1071_v63  ;;  %vm1130_vm0 = vcmask 130048  }
 0x22d   : > { %v1085_v16 = vmul.f32 %v2105_v48, %v1075_v60  ;;  %v1086_v62 = vmul.f32 %v2106_v31, %v1076_v9  ;;  %v1069_v53 = vadd.f32 %v1067_v42, %v1044_v12  ;;  %v1068_v21 = vadd.f32 %v1066_v59, %v1043_v6  ;;  %v4662_v12 = vld [vmem:[#allocation2_spill] sm:$0xff] }
 0x22e   : > { %2248 = vset.pattern.permute.xlu0 %v4654_v0  ;;  %v4660_v59 = vmov 21   ;;  %v4661_v6 = vmov 0  }
 0x22f   : > { %v1091_v52 = vmul.f32 %v1089_v15, %v1085_v16  ;;  %v1092_v36 = vmul.f32 %v1089_v15, %v1086_v62  ;;  %1805 = vperm.xlu0 %2248, %v2710_v28   ;;  %v4655_v15 = vmov 19   ;;  %2247 = vset.pattern.permute.xlu1 %v4654_v0  ;;  %v4663_v62 = vld [vmem:[#allocation3_spill] sm:$0xff]  ;;  %v3346_v0 = vpop.permute.xlu0 %1269 }
 0x230   : > { %1801 = vperm.xlu1 %2247, %v2685_v34  }
 0x231   : > { %v1094_v19 = vadd.f32 %v1092_v36, %v1069_v53  ;;  %v1093_v43 = vadd.f32 %v1091_v52, %v1068_v21  ;;  %v1116_v52 = vld [vmem:[%s4291_s5] sm:$0xff]  ;;  %v4664_v36 = vmov 0.0   ;;  %v1117_v53 = vld [vmem:[%s4291_s5 + $0x8] sm:$0xff] }
 0x233   : > { %v1100_v32 = vadd.f32 %v1098_v10, %v1093_v43  ;;  %v1101_v26 = vadd.f32 %v1098_v10, %v1094_v19  ;;  %2249 = vset.pattern.permute.xlu0 %v4655_v15 }
 0x234   : > { %1833 = vperm.xlu0 %2249, %v2685_v34   ;;  %2250 = vset.pattern.permute.xlu1 %v4655_v15 }
 0x235   : > { %v2107_v38 = vmul.f32 -1.442695, %v1100_v32  ;;  %v2108_v3 = vmul.f32 -1.442695, %v1101_v26  ;;  %1837 = vperm.xlu1 %2250, %v2710_v28  }
 0x237   : > { %2270 = vpow2.f32 %v2107_v38 }
 0x238   : > { %2272 = vpow2.f32 %v2108_v3  ;;  %2252 = vset.pattern.permute.xlu0 %v4656_v46 }
 0x239   : > { %1869 = vperm.xlu0 %2252, %v2710_v28   ;;  %2251 = vset.pattern.permute.xlu1 %v4656_v46 }
 0x23a   : > { %1865 = vperm.xlu1 %2251, %v2685_v34  }
 0x23c   : > { %v1123_v21 = vpop.permute.xlu1 %1122 }
 0x23d   : > { %2254 = vset.pattern.permute.xlu0 %v4657_v11 }
 0x23e   : > { %1929 = vperm.xlu0 %2254, %v2685_v34   ;;  %2253 = vset.pattern.permute.xlu1 %v4660_v59 }
 0x23f   : > { %1897 = vperm.xlu1 %2253, %v2685_v34  }
 0x240   : > { %v1128_v10 = vpop.permute.xlu1 %1127 }
 0x241   : > { %v2271_v58 = vpop.eup %2270 }
 0x242   : > { %v2273_v48 = vpop.eup %2272  ;;  %v1108_v31 = vadd.f32 1.0, %v2271_v58  ;;  %2257 = vset.pattern.permute.xlu0 %v4658_v4 }
 0x243   : > { %v1109_v63 = vadd.f32 1.0, %v2273_v48  ;;  %1965 = vperm.xlu0 %2257, %v2710_v28   ;;  %1901 = vperm.xlu1 %2253, %v2710_v28  }
 0x244   : > { %2274 = vrcp.f32 %v1108_v31  ;;  %v3342_v19 = vpop.permute.xlu1 %1241 }
 0x245   : > { %2276 = vrcp.f32 %v1109_v63  ;;  %4665 = vst [vmem:[#allocation18_spill] sm:$0xff] %v3342_v19 }
 0x247   : > { %2258 = vset.pattern.permute.xlu0 %v4659_v24  ;;  %2255 = vset.pattern.permute.xlu1 %v4657_v11 }
 0x248   : > { %1993 = vperm.xlu0 %2258, %v2685_v34   ;;  %1933 = vperm.xlu1 %2255, %v2710_v28  }
 0x249   : > { %v3344_v43 = vpop.permute.xlu1 %1273 }
 0x24a   : > { %4666 = vst [vmem:[#allocation22_spill] sm:$0xff] %v3344_v43 }
 0x24c   : > { %2259 = vset.pattern.permute.xlu0 %v4661_v6  ;;  %2256 = vset.pattern.permute.xlu1 %v4658_v4  ;;  %v2278_v4 = vld [vmem:[%s2430_s22] sm:$0xff] }
 0x24d   : > { %1236 = vperm.xlu0 %2259, %v2685_v34   ;;  %1961 = vperm.xlu1 %2256, %v2685_v34  }
 0x24e   : > { %v2275_v42 = vpop.eup %2274 }
 0x24f   : > { %v2277_v23 = vpop.eup %2276  ;;  %v1114_v60 = vmul.f32 %v2275_v42, %v1100_v32  ;;  %v3348_v32 = vpop.permute.xlu1 %1301  ;;  %v2279_v42 = vld [vmem:[%s2430_s22 + $0x8] sm:$0xff] }
 0x250   : > { %v1115_v9 = vmul.f32 %v2277_v23, %v1101_v26  ;;  %v3350_v26 = vpop.permute.xlu0 %1305 }
 0x251   : > { %v2125_v16 = vpack.c.bf16 %v1114_v60, %v4662_v12  ;;  %2260 = vset.pattern.permute.xlu1 %v4659_v24  ;;  %4667 = vst [vmem:[#allocation6_spill] sm:$0xff] %v3350_v26 }
 0x252   : > { %v2123_v41 = vpack.c.bf16 %v1115_v9, %v4663_v62  ;;  %1997 = vperm.xlu1 %2260, %v2710_v28   ;;  %v2280_v62 = vld [vmem:[%s2430_s22 + $0x10] sm:$0xff] }
 0x253   : > { %v3352_v34 = vpop.permute.xlu1 %1337 }
 0x254   : > { %2124 = vmatprep.subr.bf16.mxu1 %v2123_v41  ;;  %4668 = vst [vmem:[#allocation7_spill] sm:$0xff] %v3352_v34  ;;  %v3354_v38 = vpop.permute.xlu0 %1333 }
 0x255   : > { %2126 = vmatpush1.bf16.msra.mxu1 %v2125_v16 }
 0x256   : > { %2261 = vset.pattern.permute.xlu1 %v4661_v6 }
 0x258   : > { %2109 = vmatmul.mubr.msk.f32.vlgmr.msra.gmra.mrb[0].mxu1 %vm1130_vm0, %v1116_v52  ;;  %v3356_v28 = vpop.permute.xlu1 %1365  ;;  %v3358_v3 = vpop.permute.xlu0 %1369  ;;  %v2281_v52 = vld [vmem:[%s2430_s22 + $0x18] sm:$0xff] }
 0x259   : > { %1207 = vmatprep.mubr.f32.mxu1 %v4664_v36  ;;  %4669 = vst [vmem:[#allocation2_spill] sm:$0xff] %v3358_v3 }
 0x25c   : > { %2110 = vmatmul.mubr.msk.f32.gmra.mrb[2].mxu1 %vm1130_vm0, %v1117_v53  ;;  %v3362_v46 = vpop.permute.xlu0 %1397  ;;  %vm4741_vm0 = vcmp.lt.s32.totalorder %v2729_v22, 1 }
 0x25d   : > { %v3360_v15 = vpop.permute.xlu1 %1401 }
 0x25e   : > { %4670 = vst [vmem:[#allocation3_spill] sm:$0xff] %v3360_v15 }
 0x260   : > { %v3383_v59 = vpop.permute.xlu0 %1433 }
 0x261   : > { %4672 = vst [vmem:[#allocation42_spill] sm:$0xff] %v3383_v59 }
 0x262   : > { %v3364_v58 = vpop.permute.xlu1 %1429 }
 0x268   : > { %v3387_v9 = vpop.permute.xlu1 %1465 }
 0x269   : > { %4673 = vst [vmem:[#allocation43_spill] sm:$0xff] %v3387_v9 }
 0x26d   : > { %v3405_v53 = vpop.permute.xlu1 %1493 }
 0x32b   : > { %v1203_v11 = vpop.f32.mrb[0].mxu1 }
 0x32c   : > { %v3366_v48 = vadd.f32 %v1203_v11, %v1123_v21  ;;  %v1205_v31 = vpop.f32.mrb[1].mxu1 }
 0x32d   : > { %v3375_v63 = vadd.f32 %v1205_v31, %v1123_v21  ;;  %v3407_v21 = vpop.permute.xlu0 %1461 }
 0x32e   : > { %v2022_v24 = vadd.f32 %v2278_v4, %v3366_v48  ;;  %1284 = vrot.lane.b32.xlu1 %v3366_v48, %s4467_s25  ;;  %1218 = vrot.lane.b32.xlu0 %v3366_v48, %s4457_s26 }
 0x32f   : > { %v2023_v23 = vadd.f32 %v2279_v42, %v3375_v63  ;;  %v1209_v60 = vpop.f32.mrb[2].mxu1 }
 0x330   : > { %2026 = vst [vmem:[%s3373_s19] sm:$0xff] %v2022_v24  ;;  %v3390_v6 = vadd.f32 %v1209_v60, %v1128_v10  ;;  %v1211_v12 = vpop.f32.mrb[3].mxu1 }
 0x331   : > { %2027 = vst [vmem:[%s3373_s19 + $0x8] sm:$0xff] %v2023_v23  ;;  %v3393_v16 = vadd.f32 %v1211_v12, %v1128_v10  ;;  %v3417_v10 = vpop.permute.xlu1 %1529  ;;  %v3419_v11 = vpop.permute.xlu0 %1497 }
 0x332   : > { %4674 = vst [vmem:[#allocation44_spill] sm:$0xff] %v3390_v6  ;;  %v2024_v41 = vadd.f32 %v2280_v62, %v3390_v6  ;;  %1316 = vrot.lane.b32.xlu1 %v3366_v48, %s4452_s27  ;;  %1252 = vrot.lane.b32.xlu0 %v3366_v48, %s4455_s28  ;;  %4675 = vst [vmem:[#allocation45_spill] sm:$0xff] %v3417_v10 }
 0x333   : > { %v2025_v36 = vadd.f32 %v2281_v52, %v3393_v16  ;;  %4676 = vst [vmem:[#allocation46_spill] sm:$0xff] %v3419_v11 }
 0x334   : > { %2028 = vst [vmem:[%s3373_s19 + $0x10] sm:$0xff] %v2024_v41 }
 0x335   : > { %2029 = vst [vmem:[%s3373_s19 + $0x18] sm:$0xff] %v2025_v36  ;;  %v3425_v31 = vpop.permute.xlu1 %1557  ;;  %v3427_v4 = vpop.permute.xlu0 %1525 }
 0x336   : > { %1348 = vrot.lane.b32.xlu1 %v3366_v48, %s4473_s29  ;;  %1222 = vrot.lane.b32.xlu0 %v3375_v63, %s4457_s26  ;;  %s4694_s26 = smov 96  }
 0x339   : > { %v3437_v24 = vpop.permute.xlu1 %1593  ;;  %v3439_v42 = vpop.permute.xlu0 %1561 }
 0x33a   : > { %1380 = vrot.lane.b32.xlu1 %v3366_v48, %s4450_s30  ;;  %1256 = vrot.lane.b32.xlu0 %v3375_v63, %s4455_s28  ;;  %4679 = vst [vmem:[#allocation47_spill] sm:$0xff] %v3437_v24  ;;  %4680 = vst [vmem:[#allocation48_spill] sm:$0xff] %v3439_v42  ;;  %s4693_s28 = smov 113  }
 0x33d   : > { %v3445_v23 = vpop.permute.xlu1 %1609  ;;  %v3447_v60 = vpop.permute.xlu0 %1589 }
 0x33e   : > { %1412 = vrot.lane.b32.xlu1 %v3366_v48, %s4677_s14  ;;  %1320 = vrot.lane.b32.xlu0 %v3375_v63, %s4452_s27  ;;  %s4690_s27 = smov 110  }
 0x341   : > { %v3457_v12 = vpop.permute.xlu1 %1645  ;;  %v3459_v62 = vpop.permute.xlu0 %1613 }
 0x342   : > { %1444 = vrot.lane.b32.xlu1 %v3366_v48, %s4678_s15  ;;  %1384 = vrot.lane.b32.xlu0 %v3375_v63, %s4450_s30  ;;  %4684 = vst [vmem:[#allocation49_spill] sm:$0xff] %v3457_v12  ;;  %4685 = vst [vmem:[#allocation50_spill] sm:$0xff] %v3459_v62  ;;  %s4689_s30 = smov 112  }
 0x345   : > { %v3465_v41 = vpop.permute.xlu1 %1673  ;;  %v3467_v52 = vpop.permute.xlu0 %1641 }
 0x346   : > { %1476 = vrot.lane.b32.xlu1 %v3366_v48, %s4461_s17  ;;  %1448 = vrot.lane.b32.xlu0 %v3375_v63, %s4678_s15  ;;  %4687 = vst [vmem:[#allocation51_spill] sm:$0xff] %v3465_v41  ;;  %4688 = vst [vmem:[#allocation52_spill] sm:$0xff] %v3467_v52  ;;  %s4697_s17 = smov 111  }
 0x349   : > { %v3477_v36 = vpop.permute.xlu1 %1709  ;;  %v3479_v12 = vpop.permute.xlu0 %1677 }
 0x34a   : > { %1508 = vrot.lane.b32.xlu1 %v3366_v48, %s4681_s16  ;;  %1512 = vrot.lane.b32.xlu0 %v3375_v63, %s4681_s16  ;;  %4691 = vst [vmem:[#allocation53_spill] sm:$0xff] %v3477_v36  ;;  %4692 = vst [vmem:[#allocation54_spill] sm:$0xff] %v3479_v12 }
 0x34d   : > { %v3485_v24 = vpop.permute.xlu1 %1737  ;;  %v3487_v62 = vpop.permute.xlu0 %1705 }
 0x34e   : > { %1540 = vrot.lane.b32.xlu1 %v3366_v48, %s4682_s12  ;;  %1576 = vrot.lane.b32.xlu0 %v3375_v63, %s4557_s11  ;;  %4695 = vst [vmem:[#allocation55_spill] sm:$0xff] %v3485_v24  ;;  %4696 = vst [vmem:[#allocation56_spill] sm:$0xff] %v3487_v62 }
 0x351   : > { %v3497_v36 = vpop.permute.xlu1 %1773  ;;  %v3499_v12 = vpop.permute.xlu0 %1741 }
 0x352   : > { %1572 = vrot.lane.b32.xlu1 %v3366_v48, %s4557_s11  ;;  %1628 = vrot.lane.b32.xlu0 %v3375_v63, %s4683_s24  ;;  %4698 = vst [vmem:[#allocation57_spill] sm:$0xff] %v3497_v36  ;;  %4699 = vst [vmem:[#allocation58_spill] sm:$0xff] %v3499_v12 }
 0x355   : > { %v3505_v42 = vpop.permute.xlu1 %1801  ;;  %v3507_v10 = vpop.permute.xlu0 %1769 }
 0x356   : > { %1624 = vrot.lane.b32.xlu1 %v3366_v48, %s4683_s24  ;;  %1692 = vrot.lane.b32.xlu0 %v3375_v63, %s4686_s20  ;;  %4700 = vst [vmem:[#allocation59_spill] sm:$0xff] %v3505_v42  ;;  %4701 = vst [vmem:[#allocation60_spill] sm:$0xff] %v3507_v10 }
 0x359   : > { %v3517_v36 = vpop.permute.xlu1 %1837  ;;  %v3519_v12 = vpop.permute.xlu0 %1805 }
 0x35a   : > { %1656 = vrot.lane.b32.xlu1 %v3366_v48, %s4558_s21  ;;  %1756 = vrot.lane.b32.xlu0 %v3375_v63, %s4689_s30  ;;  %4704 = vst [vmem:[#allocation61_spill] sm:$0xff] %v3517_v36  ;;  %4705 = vst [vmem:[#allocation62_spill] sm:$0xff] %v3519_v12 }
 0x35d   : > { %v3525_v9 = vpop.permute.xlu1 %1865  ;;  %v3527_v11 = vpop.permute.xlu0 %1833 }
 0x35e   : > { %1688 = vrot.lane.b32.xlu1 %v3366_v48, %s4686_s20  ;;  %1820 = vrot.lane.b32.xlu0 %v3375_v63, %s4690_s27  ;;  %4706 = vst [vmem:[#allocation63_spill] sm:$0xff] %v3525_v9  ;;  %4707 = vst [vmem:[#allocation64_spill] sm:$0xff] %v3527_v11  ;;  %v4721_v9 = vld [vmem:[#allocation30_spill] sm:$0xff] }
 0x361   : > { %v3537_v36 = vpop.permute.xlu1 %1897  ;;  %v3539_v12 = vpop.permute.xlu0 %1869 }
 0x362   : > { %1720 = vrot.lane.b32.xlu1 %v3366_v48, %s4693_s28  ;;  %1916 = vrot.lane.b32.xlu0 %v3375_v63, %s4694_s26  ;;  %4709 = vst [vmem:[#allocation65_spill] sm:$0xff] %v3537_v36  ;;  %4710 = vst [vmem:[#allocation66_spill] sm:$0xff] %v3539_v12 }
 0x365   : > { %v3545_v15 = vpop.permute.xlu1 %1901  ;;  %v3547_v59 = vpop.permute.xlu0 %1929 }
 0x366   : > { %1752 = vrot.lane.b32.xlu1 %v3366_v48, %s4689_s30  ;;  %1286 = vrot.lane.b32.xlu0 %v3390_v6, %s4467_s25  ;;  %s4702_s25 = smov 98   ;;  %4712 = vst [vmem:[#allocation67_spill] sm:$0xff] %v3545_v15  ;;  %4713 = vst [vmem:[#allocation68_spill] sm:$0xff] %v3547_v59 }
 0x369   : > { %v3557_v12 = vpop.permute.xlu1 %1933  ;;  %v3559_v3 = vpop.permute.xlu0 %1965 }
 0x36a   : > { %1784 = vrot.lane.b32.xlu1 %v3366_v48, %s4697_s17  ;;  %1350 = vrot.lane.b32.xlu0 %v3390_v6, %s4473_s29  ;;  %s4708_s29 = smov 95   ;;  %4715 = vst [vmem:[#allocation69_spill] sm:$0xff] %v3557_v12  ;;  %4716 = vst [vmem:[#allocation70_spill] sm:$0xff] %v3559_v3 }
 0x36d   : > { %v3565_v15 = vpop.permute.xlu1 %1961  ;;  %v3567_v34 = vpop.permute.xlu0 %1993 }
 0x36e   : > { %1816 = vrot.lane.b32.xlu1 %v3366_v48, %s4690_s27  ;;  %1414 = vrot.lane.b32.xlu0 %v3390_v6, %s4677_s14  ;;  %4717 = vst [vmem:[#allocation71_spill] sm:$0xff] %v3565_v15  ;;  %4718 = vst [vmem:[#allocation72_spill] sm:$0xff] %v3567_v34 }
 0x371   : > { %v3577_v3 = vpop.permute.xlu1 %1997  ;;  %v1237_v12 = vpop.permute.xlu0 %1236 }
 0x372   : > { %1848 = vrot.lane.b32.xlu1 %v3366_v48, %s4702_s25  ;;  %1478 = vrot.lane.b32.xlu0 %v3390_v6, %s4703_s0  ;;  %4719 = vst [vmem:[#allocation73_spill] sm:$0xff] %v3577_v3 }
 0x376   : > { %1880 = vrot.lane.b32.xlu1 %v3366_v48, %s4559_s23  ;;  %1542 = vrot.lane.b32.xlu0 %v3390_v6, %s4682_s12 }
 0x37a   : > { %1912 = vrot.lane.b32.xlu1 %v3366_v48, %s4694_s26  ;;  %1658 = vrot.lane.b32.xlu0 %v3390_v6, %s4558_s21 }
 0x37e   : > { %1944 = vrot.lane.b32.xlu1 %v3366_v48, %s4708_s29  ;;  %1722 = vrot.lane.b32.xlu0 %v3390_v6, %s4693_s28 }
 0x382   : > { %1976 = vrot.lane.b32.xlu1 %v3366_v48, %s4564_s18  ;;  %1786 = vrot.lane.b32.xlu0 %v3390_v6, %s4697_s17 }
 0x386   : > { %1288 = vrot.lane.b32.xlu1 %v3375_v63, %s4711_s1  ;;  %1850 = vrot.lane.b32.xlu0 %v3390_v6, %s4702_s25 }
 0x38a   : > { %1352 = vrot.lane.b32.xlu1 %v3375_v63, %s4714_s2  ;;  %1882 = vrot.lane.b32.xlu0 %v3390_v6, %s4559_s23 }
 0x38e   : > { %1416 = vrot.lane.b32.xlu1 %v3375_v63, %s4677_s14  ;;  %1946 = vrot.lane.b32.xlu0 %v3390_v6, %s4708_s29 }
 0x392   : > { %1480 = vrot.lane.b32.xlu1 %v3375_v63, %s4703_s0  ;;  %1978 = vrot.lane.b32.xlu0 %v3390_v6, %s4564_s18 }
 0x396   : > { %1544 = vrot.lane.b32.xlu1 %v3375_v63, %s4682_s12  ;;  %1290 = vrot.lane.b32.xlu0 %v3393_v16, %s4711_s1  ;;  %s4725_s1 = smov 33  }
 0x39a   : > { %1660 = vrot.lane.b32.xlu1 %v3375_v63, %s4558_s21  ;;  %1354 = vrot.lane.b32.xlu0 %v3393_v16, %s4714_s2  ;;  %s4726_s2 = smov 31  }
 0x39e   : > { %1724 = vrot.lane.b32.xlu1 %v3375_v63, %s4693_s28  ;;  %1418 = vrot.lane.b32.xlu0 %v3393_v16, %s4677_s14 }
 0x3a0   : > { %v3583_v34 = vpop.permute.xlu1 %1284  ;;  %v1219_v43 = vpop.permute.xlu0 %1218 }
 0x3a2   : > { %1788 = vrot.lane.b32.xlu1 %v3375_v63, %s4697_s17  ;;  %1482 = vrot.lane.b32.xlu0 %v3393_v16, %s4703_s0  ;;  %s4724_s0 = smov 34  }
 0x3a4   : > { %v3589_v19 = vpop.permute.xlu1 %1316  ;;  %v1253_v26 = vpop.permute.xlu0 %1252 }
 0x3a6   : > { %1852 = vrot.lane.b32.xlu1 %v3375_v63, %s4702_s25  ;;  %1546 = vrot.lane.b32.xlu0 %v3393_v16, %s4682_s12 }
 0x3a8   : > { %v3595_v3 = vpop.permute.xlu1 %1348  ;;  %v1223_v15 = vpop.permute.xlu0 %1222 }
 0x3a9   : > { %v1226_v59 = vsel %vm480_vm1, %v1219_v43, %v1223_v15  ;;  %v1228_v1 = vsel %vm480_vm1, %v1223_v15, %v1219_v43 }
 0x3aa   : > { %v1230_v36 = vmul.f32 %v1228_v1, %v4720_v18  ;;  %v1231_v5 = vmul.f32 %v1226_v59, %v4721_v9  ;;  %1884 = vrot.lane.b32.xlu1 %v3375_v63, %s4559_s23  ;;  %1662 = vrot.lane.b32.xlu0 %v3393_v16, %s4558_s21  ;;  %v4722_v1 = vld [vmem:[#allocation31_spill] sm:$0xff]  ;;  %v4723_v59 = vld [vmem:[#allocation32_spill] sm:$0xff] }
 0x3ac   : > { %v1244_v29 = vmul.f32 %v1237_v12, %v1230_v36  ;;  %v1245_v13 = vmul.f32 %v1237_v12, %v1231_v5  ;;  %v3607_v57 = vpop.permute.xlu1 %1380  ;;  %v1257_v11 = vpop.permute.xlu0 %1256 }
 0x3ad   : > { %v1260_v27 = vsel %vm506_vm2, %v1253_v26, %v1257_v11  ;;  %v1262_v43 = vsel %vm506_vm2, %v1257_v11, %v1253_v26 }
 0x3ae   : > { %v1264_v15 = vmul.f32 %v1262_v43, %v4722_v1  ;;  %v1265_v9 = vmul.f32 %v1260_v27, %v4723_v59  ;;  %1948 = vrot.lane.b32.xlu1 %v3375_v63, %s4708_s29  ;;  %1726 = vrot.lane.b32.xlu0 %v3393_v16, %s4693_s28  ;;  %s4727_s28 = smov 18  }
 0x3b0   : > { %v1276_v5 = vmul.f32 %v3346_v0, %v1264_v15  ;;  %v1277_v12 = vmul.f32 %v3346_v0, %v1265_v9  ;;  %v3621_v36 = vpop.permute.xlu1 %1412  ;;  %v3623_v18 = vpop.permute.xlu0 %1320 }
 0x3b2   : > { %v3625_v14 = vadd.f32 %v1276_v5, %v1244_v29  ;;  %v3627_v26 = vadd.f32 %v1277_v12, %v1245_v13  ;;  %1220 = vrot.lane.b32.xlu1 %v3390_v6, %s4724_s0  ;;  %1790 = vrot.lane.b32.xlu0 %v3393_v16, %s4697_s17  ;;  %v1217_v12 = vld [vmem:[%s4294_s8 + $0x8] sm:$0xff] }
 0x3b4   : > { %v3633_v27 = vpop.permute.xlu1 %1444  ;;  %v3635_v11 = vpop.permute.xlu0 %1384 }
 0x3b6   : > { %1254 = vrot.lane.b32.xlu1 %v3390_v6, %s4725_s1  ;;  %1854 = vrot.lane.b32.xlu0 %v3393_v16, %s4702_s25 }
 0x3b8   : > { %v3641_v29 = vpop.permute.xlu1 %1476  ;;  %v3643_v13 = vpop.permute.xlu0 %1448 }
 0x3ba   : > { %1318 = vrot.lane.b32.xlu1 %v3390_v6, %s4726_s2  ;;  %1886 = vrot.lane.b32.xlu0 %v3393_v16, %s4559_s23 }
 0x3bc   : > { %v3649_v0 = vpop.permute.xlu1 %1508  ;;  %v3651_v9 = vpop.permute.xlu0 %1512 }
 0x3be   : > { %1382 = vrot.lane.b32.xlu1 %v3390_v6, %s4727_s28  ;;  %1950 = vrot.lane.b32.xlu0 %v3393_v16, %s4708_s29 }
 0x3c0   : > { %v3657_v43 = vpop.permute.xlu1 %1540  ;;  %v3659_v15 = vpop.permute.xlu0 %1576 }
 0x3c2   : > { %1446 = vrot.lane.b32.xlu1 %v3390_v6, %s4678_s15  ;;  %1982 = vrot.lane.b32.xlu0 %v3393_v16, %s4564_s18 }
 0x3c4   : > { %v3665_v5 = vpop.permute.xlu1 %1572  ;;  %v1629_v59 = vpop.permute.xlu0 %1628 }
 0x3c6   : > { %1510 = vrot.lane.b32.xlu1 %v3390_v6, %s4681_s16  ;;  %2015 = vperm.xlu0 %2259, %v1217_v12  }
 0x3c8   : > { %v1625_v1 = vpop.permute.xlu1 %1624  ;;  %v1693_v7 = vpop.permute.xlu0 %1692 }
 0x3c9   : > { %v3674_v42 = vsel %vm799_vm13, %v1625_v1, %v1629_v59  ;;  %v3678_v10 = vsel %vm799_vm13, %v1629_v59, %v1625_v1 }
 0x3ca   : > { %1574 = vrot.lane.b32.xlu1 %v3390_v6, %s4557_s11 }
 0x3cc   : > { %v3682_v33 = vpop.permute.xlu1 %1656  ;;  %v1757_v59 = vpop.permute.xlu0 %1756 }
 0x3ce   : > { %1626 = vrot.lane.b32.xlu1 %v3390_v6, %s4683_s24 }
 0x3d0   : > { %v1689_v12 = vpop.permute.xlu1 %1688 }
 0x3d1   : > { %v3688_v24 = vsel %vm849_vm15, %v1689_v12, %v1693_v7  ;;  %v3692_v51 = vsel %vm849_vm15, %v1693_v7, %v1689_v12  ;;  %v1821_v12 = vpop.permute.xlu0 %1820 }
 0x3d2   : > { %1690 = vrot.lane.b32.xlu1 %v3390_v6, %s4686_s20 }
 0x3d4   : > { %v3696_v1 = vpop.permute.xlu1 %1720 }
 0x3d5   : > { %4728 = vst [vmem:[#allocation74_spill] sm:$0xff] %v3696_v1 }
 0x3d6   : > { %1754 = vrot.lane.b32.xlu1 %v3390_v6, %s4689_s30 }
 0x3d8   : > { %v1753_v20 = vpop.permute.xlu1 %1752 }
 0x3d9   : > { %v3702_v62 = vsel %vm4537_vm14, %v1753_v20, %v1757_v59  ;;  %v3706_v41 = vsel %vm4537_vm14, %v1757_v59, %v1753_v20 }
 0x3da   : > { %4729 = vst [vmem:[#allocation75_spill] sm:$0xff] %v3702_v62  ;;  %4730 = vst [vmem:[#allocation76_spill] sm:$0xff] %v3706_v41  ;;  %1818 = vrot.lane.b32.xlu1 %v3390_v6, %s4690_s27 }
 0x3dc   : > { %v3710_v7 = vpop.permute.xlu1 %1784 }
 0x3de   : > { %1914 = vrot.lane.b32.xlu1 %v3390_v6, %s4694_s26  ;;  %v1917_v6 = vpop.permute.xlu0 %1916 }
 0x3e0   : > { %v1817_v52 = vpop.permute.xlu1 %1816 }
 0x3e1   : > { %v3716_v1 = vsel %vm4536_vm9, %v1817_v52, %v1821_v12  ;;  %v3720_v62 = vsel %vm4536_vm9, %v1821_v12, %v1817_v52  ;;  %vm4743_vm9 = vcmp.lt.s32.totalorder %v2729_v22, 15 }
 0x3e2   : > { %4731 = vst [vmem:[#allocation77_spill] sm:$0xff] %v3716_v1  ;;  %4732 = vst [vmem:[#allocation78_spill] sm:$0xff] %v3720_v62  ;;  %1224 = vrot.lane.b32.xlu1 %v3393_v16, %s4724_s0 }
 0x3e3   : > { %vm4744_vm14 = vmmov %vm4743_vm9 }
 0x3e4   : > { %v3724_v20 = vpop.permute.xlu1 %1848 }
 0x3e5   : > { %4733 = vst [vmem:[#allocation79_spill] sm:$0xff] %v3724_v20 }
 0x3e6   : > { %1258 = vrot.lane.b32.xlu1 %v3393_v16, %s4725_s1 }
 0x3e8   : > { %v3728_v59 = vpop.permute.xlu1 %1880 }
 0x3e9   : > { %4734 = vst [vmem:[#allocation80_spill] sm:$0xff] %v3728_v59  ;;  %v1324_v59 = vsel %vm556_vm4, %v3589_v19, %v3623_v18 }
 0x3ea   : > { %1322 = vrot.lane.b32.xlu1 %v3393_v16, %s4726_s2 }
 0x3ec   : > { %v1913_v41 = vpop.permute.xlu1 %1912 }
 0x3ed   : > { %v3734_v1 = vsel %vm4535_vm12, %v1913_v41, %v1917_v6  ;;  %v3738_v52 = vsel %vm4535_vm12, %v1917_v6, %v1913_v41  ;;  %vm4742_vm12 = vmmov %vm4741_vm0 }
 0x3ee   : > { %4735 = vst [vmem:[#allocation81_spill] sm:$0xff] %v3734_v1  ;;  %4736 = vst [vmem:[#allocation82_spill] sm:$0xff] %v3738_v52  ;;  %1386 = vrot.lane.b32.xlu1 %v3393_v16, %s4727_s28  ;;  %v1326_v1 = vsel %vm556_vm4, %v3623_v18, %v3589_v19  ;;  %v3760_v52 = vpop.permute.xlu0 %1286  ;;  %v1388_v19 = vsel %vm606_vm6, %v3607_v57, %v3635_v11 }
 0x3ef   : > { %v1328_v41 = vmul.f32 %v1326_v1, %v2786_v49  ;;  %v1390_v1 = vsel %vm606_vm6, %v3635_v11, %v3607_v57  ;;  %v1454_v57 = vsel %vm656_vm8, %v3643_v13, %v3633_v27 }
 0x3f0   : > { %v3742_v12 = vpop.permute.xlu1 %1944 }
 0x3f1   : > { %4737 = vst [vmem:[#allocation83_spill] sm:$0xff] %v3742_v12  ;;  %v1329_v12 = vmul.f32 %v1324_v59, %v2792_v40  ;;  %v1340_v49 = vmul.f32 %v3354_v38, %v1328_v41  ;;  %v1393_v41 = vmul.f32 %v1388_v19, %v2829_v37  ;;  %v1456_v19 = vmul.f32 %v1454_v57, %v2856_v47 }
 0x3f2   : > { %1450 = vrot.lane.b32.xlu1 %v3393_v16, %s4678_s15 }
 0x3f4   : > { %v3754_v6 = vpop.permute.xlu1 %1976 }
 0x3f5   : > { %4738 = vst [vmem:[#allocation84_spill] sm:$0xff] %v3754_v6  ;;  %v4739_v6 = vld [vmem:[#allocation34_spill] sm:$0xff] }
 0x3f6   : > { %1514 = vrot.lane.b32.xlu1 %v3393_v16, %s4681_s16 }
 0x3f8   : > { %v1289_v20 = vpop.permute.xlu1 %1288 }
 0x3f9   : > { %v1292_v62 = vsel %vm531_vm3, %v3583_v34, %v1289_v20  ;;  %v1294_v18 = vsel %vm531_vm3, %v1289_v20, %v3583_v34  ;;  %v1341_v34 = vmul.f32 %v3354_v38, %v1329_v12  ;;  %v1452_v20 = vsel %vm656_vm8, %v3633_v27, %v3643_v13  ;;  %v3794_v38 = vpop.permute.xlu0 %1350 }
 0x3fa   : > { %v1296_v59 = vmul.f32 %v1294_v18, %v2773_v2  ;;  %v1297_v40 = vmul.f32 %v1292_v62, %v4739_v6  ;;  %1578 = vrot.lane.b32.xlu1 %v3393_v16, %s4557_s11  ;;  %v1392_v6 = vmul.f32 %v1390_v1, %v2826_v30 }
 0x3fc   : > { %v1308_v11 = vmul.f32 %v3348_v32, %v1296_v59  ;;  %v1309_v62 = vmul.f32 %v3348_v32, %v1297_v40  ;;  %v1353_v18 = vpop.permute.xlu1 %1352  ;;  %v4740_v32 = vld [vmem:[#allocation37_spill] sm:$0xff]  ;;  %v1457_v59 = vmul.f32 %v1452_v20, %v2859_v55  ;;  %v1404_v57 = vmul.f32 %v3362_v46, %v1392_v6 }
 0x3fd   : > { %v1356_v12 = vsel %vm581_vm5, %v3595_v3, %v1353_v18  ;;  %v1358_v2 = vsel %vm581_vm5, %v1353_v18, %v3595_v3  ;;  %v1516_v3 = vsel %vm706_vm10, %v3649_v0, %v3651_v9  ;;  %v1405_v20 = vmul.f32 %v3362_v46, %v1393_v41 }
 0x3fe   : > { %v1312_v27 = vadd.f32 %v1308_v11, %v3625_v14  ;;  %v1313_v13 = vadd.f32 %v1309_v62, %v3627_v26  ;;  %v1360_v40 = vmul.f32 %v1358_v2, %v2796_v39  ;;  %v1361_v1 = vmul.f32 %v1356_v12, %v4740_v32  ;;  %1630 = vrot.lane.b32.xlu1 %v3393_v16, %s4683_s24 }
 0x3ff   : > { %v1518_v14 = vsel %vm706_vm10, %v3651_v9, %v3649_v0  ;;  %v1469_v46 = vmul.f32 %v3407_v21, %v1457_v59  ;;  %v1521_v41 = vmul.f32 %v1516_v3, %v2927_v25 }
 0x400   : > { %v1344_v2 = vadd.f32 %v1340_v49, %v1312_v27  ;;  %v1345_v26 = vadd.f32 %v1341_v34, %v1313_v13  ;;  %v1372_v11 = vmul.f32 %v3356_v28, %v1360_v40  ;;  %v1373_v62 = vmul.f32 %v3356_v28, %v1361_v1  ;;  %v1417_v18 = vpop.permute.xlu1 %1416  ;;  %v3836_v27 = vpop.permute.xlu0 %1414 }
 0x401   : > { %v1420_v12 = vsel %vm631_vm7, %v3621_v36, %v1417_v18  ;;  %v1422_v55 = vsel %vm631_vm7, %v1417_v18, %v3621_v36  ;;  %v1468_v28 = vmul.f32 %v3407_v21, %v1456_v19  ;;  %v1520_v6 = vmul.f32 %v1518_v14, %v2923_v35 }
 0x402   : > { %v1376_v0 = vadd.f32 %v1372_v11, %v1344_v2  ;;  %v1377_v49 = vadd.f32 %v1373_v62, %v1345_v26  ;;  %v1424_v9 = vmul.f32 %v1422_v55, %v2833_v44  ;;  %v1425_v34 = vmul.f32 %v1420_v12, %v2849_v54  ;;  %1694 = vrot.lane.b32.xlu1 %v3393_v16, %s4686_s20 }
 0x403   : > { %v1580_v19 = vsel %vm4741_vm0, %v3665_v5, %v3659_v15  ;;  %v1582_v21 = vsel %vm4742_vm12, %v3659_v15, %v3665_v5  ;;  %v1532_v11 = vmul.f32 %v3427_v4, %v1520_v6  ;;  %v1533_v15 = vmul.f32 %v3427_v4, %v1521_v41  ;;  %v4748_v6 = vld [vmem:[#allocation24_spill] sm:$0xff] }
 0x404   : > { %v1408_v36 = vadd.f32 %v1404_v57, %v1376_v0  ;;  %v1409_v13 = vadd.f32 %v1405_v20, %v1377_v49  ;;  %v1436_v40 = vmul.f32 %v3364_v58, %v1424_v9  ;;  %v1437_v55 = vmul.f32 %v3364_v58, %v1425_v34  ;;  %v1481_v1 = vpop.permute.xlu1 %1480  ;;  %v3864_v0 = vpop.permute.xlu0 %1478 }
 0x405   : > { %v1484_v59 = vsel %vm4743_vm9, %v3641_v29, %v1481_v1  ;;  %v1486_v3 = vsel %vm4744_vm14, %v1481_v1, %v3641_v29  ;;  %v1584_v20 = vmul.f32 %v1582_v21, %v3002_v56  ;;  %v1585_v12 = vmul.f32 %v1580_v19, %v3006_v17 }
 0x406   : > { %v1440_v58 = vadd.f32 %v1436_v40, %v1408_v36  ;;  %v1441_v14 = vadd.f32 %v1437_v55, %v1409_v13  ;;  %v1488_v2 = vmul.f32 %v1486_v3, %v2882_v61  ;;  %v1489_v26 = vmul.f32 %v1484_v59, %v2899_v50  ;;  %1758 = vrot.lane.b32.xlu1 %v3393_v16, %s4689_s30  ;;  %v4749_v36 = vld [vmem:[#allocation25_spill] sm:$0xff] }
 0x407   : > { %vm4745_vm9 = vcmp.lt.s32.totalorder %v2729_v22, 2  ;;  %v1604_v41 = vmul.f32 %v3366_v48, %v4748_v6  ;;  %v1605_v13 = vmul.f32 %v3375_v63, %v4749_v36  ;;  %v1596_v21 = vmul.f32 %v3447_v60, %v1584_v20 }
 0x408   : > { %v1472_v5 = vadd.f32 %v1468_v28, %v1440_v58  ;;  %v1473_v62 = vadd.f32 %v1469_v46, %v1441_v14  ;;  %v1500_v18 = vmul.f32 %v3405_v53, %v1488_v2  ;;  %v1501_v57 = vmul.f32 %v3405_v53, %v1489_v26  ;;  %v1545_v29 = vpop.permute.xlu1 %1544  ;;  %vm4746_vm12 = vmmov %vm4745_vm9  ;;  %v4747_v53 = vld [vmem:[#allocation39_spill] sm:$0xff]  ;;  %v4752_v58 = vld [vmem:[#allocation10_spill] sm:$0xff] }
 0x409   : > { %v1548_v49 = vsel %vm4745_vm9, %v3657_v43, %v1545_v29  ;;  %v1550_v4 = vsel %vm4746_vm12, %v1545_v29, %v3657_v43  ;;  %v1597_v59 = vmul.f32 %v3447_v60, %v1585_v12  ;;  %vm4750_vm14 = vcmp.lt.s32.totalorder %v2729_v22, 126  ;;  %v4753_v2 = vld [vmem:[#allocation26_spill] sm:$0xff]  ;;  %v3896_v60 = vpop.permute.xlu0 %1542  ;;  %v4756_v12 = vld [vmem:[#allocation12_spill] sm:$0xff] }
 0x40a   : > { %v1504_v9 = vadd.f32 %v1500_v18, %v1472_v5  ;;  %v1505_v34 = vadd.f32 %v1501_v57, %v1473_v62  ;;  %v1552_v28 = vmul.f32 %v1550_v4, %v2947_v8  ;;  %v1553_v46 = vmul.f32 %v1548_v49, %v4747_v53  ;;  %1822 = vrot.lane.b32.xlu1 %v3393_v16, %s4690_s27  ;;  %vm4751_vm0 = vmmov %vm4750_vm14  ;;  %v4755_v62 = vld [vmem:[#allocation27_spill] sm:$0xff] }
 0x40b   : > { %v1636_v14 = vmul.f32 %v3674_v42, %v4752_v58  ;;  %v1637_v26 = vmul.f32 %v3678_v10, %v4753_v2  ;;  %v1616_v57 = vmul.f32 %v3445_v23, %v1604_v41  ;;  %v1700_v10 = vmul.f32 %v3688_v24, %v3062_v45  ;;  %v4761_v24 = vld [vmem:[#allocation51_spill] sm:$0xff] }
 0x40c   : > { %v1536_v40 = vadd.f32 %v1532_v11, %v1504_v9  ;;  %v1537_v55 = vadd.f32 %v1533_v15, %v1505_v34  ;;  %v1564_v1 = vmul.f32 %v3425_v31, %v1552_v28  ;;  %v1565_v43 = vmul.f32 %v3425_v31, %v1553_v46  ;;  %v1661_v19 = vpop.permute.xlu1 %1660  ;;  %v4754_v15 = vld [vmem:[#allocation4_spill] sm:$0xff] }
 0x40d   : > { %v1664_v3 = vsel %vm4750_vm14, %v3682_v33, %v1661_v19  ;;  %v1666_v48 = vsel %vm4751_vm0, %v1661_v19, %v3682_v33  ;;  %v1617_v33 = vmul.f32 %v3445_v23, %v1605_v13  ;;  %v1701_v49 = vmul.f32 %v3692_v51, %v4756_v12  ;;  %v4760_v34 = vld [vmem:[#allocation52_spill] sm:$0xff]  ;;  %v4777_v12 = vld [vmem:[#allocation78_spill] sm:$0xff] }
 0x40e   : > { %v1568_v31 = vadd.f32 %v1564_v1, %v1536_v40  ;;  %v1569_v11 = vadd.f32 %v1565_v43, %v1537_v55  ;;  %1980 = vrot.lane.b32.xlu1 %v3375_v63, %s4564_s18  ;;  %v1668_v5 = vmul.f32 %v1664_v3, %v4754_v15  ;;  %v1669_v18 = vmul.f32 %v1666_v48, %v4755_v62  ;;  %v4757_v63 = vld [vmem:[#allocation74_spill] sm:$0xff]  ;;  %v4762_v43 = vld [vmem:[#allocation28_spill] sm:$0xff] }
 0x40f   : > { %vm4758_vm9 = vcmp.lt.s32.totalorder %v2729_v22, 113  ;;  %v1648_v28 = vmul.f32 %v4760_v34, %v1636_v14  ;;  %v1649_v23 = vmul.f32 %v4760_v34, %v1637_v26  ;;  %v1216_v40 = vld [vmem:[%s4294_s8] sm:$0xff]  ;;  %v4764_v48 = vld [vmem:[#allocation56_spill] sm:$0xff]  ;;  %vm4765_vm14 = vcmp.lt.s32.totalorder %v2729_v22, 111 }
 0x410   : > { %v1600_v29 = vadd.f32 %v1596_v21, %v1568_v31  ;;  %v1601_v42 = vadd.f32 %v1597_v59, %v1569_v11  ;;  %v1725_v20 = vpop.permute.xlu1 %1724  ;;  %vm4759_vm12 = vmmov %vm4758_vm9  ;;  %v1680_v13 = vmul.f32 %v4761_v24, %v1668_v5  ;;  %v1681_v51 = vmul.f32 %v4761_v24, %v1669_v18  ;;  %v4763_v21 = vld [vmem:[#allocation15_spill] sm:$0xff]  ;;  %v3925_v31 = vpop.permute.xlu0 %1658  ;;  %v4767_v18 = vld [vmem:[#allocation8_spill] sm:$0xff] }
 0x411   : > { %v1728_v4 = vsel %vm4758_vm9, %v4757_v63, %v1725_v20  ;;  %v1730_v9 = vsel %vm4759_vm12, %v1725_v20, %v4757_v63  ;;  %v1712_v14 = vmul.f32 %v4764_v48, %v1700_v10  ;;  %v1713_v26 = vmul.f32 %v4764_v48, %v1701_v49  ;;  %vm4766_vm0 = vmmov %vm4765_vm14  ;;  %v4771_v49 = vld [vmem:[#allocation40_spill] sm:$0xff]  ;;  %v4775_v48 = vld [vmem:[#allocation77_spill] sm:$0xff] }
 0x412   : > { %v1620_v46 = vadd.f32 %v1616_v57, %v1600_v29  ;;  %v1621_v41 = vadd.f32 %v1617_v33, %v1601_v42  ;;  %1918 = vrot.lane.b32.xlu1 %v3393_v16, %s4694_s26  ;;  %v1732_v19 = vmul.f32 %v1728_v4, %v4762_v43  ;;  %v1733_v59 = vmul.f32 %v1730_v9, %v4763_v21  ;;  %v4768_v57 = vld [vmem:[#allocation75_spill] sm:$0xff]  ;;  %v4769_v29 = vld [vmem:[#allocation9_spill] sm:$0xff]  ;;  %v4770_v42 = vld [vmem:[#allocation76_spill] sm:$0xff] }
 0x413   : > { %v1764_v33 = vmul.f32 %v4768_v57, %v4767_v18  ;;  %v1765_v20 = vmul.f32 %v4770_v42, %v4769_v29  ;;  %v4772_v9 = vld [vmem:[#allocation41_spill] sm:$0xff]  ;;  %vm4779_vm9 = vcmp.lt.s32.totalorder %v2729_v22, 98 }
 0x414   : > { %v1652_v55 = vadd.f32 %v1648_v28, %v1620_v46  ;;  %v1653_v1 = vadd.f32 %v1649_v23, %v1621_v41  ;;  %v1789_v3 = vpop.permute.xlu1 %1788  ;;  %v4773_v46 = vld [vmem:[#allocation55_spill] sm:$0xff]  ;;  %v4776_v18 = vld [vmem:[#allocation5_spill] sm:$0xff]  ;;  %vm4780_vm12 = vmmov %vm4779_vm9 }
 0x415   : > { %v1792_v11 = vsel %vm4765_vm14, %v3710_v7, %v1789_v3  ;;  %v1794_v5 = vsel %vm4766_vm0, %v1789_v3, %v3710_v7  ;;  %v1744_v41 = vmul.f32 %v4773_v46, %v1732_v19  ;;  %v1745_v24 = vmul.f32 %v4773_v46, %v1733_v59  ;;  %v4774_v3 = vld [vmem:[#allocation11_spill] sm:$0xff]  ;;  %v4783_v46 = vld [vmem:[#allocation17_spill] sm:$0xff] }
 0x416   : > { %v1684_v63 = vadd.f32 %v1680_v13, %v1652_v55  ;;  %v1685_v10 = vadd.f32 %v1681_v51, %v1653_v1  ;;  %2010 = vperm.xlu1 %2261, %v1216_v40   ;;  %v1796_v4 = vmul.f32 %v1792_v11, %v4771_v49  ;;  %v1797_v34 = vmul.f32 %v1794_v5, %v4772_v9  ;;  %v4778_v13 = vld [vmem:[#allocation79_spill] sm:$0xff]  ;;  %v4781_v55 = vld [vmem:[#allocation60_spill] sm:$0xff] }
 0x417   : > { %v1828_v57 = vmul.f32 %v4775_v48, %v4774_v3  ;;  %v1829_v42 = vmul.f32 %v4777_v12, %v4776_v18  ;;  %v1776_v1 = vmul.f32 %v4781_v55, %v1764_v33  ;;  %v1777_v19 = vmul.f32 %v4781_v55, %v1765_v20  ;;  %v4782_v11 = vld [vmem:[#allocation59_spill] sm:$0xff]  ;;  %v4784_v18 = vld [vmem:[#allocation13_spill] sm:$0xff]  ;;  %v4786_v20 = vld [vmem:[#allocation80_spill] sm:$0xff] }
 0x418   : > { %v1716_v28 = vadd.f32 %v1712_v14, %v1684_v63  ;;  %v1717_v23 = vadd.f32 %v1713_v26, %v1685_v10  ;;  %v1853_v7 = vpop.permute.xlu1 %1852  ;;  %v3953_v26 = vpop.permute.xlu0 %1722  ;;  %v1808_v5 = vmul.f32 %v4782_v11, %v1796_v4  ;;  %v1809_v12 = vmul.f32 %v4782_v11, %v1797_v34  ;;  %v4820_v49 = vld [vmem:[#allocation35_spill] sm:$0xff] }
 0x419   : > { %v1856_v51 = vsel %vm4779_vm9, %v4778_v13, %v1853_v7  ;;  %v1858_v40 = vsel %vm4780_vm12, %v1853_v7, %v4778_v13  ;;  %v4785_v7 = vld [vmem:[#allocation64_spill] sm:$0xff]  ;;  %vm4787_vm14 = vcmp.lt.s32.totalorder %v2729_v22, 97  ;;  %vm4845_vm12 = vcmp.lt.s32.totalorder %v2729_v22, 111 }
 0x41a   : > { %v1748_v59 = vadd.f32 %v1744_v41, %v1716_v28  ;;  %v1749_v14 = vadd.f32 %v1745_v24, %v1717_v23  ;;  %v1860_v48 = vmul.f32 %v1856_v51, %v4783_v46  ;;  %v1861_v3 = vmul.f32 %v1858_v40, %v4784_v18  ;;  %vm4788_vm0 = vmmov %vm4787_vm14  ;;  %v4789_v41 = vld [vmem:[#allocation19_spill] sm:$0xff]  ;;  %v4790_v51 = vld [vmem:[#allocation14_spill] sm:$0xff] }
 0x41b   : > { %v1840_v13 = vmul.f32 %v4785_v7, %v1828_v57  ;;  %v1841_v33 = vmul.f32 %v4785_v7, %v1829_v42  ;;  %v4791_v40 = vld [vmem:[#allocation23_spill] sm:$0xff]  ;;  %v4793_v57 = vld [vmem:[#allocation20_spill] sm:$0xff] }
 0x41c   : > { %v1780_v63 = vadd.f32 %v1776_v1, %v1748_v59  ;;  %v1781_v10 = vadd.f32 %v1777_v19, %v1749_v14  ;;  %v1885_v29 = vpop.permute.xlu1 %1884  ;;  %v4792_v1 = vld [vmem:[#allocation81_spill] sm:$0xff]  ;;  %v4794_v59 = vld [vmem:[#allocation82_spill] sm:$0xff]  ;;  %v4795_v7 = vld [vmem:[#allocation63_spill] sm:$0xff] }
 0x41d   : > { %v1888_v28 = vsel %vm4787_vm14, %v4786_v20, %v1885_v29  ;;  %v1890_v4 = vsel %vm4788_vm0, %v1885_v29, %v4786_v20  ;;  %v1924_v19 = vmul.f32 %v4792_v1, %v4791_v40  ;;  %v1925_v42 = vmul.f32 %v4794_v59, %v4793_v57  ;;  %v3975_v29 = vpop.permute.xlu0 %1786  ;;  %vm4846_vm14 = vmmov %vm4845_vm12 }
 0x41e   : > { %v1812_v34 = vadd.f32 %v1808_v5, %v1780_v63  ;;  %v1813_v23 = vadd.f32 %v1809_v12, %v1781_v10  ;;  %v1892_v24 = vmul.f32 %v1888_v28, %v4789_v41  ;;  %v1893_v55 = vmul.f32 %v1890_v4, %v4790_v51  ;;  %v4796_v5 = vld [vmem:[#allocation65_spill] sm:$0xff]  ;;  %v4797_v10 = vld [vmem:[#allocation83_spill] sm:$0xff] }
 0x41f   : > { %v1872_v18 = vmul.f32 %v4795_v7, %v1860_v48  ;;  %v1873_v46 = vmul.f32 %v4795_v7, %v1861_v3  ;;  %v4798_v48 = vld [vmem:[#allocation16_spill] sm:$0xff]  ;;  %v4799_v3 = vld [vmem:[#allocation21_spill] sm:$0xff] }
 0x420   : > { %v1844_v14 = vadd.f32 %v1840_v13, %v1812_v34  ;;  %v1845_v11 = vadd.f32 %v1841_v33, %v1813_v23  ;;  %v1949_v9 = vpop.permute.xlu1 %1948  ;;  %v1904_v12 = vmul.f32 %v4796_v5, %v1892_v24  ;;  %v1905_v63 = vmul.f32 %v4796_v5, %v1893_v55  ;;  %v4800_v23 = vld [vmem:[#allocation68_spill] sm:$0xff]  ;;  %v4801_v5 = vld [vmem:[#allocation71_spill] sm:$0xff] }
 0x421   : > { %v1952_v20 = vsel %vm1049_vm11, %v4797_v10, %v1949_v9  ;;  %v1954_v13 = vsel %vm1049_vm11, %v1949_v9, %v4797_v10  ;;  %v1936_v1 = vmul.f32 %v4800_v23, %v1924_v19  ;;  %v1937_v24 = vmul.f32 %v4800_v23, %v1925_v42  ;;  %v3991_v9 = vpop.permute.xlu0 %1850 }
 0x422   : > { %v1876_v33 = vadd.f32 %v1872_v18, %v1844_v14  ;;  %v1877_v28 = vadd.f32 %v1873_v46, %v1845_v11  ;;  %v1956_v4 = vmul.f32 %v1952_v20, %v4798_v48  ;;  %v1957_v34 = vmul.f32 %v1954_v13, %v4799_v3  ;;  %4802 = vst [vmem:[#allocation37_spill] sm:$0xff] %v3991_v9  ;;  %v4812_v3 = vld [vmem:[#allocation34_spill] sm:$0xff] }
 0x424   : > { %v1908_v59 = vadd.f32 %v1904_v12, %v1876_v33  ;;  %v1909_v55 = vadd.f32 %v1905_v63, %v1877_v28  ;;  %v1221_v7 = vpop.permute.xlu1 %1220  ;;  %v1968_v57 = vmul.f32 %v4801_v5, %v1956_v4  ;;  %v1969_v40 = vmul.f32 %v4801_v5, %v1957_v34 }
 0x425   : > { %v3997_v19 = vpop.permute.xlu0 %1882 }
 0x426   : > { %v1940_v51 = vadd.f32 %v1936_v1, %v1908_v59  ;;  %v1941_v41 = vadd.f32 %v1937_v24, %v1909_v55  ;;  %4805 = vst [vmem:[#allocation25_spill] sm:$0xff] %v3997_v19 }
 0x428   : > { %v1255_v18 = vpop.permute.xlu1 %1254  ;;  %v3993_v46 = vadd.f32 %v1968_v57, %v1940_v51  ;;  %v3995_v14 = vadd.f32 %v1969_v40, %v1941_v41 }
 0x429   : > { %v4001_v12 = vpop.permute.xlu0 %1946 }
 0x42a   : > { %4803 = vst [vmem:[#allocation39_spill] sm:$0xff] %v3993_v46  ;;  %4804 = vst [vmem:[#allocation24_spill] sm:$0xff] %v3995_v14  ;;  %v4811_v14 = vld [vmem:[#allocation33_spill] sm:$0xff] }
 0x42b   : > { %4806 = vst [vmem:[#allocation10_spill] sm:$0xff] %v4001_v12 }
 0x42c   : > { %v1319_v11 = vpop.permute.xlu1 %1318 }
 0x42d   : > { %v4007_v20 = vpop.permute.xlu0 %1978 }
 0x42e   : > { %4807 = vst [vmem:[#allocation26_spill] sm:$0xff] %v4007_v20  ;;  %v4813_v20 = vld [vmem:[#allocation29_spill] sm:$0xff] }
 0x430   : > { %v3999_v42 = vpop.permute.xlu1 %1382 }
 0x431   : > { %v1291_v33 = vpop.permute.xlu0 %1290 }
 0x432   : > { %v1293_v1 = vsel %vm531_vm3, %v3760_v52, %v1291_v33  ;;  %v1295_v24 = vsel %vm531_vm3, %v1291_v33, %v3760_v52  ;;  %vm4828_vm3 = vcmp.lt.s32.totalorder %v2729_v22, 2 }
 0x433   : > { %v1298_v46 = vmul.f32 %v1295_v24, %v4811_v14  ;;  %v1299_v48 = vmul.f32 %v1293_v1, %v4812_v3  ;;  %v4815_v14 = vld [vmem:[#allocation31_spill] sm:$0xff] }
 0x434   : > { %v4003_v63 = vpop.permute.xlu1 %1446 }
 0x435   : > { %v1355_v40 = vpop.permute.xlu0 %1354 }
 0x436   : > { %v1359_v3 = vsel %vm581_vm5, %v1355_v40, %v3794_v38 }
 0x438   : > { %v4005_v10 = vpop.permute.xlu1 %1510 }
 0x439   : > { %v1419_v28 = vpop.permute.xlu0 %1418 }
 0x43c   : > { %v4009_v13 = vpop.permute.xlu1 %1574 }
 0x43d   : > { %v1483_v23 = vpop.permute.xlu0 %1482 }
 0x440   : > { %v4011_v51 = vpop.permute.xlu1 %1626 }
 0x444   : > { %v4013_v41 = vpop.permute.xlu1 %1690 }
 0x448   : > { %v4015_v57 = vpop.permute.xlu1 %1754 }
 0x449   : > { %4808 = vst [vmem:[#allocation4_spill] sm:$0xff] %v4015_v57 }
 0x44c   : > { %v4017_v4 = vpop.permute.xlu1 %1818 }
 0x44d   : > { %4809 = vst [vmem:[#allocation27_spill] sm:$0xff] %v4017_v4  ;;  %v4814_v4 = vld [vmem:[#allocation30_spill] sm:$0xff] }
 0x450   : > { %v4019_v34 = vpop.permute.xlu1 %1914 }
 0x451   : > { %4810 = vst [vmem:[#allocation74_spill] sm:$0xff] %v4019_v34  ;;  %v1547_v34 = vpop.permute.xlu0 %1546 }
 0x454   : > { %v1225_v59 = vpop.permute.xlu1 %1224 }
 0x455   : > { %v1227_v55 = vsel %vm480_vm1, %v1221_v7, %v1225_v59  ;;  %v1229_v5 = vsel %vm480_vm1, %v1225_v59, %v1221_v7  ;;  %v1357_v7 = vsel %vm581_vm5, %v3794_v38, %v1355_v40  ;;  %v4819_v40 = vld [vmem:[#allocation22_spill] sm:$0xff]  ;;  %vm4822_vm1 = vcmp.lt.s32.totalorder %v2729_v22, 15 }
 0x456   : > { %v1232_v12 = vmul.f32 %v1229_v5, %v4813_v20  ;;  %v1233_v19 = vmul.f32 %v1227_v55, %v4814_v4  ;;  %v4816_v20 = vld [vmem:[#allocation32_spill] sm:$0xff]  ;;  %v4817_v4 = vld [vmem:[#allocation6_spill] sm:$0xff]  ;;  %vm4834_vm5 = vcmp.lt.s32.totalorder %v2729_v22, 126 }
 0x457   : > { %v1310_v59 = vmul.f32 %v4817_v4, %v1298_v46  ;;  %v1311_v55 = vmul.f32 %v4817_v4, %v1299_v48  ;;  %v4818_v5 = vld [vmem:[#allocation18_spill] sm:$0xff]  ;;  %v1362_v46 = vmul.f32 %v1359_v3, %v2796_v39  ;;  %v1363_v48 = vmul.f32 %v1357_v7, %v4740_v32 }
 0x458   : > { %v1259_v57 = vpop.permute.xlu1 %1258  ;;  %v1246_v9 = vmul.f32 %v4818_v5, %v1232_v12  ;;  %v1247_v38 = vmul.f32 %v4818_v5, %v1233_v19  ;;  %v4821_v5 = vld [vmem:[#allocation36_spill] sm:$0xff]  ;;  %v1485_v39 = vsel %vm4822_vm1, %v3864_v0, %v1483_v23 }
 0x459   : > { %v1261_v52 = vsel %vm506_vm2, %v1255_v18, %v1259_v57  ;;  %v1263_v33 = vsel %vm506_vm2, %v1259_v57, %v1255_v18  ;;  %v1421_v18 = vsel %vm631_vm7, %v3836_v27, %v1419_v28  ;;  %v1423_v57 = vsel %vm631_vm7, %v1419_v28, %v3836_v27  ;;  %vm4823_vm2 = vmmov %vm4822_vm1 }
 0x45a   : > { %v1266_v1 = vmul.f32 %v1263_v33, %v4815_v14  ;;  %v1267_v24 = vmul.f32 %v1261_v52, %v4816_v20  ;;  %v1663_v20 = vpop.permute.xlu0 %1662  ;;  %v1487_v32 = vsel %vm4823_vm2, %v1483_v23, %v3864_v0  ;;  %vm4838_vm7 = vcmp.lt.s32.totalorder %v2729_v22, 1 }
 0x45b   : > { %vm4866_vm2 = vcmp.lt.s32.totalorder %v2729_v22, 97 }
 0x45c   : > { %v1278_v33 = vmul.f32 %v4819_v40, %v1266_v1  ;;  %v1279_v52 = vmul.f32 %v4819_v40, %v1267_v24  ;;  %v1323_v14 = vpop.permute.xlu1 %1322  ;;  %v1426_v24 = vmul.f32 %v1423_v57, %v2833_v44  ;;  %v1427_v40 = vmul.f32 %v1421_v18, %v2849_v54  ;;  %v4826_v57 = vld [vmem:[#allocation42_spill] sm:$0xff] }
 0x45d   : > { %v1325_v4 = vsel %vm556_vm4, %v1319_v11, %v1323_v14  ;;  %v1327_v27 = vsel %vm556_vm4, %v1323_v14, %v1319_v11  ;;  %vm4829_vm4 = vmmov %vm4828_vm3 }
 0x45e   : > { %v1282_v28 = vadd.f32 %v1278_v33, %v1246_v9  ;;  %v1283_v12 = vadd.f32 %v1279_v52, %v1247_v38  ;;  %v1330_v19 = vmul.f32 %v1327_v27, %v4820_v49  ;;  %v1331_v1 = vmul.f32 %v1325_v4, %v4821_v5  ;;  %v4824_v9 = vld [vmem:[#allocation7_spill] sm:$0xff]  ;;  %v4825_v33 = vld [vmem:[#allocation2_spill] sm:$0xff]  ;;  %v1727_v27 = vpop.permute.xlu0 %1726 }
 0x45f   : > { %v1374_v52 = vmul.f32 %v4825_v33, %v1362_v46  ;;  %v1375_v44 = vmul.f32 %v4825_v33, %v1363_v48  ;;  %v1438_v14 = vmul.f32 %v4826_v57, %v1426_v24  ;;  %v1439_v46 = vmul.f32 %v4826_v57, %v1427_v40  ;;  %v4833_v57 = vld [vmem:[#allocation44_spill] sm:$0xff] }
 0x460   : > { %v1314_v7 = vadd.f32 %v1310_v59, %v1282_v28  ;;  %v1315_v11 = vadd.f32 %v1311_v55, %v1283_v12  ;;  %v1342_v3 = vmul.f32 %v4824_v9, %v1330_v19  ;;  %v1343_v49 = vmul.f32 %v4824_v9, %v1331_v1  ;;  %v1387_v38 = vpop.permute.xlu1 %1386  ;;  %v4827_v19 = vld [vmem:[#allocation3_spill] sm:$0xff] }
 0x461   : > { %v1389_v54 = vsel %vm606_vm6, %v3999_v42, %v1387_v38  ;;  %v1391_v18 = vsel %vm606_vm6, %v1387_v38, %v3999_v42  ;;  %v1490_v48 = vmul.f32 %v1487_v32, %v2882_v61  ;;  %v1491_v4 = vmul.f32 %v1485_v39, %v2899_v50  ;;  %v4830_v32 = vld [vmem:[#allocation38_spill] sm:$0xff]  ;;  %vm4835_vm6 = vmmov %vm4834_vm5 }
 0x462   : > { %v1346_v0 = vadd.f32 %v1342_v3, %v1314_v7  ;;  %v1347_v23 = vadd.f32 %v1343_v49, %v1315_v11  ;;  %v1394_v59 = vmul.f32 %v1391_v18, %v2826_v30  ;;  %v1395_v55 = vmul.f32 %v1389_v54, %v2829_v37  ;;  %v4831_v11 = vld [vmem:[#allocation46_spill] sm:$0xff]  ;;  %v1791_v54 = vpop.permute.xlu0 %1790 }
 0x463   : > { %v1549_v30 = vsel %vm4828_vm3, %v3896_v60, %v1547_v34  ;;  %v1551_v37 = vsel %vm4829_vm4, %v1547_v34, %v3896_v60  ;;  %v1502_v9 = vmul.f32 %v4831_v11, %v1490_v48  ;;  %v1503_v3 = vmul.f32 %v4831_v11, %v1491_v4  ;;  %v4832_v34 = vld [vmem:[#allocation43_spill] sm:$0xff]  ;;  %v4836_v4 = vld [vmem:[#allocation45_spill] sm:$0xff]  ;;  %vm4867_vm3 = vmmov %vm4866_vm2 }
 0x464   : > { %v1378_v28 = vadd.f32 %v1374_v52, %v1346_v0  ;;  %v1379_v12 = vadd.f32 %v1375_v44, %v1347_v23  ;;  %v1406_v5 = vmul.f32 %v4827_v19, %v1394_v59  ;;  %v1407_v42 = vmul.f32 %v4827_v19, %v1395_v55  ;;  %v1451_v1 = vpop.permute.xlu1 %1450 }
 0x465   : > { %v1453_v61 = vsel %vm656_vm8, %v4003_v63, %v1451_v1  ;;  %v1455_v50 = vsel %vm656_vm8, %v1451_v1, %v4003_v63  ;;  %v1554_v44 = vmul.f32 %v1551_v37, %v2947_v8  ;;  %v1555_v63 = vmul.f32 %v1549_v30, %v4747_v53  ;;  %vm4839_vm8 = vmmov %vm4838_vm7  ;;  %v4840_v1 = vld [vmem:[#allocation50_spill] sm:$0xff] }
 0x466   : > { %v1410_v24 = vadd.f32 %v1406_v5, %v1378_v28  ;;  %v1411_v40 = vadd.f32 %v1407_v42, %v1379_v12  ;;  %v1458_v39 = vmul.f32 %v1455_v50, %v2856_v47  ;;  %v1459_v7 = vmul.f32 %v1453_v61, %v4830_v32  ;;  %v4837_v12 = vld [vmem:[#allocation48_spill] sm:$0xff]  ;;  %v4841_v32 = vld [vmem:[#allocation47_spill] sm:$0xff] }
 0x467   : > { %v1606_v8 = vmul.f32 %v4833_v57, %v4748_v6  ;;  %v1607_v53 = vmul.f32 %v3393_v16, %v4749_v36  ;;  %v1566_v6 = vmul.f32 %v4837_v12, %v1554_v44  ;;  %v1567_v19 = vmul.f32 %v4837_v12, %v1555_v63  ;;  %v4847_v44 = vld [vmem:[#allocation49_spill] sm:$0xff]  ;;  %v4848_v57 = vld [vmem:[#allocation12_spill] sm:$0xff]  ;;  %v4855_v12 = vld [vmem:[#allocation58_spill] sm:$0xff] }
 0x468   : > { %v1442_v49 = vadd.f32 %v1438_v14, %v1410_v24  ;;  %v1443_v60 = vadd.f32 %v1439_v46, %v1411_v40  ;;  %v1470_v38 = vmul.f32 %v4832_v34, %v1458_v39  ;;  %v1471_v33 = vmul.f32 %v4832_v34, %v1459_v7  ;;  %v1515_v52 = vpop.permute.xlu1 %1514  ;;  %v1855_v24 = vpop.permute.xlu0 %1854  ;;  %v4844_v34 = vld [vmem:[#allocation54_spill] sm:$0xff] }
 0x469   : > { %v1517_v47 = vsel %vm706_vm10, %v4005_v10, %v1515_v52  ;;  %v1519_v18 = vsel %vm706_vm10, %v1515_v52, %v4005_v10  ;;  %v1665_v14 = vsel %vm4834_vm5, %v3925_v31, %v1663_v20  ;;  %v1667_v10 = vsel %vm4835_vm6, %v1663_v20, %v3925_v31 }
 0x46a   : > { %v1474_v0 = vadd.f32 %v1470_v38, %v1442_v49  ;;  %v1475_v23 = vadd.f32 %v1471_v33, %v1443_v60  ;;  %v1522_v59 = vmul.f32 %v1519_v18, %v2923_v35  ;;  %v1523_v55 = vmul.f32 %v1517_v47, %v2927_v25 }
 0x46b   : > { %v1618_v30 = vmul.f32 %v4840_v1, %v1606_v8  ;;  %v1619_v37 = vmul.f32 %v4840_v1, %v1607_v53  ;;  %v1670_v61 = vmul.f32 %v1665_v14, %v4754_v15  ;;  %v1671_v50 = vmul.f32 %v1667_v10, %v4755_v62  ;;  %v4849_v53 = vld [vmem:[#allocation40_spill] sm:$0xff] }
 0x46c   : > { %v1506_v46 = vadd.f32 %v1502_v9, %v1474_v0  ;;  %v1507_v48 = vadd.f32 %v1503_v3, %v1475_v23  ;;  %v1534_v35 = vmul.f32 %v4836_v4, %v1522_v59  ;;  %v1535_v25 = vmul.f32 %v4836_v4, %v1523_v55  ;;  %v1579_v28 = vpop.permute.xlu1 %1578  ;;  %v1887_v0 = vpop.permute.xlu0 %1886 }
 0x46d   : > { %v1581_v16 = vsel %vm4838_vm7, %v4009_v13, %v1579_v28  ;;  %v1583_v36 = vsel %vm4839_vm8, %v1579_v28, %v4009_v13  ;;  %vm4842_vm10 = vcmp.lt.s32.totalorder %v2729_v22, 113  ;;  %v1682_v38 = vmul.f32 %v4844_v34, %v1670_v61  ;;  %v4861_v61 = vld [vmem:[#allocation62_spill] sm:$0xff] }
 0x46e   : > { %v1538_v31 = vadd.f32 %v1534_v35, %v1506_v46  ;;  %v1539_v20 = vadd.f32 %v1535_v25, %v1507_v48  ;;  %v1586_v5 = vmul.f32 %v1583_v36, %v3002_v56  ;;  %v1587_v42 = vmul.f32 %v1581_v16, %v3006_v17  ;;  %vm4843_vm9 = vmmov %vm4842_vm10  ;;  %v4854_v35 = vld [vmem:[#allocation53_spill] sm:$0xff]  ;;  %v4856_v16 = vld [vmem:[#allocation4_spill] sm:$0xff] }
 0x46f   : > { %v1729_v56 = vsel %vm4842_vm10, %v3953_v26, %v1727_v27  ;;  %v1731_v17 = vsel %vm4843_vm9, %v1727_v27, %v3953_v26  ;;  %v1683_v33 = vmul.f32 %v4844_v34, %v1671_v50  ;;  %v1793_v26 = vsel %vm4845_vm12, %v3975_v29, %v1791_v54  ;;  %v4868_v34 = vld [vmem:[#allocation27_spill] sm:$0xff] }
 0x470   : > { %v1570_v40 = vadd.f32 %v1566_v6, %v1538_v31  ;;  %v1571_v39 = vadd.f32 %v1567_v19, %v1539_v20  ;;  %v1598_v7 = vmul.f32 %v4841_v32, %v1586_v5  ;;  %v1599_v13 = vmul.f32 %v4841_v32, %v1587_v42  ;;  %v1631_v11 = vpop.permute.xlu1 %1630  ;;  %v4859_v42 = vld [vmem:[#allocation8_spill] sm:$0xff]  ;;  %v4863_v32 = vld [vmem:[#allocation13_spill] sm:$0xff] }
 0x471   : > { %v1633_v15 = vsel %vm799_vm13, %v4011_v51, %v1631_v11  ;;  %v1635_v62 = vsel %vm799_vm13, %v1631_v11, %v4011_v51  ;;  %v1795_v27 = vsel %vm4846_vm14, %v1791_v54, %v3975_v29  ;;  %v1735_v18 = vmul.f32 %v1731_v17, %v4763_v21  ;;  %v4851_v21 = vld [vmem:[#allocation37_spill] sm:$0xff] }
 0x472   : > { %v1602_v9 = vadd.f32 %v1598_v7, %v1570_v40  ;;  %v1603_v3 = vadd.f32 %v1599_v13, %v1571_v39  ;;  %v1638_v49 = vmul.f32 %v1633_v15, %v4752_v58  ;;  %v1639_v60 = vmul.f32 %v1635_v62, %v4753_v2  ;;  %v4862_v40 = vld [vmem:[#allocation17_spill] sm:$0xff]  ;;  %v1951_v13 = vpop.permute.xlu0 %1950 }
 0x473   : > { %v1734_v2 = vmul.f32 %v1729_v56, %v4762_v43  ;;  %v1798_v14 = vmul.f32 %v1793_v26, %v4849_v53  ;;  %v4850_v43 = vld [vmem:[#allocation41_spill] sm:$0xff]  ;;  %vm4852_vm13 = vcmp.lt.s32.totalorder %v2729_v22, 98  ;;  %v1747_v19 = vmul.f32 %v4855_v12, %v1735_v18 }
 0x474   : > { %v1622_v52 = vadd.f32 %v1618_v30, %v1602_v9  ;;  %v1623_v51 = vadd.f32 %v1619_v37, %v1603_v3  ;;  %v1650_v63 = vmul.f32 %v4847_v44, %v1638_v49  ;;  %v1651_v58 = vmul.f32 %v4847_v44, %v1639_v60  ;;  %v1695_v47 = vpop.permute.xlu1 %1694  ;;  %vm4853_vm0 = vmmov %vm4852_vm13  ;;  %v4860_v30 = vld [vmem:[#allocation9_spill] sm:$0xff] }
 0x475   : > { %v1697_v23 = vsel %vm849_vm15, %v4013_v41, %v1695_v47  ;;  %v1699_v29 = vsel %vm849_vm15, %v1695_v47, %v4013_v41  ;;  %v1799_v10 = vmul.f32 %v1795_v27, %v4850_v43  ;;  %v1857_v46 = vsel %vm4852_vm13, %v4851_v21, %v1855_v24  ;;  %v4864_v17 = vld [vmem:[#allocation57_spill] sm:$0xff] }
 0x476   : > { %v1654_v54 = vadd.f32 %v1650_v63, %v1622_v52  ;;  %v1655_v59 = vadd.f32 %v1651_v58, %v1623_v51  ;;  %v1702_v55 = vmul.f32 %v1697_v23, %v3062_v45  ;;  %v1703_v8 = vmul.f32 %v1699_v29, %v4848_v57  ;;  %v4865_v3 = vld [vmem:[#allocation25_spill] sm:$0xff]  ;;  %v4871_v52 = vld [vmem:[#allocation11_spill] sm:$0xff]  ;;  %v1983_v57 = vpop.permute.xlu0 %1982 }
 0x477   : > { %v1859_v48 = vsel %vm4853_vm0, %v1855_v24, %v4851_v21  ;;  %v1746_v6 = vmul.f32 %v4855_v12, %v1734_v2  ;;  %vm4857_vm15 = vcmp.lt.s32.totalorder %v2729_v22, 112  ;;  %v1810_v50 = vmul.f32 %v4861_v61, %v1798_v14  ;;  %v4872_v44 = vld [vmem:[#allocation5_spill] sm:$0xff]  ;;  %v4874_v29 = vld [vmem:[#allocation19_spill] sm:$0xff]  ;;  %v4877_v21 = vld [vmem:[#allocation10_spill] sm:$0xff] }
 0x478   : > { %v1686_v4 = vadd.f32 %v1682_v38, %v1654_v54  ;;  %v1687_v41 = vadd.f32 %v1683_v33, %v1655_v59  ;;  %v1714_v25 = vmul.f32 %v4854_v35, %v1702_v55  ;;  %v1715_v45 = vmul.f32 %v4854_v35, %v1703_v8  ;;  %v1759_v28 = vpop.permute.xlu1 %1758  ;;  %vm4858_vm1 = vmmov %vm4857_vm15  ;;  %v4873_v2 = vld [vmem:[#allocation61_spill] sm:$0xff]  ;;  %v4875_v59 = vld [vmem:[#allocation14_spill] sm:$0xff] }
 0x479   : > { %v1761_v36 = vsel %vm4857_vm15, %v4856_v16, %v1759_v28  ;;  %v1763_v31 = vsel %vm4858_vm1, %v1759_v28, %v4856_v16  ;;  %v1811_v24 = vmul.f32 %v4861_v61, %v1799_v10  ;;  %v1862_v39 = vmul.f32 %v1857_v46, %v4862_v40  ;;  %v4876_v8 = vld [vmem:[#allocation66_spill] sm:$0xff]  ;;  %v4881_v12 = vld [vmem:[#allocation67_spill] sm:$0xff]  ;;  %v4888_v61 = vld [vmem:[#allocation20_spill] sm:$0xff] }
 0x47a   : > { %v1718_v20 = vadd.f32 %v1714_v25, %v1686_v4  ;;  %v1719_v5 = vadd.f32 %v1715_v45, %v1687_v41  ;;  %v1766_v1 = vmul.f32 %v1761_v36, %v4859_v42  ;;  %v1767_v37 = vmul.f32 %v1763_v31, %v4860_v30  ;;  %v4878_v4 = vld [vmem:[#allocation26_spill] sm:$0xff]  ;;  %v4886_v42 = vld [vmem:[#allocation21_spill] sm:$0xff]  ;;  %v4887_v30 = vld [vmem:[#allocation23_spill] sm:$0xff] }
 0x47b   : > { %v1863_v7 = vmul.f32 %v1859_v48, %v4863_v32  ;;  %v1889_v49 = vsel %vm4866_vm2, %v4865_v3, %v1887_v0  ;;  %v1891_v60 = vsel %vm4867_vm3, %v1887_v0, %v4865_v3  ;;  %vm4869_vm4 = vcmp.lt.s32.totalorder %v2729_v22, 110  ;;  %v4882_v16 = vld [vmem:[#allocation74_spill] sm:$0xff] }
 0x47c   : > { %v1750_v11 = vadd.f32 %v1746_v6, %v1718_v20  ;;  %v1751_v56 = vadd.f32 %v1747_v19, %v1719_v5  ;;  %v1778_v15 = vmul.f32 %v4864_v17, %v1766_v1  ;;  %v1779_v62 = vmul.f32 %v4864_v17, %v1767_v37  ;;  %v1823_v9 = vpop.permute.xlu1 %1822  ;;  %vm4870_vm5 = vmmov %vm4869_vm4  ;;  %v4885_v20 = vld [vmem:[#allocation16_spill] sm:$0xff]  ;;  %v4893_v3 = vld [vmem:[#allocation70_spill] sm:$0xff] }
 0x47d   : > { %v1825_v38 = vsel %vm4869_vm4, %v4868_v34, %v1823_v9  ;;  %v1827_v33 = vsel %vm4870_vm5, %v1823_v9, %v4868_v34  ;;  %v1894_v54 = vmul.f32 %v1889_v49, %v4874_v29  ;;  %v1895_v55 = vmul.f32 %v1891_v60, %v4875_v59 }
 0x47e   : > { %v1782_v26 = vadd.f32 %v1778_v15, %v1750_v11  ;;  %v1783_v27 = vadd.f32 %v1779_v62, %v1751_v56  ;;  %v1830_v51 = vmul.f32 %v1825_v38, %v4871_v52  ;;  %v1831_v63 = vmul.f32 %v1827_v33, %v4872_v44  ;;  %v4889_v11 = vld [vmem:[#allocation69_spill] sm:$0xff]  ;;  %v4890_v15 = vld [vmem:[#allocation84_spill] sm:$0xff] }
 0x47f   : > { %v1874_v53 = vmul.f32 %v4876_v8, %v1862_v39  ;;  %v1875_v14 = vmul.f32 %v4876_v8, %v1863_v7  ;;  %v1953_v46 = vsel %vm1049_vm11, %v4877_v21, %v1951_v13  ;;  %v1955_v48 = vsel %vm1049_vm11, %v1951_v13, %v4877_v21  ;;  %v2283_v39 = vld [vmem:[%s4295_s9 + $0x38] ss:$0 sm:$0xff]  ;;  %v4896_v8 = vld [vmem:[#allocation39_spill] sm:$0xff] }
 0x480   : > { %v1814_v58 = vadd.f32 %v1810_v50, %v1782_v26  ;;  %v1815_v47 = vadd.f32 %v1811_v24, %v1783_v27  ;;  %v1842_v18 = vmul.f32 %v4873_v2, %v1830_v51  ;;  %v1843_v0 = vmul.f32 %v4873_v2, %v1831_v63  ;;  %v1981_v23 = vpop.permute.xlu1 %1980  ;;  %v2282_v24 = vld [vmem:[%s4295_s9 + $0x30] ss:$0 sm:$0xff]  ;;  %v4894_v33 = vld [vmem:[#allocation73_spill] sm:$0xff] }
 0x481   : > { %vm4879_vm6 = vcmp.lt.s32.totalorder %v2729_v22, 94  ;;  %v1906_v6 = vmul.f32 %v4881_v12, %v1894_v54  ;;  %v1907_v19 = vmul.f32 %v4881_v12, %v1895_v55  ;;  %vm4883_vm8 = vcmp.lt.s32.totalorder %v2729_v22, 96  ;;  %v2284_v54 = vld [vmem:[%s2430_s22 + $0x30] sm:$0xff]  ;;  %v2285_v55 = vld [vmem:[%s2430_s22 + $0x38] sm:$0xff] }
 0x482   : > { %v1846_v43 = vadd.f32 %v1842_v18, %v1814_v58  ;;  %v1847_v10 = vadd.f32 %v1843_v0, %v1815_v47  ;;  %v1985_v41 = vsel %vm4879_vm6, %v4878_v4, %v1983_v57  ;;  %vm4880_vm7 = vmmov %vm4879_vm6  ;;  %v1958_v5 = vmul.f32 %v1953_v46, %v4885_v20  ;;  %v2016_v47 = vpop.permute.xlu0 %2015  ;;  %v4895_v0 = vld [vmem:[#allocation72_spill] sm:$0xff] }
 0x483   : > { %v1987_v35 = vsel %vm4880_vm7, %v1983_v57, %v4878_v4  ;;  %vm4884_vm11 = vmmov %vm4883_vm8  ;;  %v1959_v1 = vmul.f32 %v1955_v48, %v4886_v42  ;;  %v1990_v40 = vmul.f32 %v2282_v24, %v1985_v41  ;;  %v2286_v48 = vld [vmem:[%s2430_s22 + $0x20] sm:$0xff]  ;;  %v2287_v41 = vld [vmem:[%s2430_s22 + $0x28] sm:$0xff] }
 0x484   : > { %v1878_v25 = vadd.f32 %v1874_v53, %v1846_v43  ;;  %v1879_v45 = vadd.f32 %v1875_v14, %v1847_v10  ;;  %v1919_v28 = vpop.permute.xlu1 %1918  ;;  %v1991_v32 = vmul.f32 %v2283_v39, %v1987_v35  ;;  %vm4891_vm10 = vmmov %vm4879_vm6  ;;  %v1970_v49 = vmul.f32 %v4893_v3, %v1958_v5  ;;  %v4897_v14 = vld [vmem:[#allocation24_spill] sm:$0xff] }
 0x485   : > { %v1921_v36 = vsel %vm4883_vm8, %v4882_v16, %v1919_v28  ;;  %v1923_v31 = vsel %vm4884_vm11, %v1919_v28, %v4882_v16  ;;  %v1984_v62 = vsel %vm4891_vm10, %v4890_v15, %v1981_v23  ;;  %vm4892_vm9 = vmmov %vm4879_vm6  ;;  %v1971_v60 = vmul.f32 %v4893_v3, %v1959_v1 }
 0x486   : > { %v1926_v37 = vmul.f32 %v1921_v36, %v4887_v30  ;;  %v1927_v50 = vmul.f32 %v1923_v31, %v4888_v61  ;;  %v1910_v7 = vadd.f32 %v1906_v6, %v1878_v25  ;;  %v1911_v13 = vadd.f32 %v1907_v19, %v1879_v45 }
 0x487   : > { %v1986_v9 = vsel %vm4892_vm9, %v1981_v23, %v4890_v15  ;;  %v2002_v26 = vmul.f32 %v4894_v33, %v1990_v40  ;;  %v2003_v27 = vmul.f32 %v4894_v33, %v1991_v32  ;;  %v1988_v52 = vmul.f32 %v2282_v24, %v1984_v62 }
 0x488   : > { %v1938_v56 = vmul.f32 %v4889_v11, %v1926_v37  ;;  %v1939_v17 = vmul.f32 %v4889_v11, %v1927_v50  ;;  %v1989_v51 = vmul.f32 %v2283_v39, %v1986_v9 }
 0x489   : > { %v2000_v23 = vmul.f32 %v4895_v0, %v1988_v52 }
 0x48a   : > { %v1942_v34 = vadd.f32 %v1938_v56, %v1910_v7  ;;  %v1943_v38 = vadd.f32 %v1939_v17, %v1911_v13  ;;  %v2001_v29 = vmul.f32 %v4895_v0, %v1989_v51 }
 0x48b   : > { %v2004_v53 = vadd.f32 %v2000_v23, %v4896_v8 }
 0x48c   : > { %v1974_v44 = vadd.f32 %v1970_v49, %v1942_v34  ;;  %v1975_v63 = vadd.f32 %v1971_v60, %v1943_v38  ;;  %v2005_v43 = vadd.f32 %v2001_v29, %v4897_v14 }
 0x48e   : > { %v2006_v22 = vadd.f32 %v2002_v26, %v1974_v44  ;;  %v2007_v58 = vadd.f32 %v2003_v27, %v1975_v63 }
 0x490   : > { %v2020_v2 = vadd.f32 %v2016_v47, %v2006_v22  ;;  %v2021_v18 = vadd.f32 %v2016_v47, %v2007_v58 }
 0x492   : > { %v2032_v59 = vadd.f32 %v2284_v54, %v2020_v2  ;;  %v2033_v57 = vadd.f32 %v2285_v55, %v2021_v18 }
 0x494   : > { %2036 = vst [vmem:[%s3373_s19 + $0x30] sm:$0xff] %v2032_v59  ;;  %2037 = vst [vmem:[%s3373_s19 + $0x38] sm:$0xff] %v2033_v57 }
 0x495   : > { %v2011_v10 = vpop.permute.xlu1 %2010 }
 0x496   : > { %v2018_v21 = vadd.f32 %v2011_v10, %v2004_v53  ;;  %v2019_v46 = vadd.f32 %v2011_v10, %v2005_v43 }
 0x498   : > { %v2030_v4 = vadd.f32 %v2286_v48, %v2018_v21  ;;  %v2031_v35 = vadd.f32 %v2287_v41, %v2019_v46 }
 0x49a   : > { %2034 = vst [vmem:[%s3373_s19 + $0x20] sm:$0xff] %v2030_v4  ;;  %2035 = vst [vmem:[%s3373_s19 + $0x28] sm:$0xff] %v2031_v35 }
 0x49b PF: > { %s20_s13 = sadd.s32 1, %s2294_s13  }
 0x49c   : > { %p17_p4 = scmp.ge.s32.totalorder %s20_s13, 4  }
 0x49e   :  { %19 = sbr.rel (!%p17_p4) target bundleno = 4 (0x4), region = 90 }

</bundles_post_ra>
